<compile_context>
chip_gen: v7x
topology: tpu7x:2x2x1
jax: 0.10.0
libtpu: 0.0.40
codegen_flags: <defaults>
</compile_context>

<pallas_src>
import jax
import jax.numpy as jnp
from jax.experimental import pallas as pl
from jax.experimental.pallas import tpu as pltpu

D_Z = 64
D_H = 128
D_I = 784
D_I_PAD = 896            # 7 * 128: lane-aligned final width (zero padded)
BN_EPS = 1e-5


def _linear_bn_relu(h, w, g_ref, be_ref):
    """Linear (bias dropped: cancelled by BN) -> BatchNorm1d(train) -> ReLU."""
    y = jnp.dot(h.astype(jnp.bfloat16), w, preferred_element_type=jnp.float32)
    mean = jnp.mean(y, axis=0, keepdims=True)
    centered = y - mean
    var = jnp.mean(centered * centered, axis=0, keepdims=True)
    scale = g_ref[...] * jax.lax.rsqrt(var + BN_EPS)
    return jnp.maximum(centered * scale + be_ref[...], 0.0)


def generator_kernel(
    x_ref,
    w1, g1, be1,
    w2, g2, be2,
    w3, g3, be3,
    w4_hbm, g4, be4,
    w5_hbm, b5,
    o_ref,
    w4_buf, w5_buf, dma_sem,
):
    first = pl.program_id(0) == 0

    # Kick off the big-weight copies on the first chunk only; the VMEM scratch
    # buffers persist across grid steps, so later chunks reuse them for free.
    @pl.when(first)
    def _start_big_weight_dma():
        pltpu.make_async_copy(w4_hbm, w4_buf, dma_sem.at[0]).start()
        pltpu.make_async_copy(w5_hbm, w5_buf, dma_sem.at[1]).start()

    h = x_ref[...]
    h = _linear_bn_relu(h, w1[...], g1, be1)
    h = _linear_bn_relu(h, w2[...], g2, be2)
    h = _linear_bn_relu(h, w3[...], g3, be3)

    @pl.when(first)
    def _wait_w4():
        pltpu.make_async_copy(w4_hbm, w4_buf, dma_sem.at[0]).wait()

    h = _linear_bn_relu(h, w4_buf[...], g4, be4)

    @pl.when(first)
    def _wait_w5():
        pltpu.make_async_copy(w5_hbm, w5_buf, dma_sem.at[1]).wait()

    # Final Linear (bias kept) -> Sigmoid (exact exp + exact reciprocal).
    logits = jnp.dot(h.astype(jnp.bfloat16), w5_buf[...],
                     preferred_element_type=jnp.float32) + b5[...]
    o_ref[...] = pl.reciprocal(1.0 + jnp.exp(-logits))


def generator_forward(noise, kernel_params, chunk=None):
    """noise: [N, D_Z] f32; kernel_params: flat tuple of 14 arrays.

    `chunk` is the BatchNorm batch size; each grid step processes one complete
    chunk with its own BN statistics.  chunk=None (default) -> one chunk over
    the whole batch, i.e. exactly the module's forward semantics.
    """
    n = noise.shape[0]
    if chunk is None:
        chunk = n
    assert n % chunk == 0, "batch must be a multiple of the BN chunk"
    assert chunk == n or chunk % 8 == 0, "chunk must be sublane (8) aligned"
    num_chunks = n // chunk

    def const2(shape):
        # Whole-array block, constant index_map: DMA'd once per call.
        return pl.BlockSpec(shape, lambda c: (0, 0))

    in_specs = [
        pl.BlockSpec((chunk, D_Z), lambda c: (c, 0)),               # x
        const2((D_Z, D_H)), const2((1, D_H)), const2((1, D_H)),     # w1,g1,be1
        const2((D_H, 2 * D_H)), const2((1, 2 * D_H)), const2((1, 2 * D_H)),
        const2((2 * D_H, 4 * D_H)), const2((1, 4 * D_H)), const2((1, 4 * D_H)),
        pl.BlockSpec(memory_space=pl.ANY),                           # w4 (HBM)
        const2((1, 8 * D_H)), const2((1, 8 * D_H)),                  # g4, be4
        pl.BlockSpec(memory_space=pl.ANY),                           # w5 (HBM)
        const2((1, D_I_PAD)),                                        # b5
    ]

    grid_spec = pltpu.PrefetchScalarGridSpec(
        num_scalar_prefetch=0,
        grid=(num_chunks,),
        in_specs=in_specs,
        out_specs=pl.BlockSpec((chunk, D_I_PAD), lambda c: (c, 0)),
        scratch_shapes=[
            pltpu.VMEM((4 * D_H, 8 * D_H), jnp.bfloat16),    # W4 buffer
            pltpu.VMEM((8 * D_H, D_I_PAD), jnp.bfloat16),    # W5 buffer
            pltpu.SemaphoreType.DMA((2,)),
        ],
    )

    out = pl.pallas_call(
        generator_kernel,
        out_shape=jax.ShapeDtypeStruct((n, D_I_PAD), jnp.float32),
        grid_spec=grid_spec,
        compiler_params=pltpu.CompilerParams(
            # "arbitrary": the step-0-gated W4/W5 DMA requires sequential
            # execution of the chunk axis on a single TensorCore.
            dimension_semantics=("arbitrary",),
            vmem_limit_bytes=24 << 20,
        ),
    )(noise, *kernel_params)
    return out[:, :D_I]


def init_params(key):
    """Deterministic synthetic parameters (shapes match the PyTorch module).

    Weights are returned in [d_in, d_out] layout (PyTorch's W.T), stored in
    bf16; biases / BN affine params in f32.
    """
    dims = [D_Z, D_H, 2 * D_H, 4 * D_H, 8 * D_H, D_I]
    keys = jax.random.split(key, 5)
    layers = []
    for i in range(5):
        d_in, d_out = dims[i], dims[i + 1]
        bound = 1.0 / (d_in ** 0.5)
        w = jax.random.uniform(keys[i], (d_in, d_out), jnp.float32, -bound, bound)
        b = jax.random.uniform(jax.random.fold_in(keys[i], 1),
                               (1, d_out), jnp.float32, -bound, bound)
        layer = {"w": w.astype(jnp.bfloat16), "b": b}
        if i < 4:  # first four blocks carry BatchNorm1d (gamma=1, beta=0)
            layer["gamma"] = jnp.ones((1, d_out), jnp.float32)
            layer["beta"] = jnp.zeros((1, d_out), jnp.float32)
        layers.append(layer)
    return layers


def pack_kernel_params(layers):
    """Flatten params for the kernel: drop dead biases b1..b4, pad layer 5."""
    flat = []
    for layer in layers[:4]:
        flat += [layer["w"], layer["gamma"], layer["beta"]]
    w5p = jnp.pad(layers[4]["w"], ((0, 0), (0, D_I_PAD - D_I)))
    b5p = jnp.pad(layers[4]["b"], ((0, 0), (0, D_I_PAD - D_I)))
    flat += [w5p, b5p]
    return tuple(flat)


def generator_reference(noise, layers):
    """Pure-JAX f32 reference with the original module math (incl. biases)."""
    h = noise
    for layer in layers[:4]:
        w = layer["w"].astype(jnp.float32)
        y = h @ w + layer["b"]
        mean = jnp.mean(y, axis=0, keepdims=True)
        var = jnp.mean((y - mean) ** 2, axis=0, keepdims=True)
        h = jnp.maximum(
            (y - mean) * jax.lax.rsqrt(var + BN_EPS) * layer["gamma"]
            + layer["beta"], 0.0)
    w5 = layers[4]["w"].astype(jnp.float32)
    return jax.nn.sigmoid(h @ w5 + layers[4]["b"])


if __name__ == "__main__":
    key = jax.random.PRNGKey(0)
    k1, k2, kp = jax.random.split(key, 3)

    layers = init_params(kp)
    kernel_params = pack_kernel_params(layers)

    # 1) Single BN batch (grid=(1,)): exact module forward semantics.
    batch = 8
    noise1 = jax.random.normal(k1, (batch, D_Z), dtype=jnp.float32)
    out1 = jax.block_until_ready(generator_forward(noise1, kernel_params))
    ref1 = generator_reference(noise1, layers)
    assert out1.shape == (batch, D_I)
    err1 = float(jnp.max(jnp.abs(out1 - ref1)))
    assert err1 < 1e-2, err1

    # 2) Super-batch of 4 independent 8-row BN batches (grid=(4,)): exercises
    #    the weight-amortizing chunk grid; reference runs per chunk.
    cn, cb = 4, 8
    noise2 = jax.random.normal(k2, (cn * cb, D_Z), dtype=jnp.float32)
    out2 = jax.block_until_ready(
        generator_forward(noise2, kernel_params, chunk=cb))
    ref2 = jnp.concatenate(
        [generator_reference(noise2[i * cb:(i + 1) * cb], layers)
         for i in range(cn)], axis=0)
    err2 = float(jnp.max(jnp.abs(out2 - ref2)))
    assert err2 < 1e-2, err2

    print("KERNEL_OK")
</pallas_src>

<mosaic_0001>
module attributes {stable_mosaic.version = 11 : i64} {
  func.func @generator_kernel(%arg0: i32, %arg1: memref<8x64xf32, #tpu.memory_space<vmem>>, %arg2: memref<64x128xbf16, #tpu.memory_space<vmem>>, %arg3: memref<1x128xf32, #tpu.memory_space<vmem>>, %arg4: memref<1x128xf32, #tpu.memory_space<vmem>>, %arg5: memref<128x256xbf16, #tpu.memory_space<vmem>>, %arg6: memref<1x256xf32, #tpu.memory_space<vmem>>, %arg7: memref<1x256xf32, #tpu.memory_space<vmem>>, %arg8: memref<256x512xbf16, #tpu.memory_space<vmem>>, %arg9: memref<1x512xf32, #tpu.memory_space<vmem>>, %arg10: memref<1x512xf32, #tpu.memory_space<vmem>>, %arg11: memref<512x1024xbf16, #tpu.memory_space<any>>, %arg12: memref<1x1024xf32, #tpu.memory_space<vmem>>, %arg13: memref<1x1024xf32, #tpu.memory_space<vmem>>, %arg14: memref<1024x896xbf16, #tpu.memory_space<any>>, %arg15: memref<1x896xf32, #tpu.memory_space<vmem>>, %arg16: memref<8x896xf32, #tpu.memory_space<vmem>>, %arg17: memref<512x1024xbf16, #tpu.memory_space<vmem>>, %arg18: memref<1024x896xbf16, #tpu.memory_space<vmem>>, %arg19: memref<2x!tpu.dma_semaphore, #tpu.memory_space<semaphore_mem>>) attributes {dimension_semantics = [#tpu.dimension_semantics<arbitrary>], iteration_bounds = array<i64: 1>, scalar_prefetch = 0 : i64, scratch_operands = 3 : i64, tpu.core_type = #tpu.core_type<tc>, window_params = [{transform_indices = @transform_0, window_bounds = array<i64: 8, 64>}, {pipeline_mode = #tpu.pipeline_mode<synchronous>, transform_indices = @transform_1, window_bounds = array<i64: 64, 128>}, {pipeline_mode = #tpu.pipeline_mode<synchronous>, transform_indices = @transform_2, window_bounds = array<i64: 1, 128>}, {pipeline_mode = #tpu.pipeline_mode<synchronous>, transform_indices = @transform_3, window_bounds = array<i64: 1, 128>}, {pipeline_mode = #tpu.pipeline_mode<synchronous>, transform_indices = @transform_4, window_bounds = array<i64: 128, 256>}, {pipeline_mode = #tpu.pipeline_mode<synchronous>, transform_indices = @transform_5, window_bounds = array<i64: 1, 256>}, {pipeline_mode = #tpu.pipeline_mode<synchronous>, transform_indices = @transform_6, window_bounds = array<i64: 1, 256>}, {pipeline_mode = #tpu.pipeline_mode<synchronous>, transform_indices = @transform_7, window_bounds = array<i64: 256, 512>}, {pipeline_mode = #tpu.pipeline_mode<synchronous>, transform_indices = @transform_8, window_bounds = array<i64: 1, 512>}, {pipeline_mode = #tpu.pipeline_mode<synchronous>, transform_indices = @transform_9, window_bounds = array<i64: 1, 512>}, {}, {pipeline_mode = #tpu.pipeline_mode<synchronous>, transform_indices = @transform_11, window_bounds = array<i64: 1, 1024>}, {pipeline_mode = #tpu.pipeline_mode<synchronous>, transform_indices = @transform_12, window_bounds = array<i64: 1, 1024>}, {}, {pipeline_mode = #tpu.pipeline_mode<synchronous>, transform_indices = @transform_14, window_bounds = array<i64: 1, 896>}, {transform_indices = @transform_15, window_bounds = array<i64: 8, 896>}]} {
    %c0_i32 = arith.constant 0 : i32
    %0 = arith.cmpi eq, %arg0, %c0_i32 : i32
    %1 = arith.extui %0 : i1 to i32
    %c0_i32_0 = arith.constant 0 : i32
    %2 = arith.cmpi ne, %1, %c0_i32_0 : i32
    scf.if %2 {
      %c0_i32_64 = arith.constant 0 : i32
      %125 = tpu.memref_slice %arg19[%c0_i32_64] : memref<2x!tpu.dma_semaphore, #tpu.memory_space<semaphore_mem>> -> memref<1x!tpu.dma_semaphore, #tpu.memory_space<semaphore_mem>>
      %126 = tpu.memref_squeeze %125 : memref<1x!tpu.dma_semaphore, #tpu.memory_space<semaphore_mem>> -> memref<!tpu.dma_semaphore, #tpu.memory_space<semaphore_mem>>
      tpu.enqueue_dma source(%arg11 : memref<512x1024xbf16, #tpu.memory_space<any>>) target(%arg17 : memref<512x1024xbf16, #tpu.memory_space<vmem>>) target_semaphore(%126 : memref<!tpu.dma_semaphore, #tpu.memory_space<semaphore_mem>>)
      %c1_i32 = arith.constant 1 : i32
      %127 = tpu.memref_slice %arg19[%c1_i32] : memref<2x!tpu.dma_semaphore, #tpu.memory_space<semaphore_mem>> -> memref<1x!tpu.dma_semaphore, #tpu.memory_space<semaphore_mem>>
      %128 = tpu.memref_squeeze %127 : memref<1x!tpu.dma_semaphore, #tpu.memory_space<semaphore_mem>> -> memref<!tpu.dma_semaphore, #tpu.memory_space<semaphore_mem>>
      tpu.enqueue_dma source(%arg14 : memref<1024x896xbf16, #tpu.memory_space<any>>) target(%arg18 : memref<1024x896xbf16, #tpu.memory_space<vmem>>) target_semaphore(%128 : memref<!tpu.dma_semaphore, #tpu.memory_space<semaphore_mem>>)
    } else {
    }
    %c0 = arith.constant 0 : index
    %c0_1 = arith.constant 0 : index
    %3 = vector.load %arg1[%c0, %c0_1] : memref<8x64xf32, #tpu.memory_space<vmem>>, vector<8x64xf32>
    %c0_2 = arith.constant 0 : index
    %c0_3 = arith.constant 0 : index
    %4 = vector.load %arg2[%c0_2, %c0_3] : memref<64x128xbf16, #tpu.memory_space<vmem>>, vector<64x128xbf16>
    %5 = arith.truncf %3 : vector<8x64xf32> to vector<8x64xbf16>
    %cst = arith.constant dense<0.000000e+00> : vector<8x128xf32>
    %6 = tpu.matmul %5, %4, %cst {dimension_numbers = #tpu.dot_dimension_numbers<[1], [0], [0], [1], [0, 0, 1, 1], [], []>} : vector<8x64xbf16>, vector<64x128xbf16>, vector<8x128xf32> -> vector<8x128xf32>
    %cst_4 = arith.constant dense<0.000000e+00> : vector<128xf32>
    %7 = vector.multi_reduction <add>, %6, %cst_4 [0] : vector<8x128xf32> to vector<128xf32>
    %8 = vector.shape_cast %7 : vector<128xf32> to vector<1x128xf32>
    %cst_5 = arith.constant 8.000000e+00 : f32
    %9 = vector.broadcast %cst_5 : f32 to vector<1x128xf32>
    %10 = arith.divf %8, %9 : vector<1x128xf32>
    %11 = vector.broadcast %10 : vector<1x128xf32> to vector<8x128xf32>
    %12 = arith.subf %6, %11 : vector<8x128xf32>
    %13 = arith.mulf %12, %12 : vector<8x128xf32>
    %cst_6 = arith.constant dense<0.000000e+00> : vector<128xf32>
    %14 = vector.multi_reduction <add>, %13, %cst_6 [0] : vector<8x128xf32> to vector<128xf32>
    %15 = vector.shape_cast %14 : vector<128xf32> to vector<1x128xf32>
    %cst_7 = arith.constant 8.000000e+00 : f32
    %16 = vector.broadcast %cst_7 : f32 to vector<1x128xf32>
    %17 = arith.divf %15, %16 : vector<1x128xf32>
    %c0_8 = arith.constant 0 : index
    %c0_9 = arith.constant 0 : index
    %18 = vector.load %arg3[%c0_8, %c0_9] : memref<1x128xf32, #tpu.memory_space<vmem>>, vector<1x128xf32>
    %cst_10 = arith.constant 9.99999974E-6 : f32
    %19 = vector.broadcast %cst_10 : f32 to vector<1x128xf32>
    %20 = arith.addf %17, %19 : vector<1x128xf32>
    %21 = math.rsqrt %20 : vector<1x128xf32>
    %22 = arith.mulf %18, %21 : vector<1x128xf32>
    %23 = vector.broadcast %22 : vector<1x128xf32> to vector<8x128xf32>
    %24 = arith.mulf %12, %23 : vector<8x128xf32>
    %c0_11 = arith.constant 0 : index
    %c0_12 = arith.constant 0 : index
    %25 = vector.load %arg4[%c0_11, %c0_12] : memref<1x128xf32, #tpu.memory_space<vmem>>, vector<1x128xf32>
    %26 = vector.broadcast %25 : vector<1x128xf32> to vector<8x128xf32>
    %27 = arith.addf %24, %26 : vector<8x128xf32>
    %cst_13 = arith.constant 0.000000e+00 : f32
    %28 = vector.broadcast %cst_13 : f32 to vector<8x128xf32>
    %29 = arith.maximumf %27, %28 : vector<8x128xf32>
    %c0_14 = arith.constant 0 : index
    %c0_15 = arith.constant 0 : index
    %30 = vector.load %arg5[%c0_14, %c0_15] : memref<128x256xbf16, #tpu.memory_space<vmem>>, vector<128x256xbf16>
    %31 = arith.truncf %29 : vector<8x128xf32> to vector<8x128xbf16>
    %cst_16 = arith.constant dense<0.000000e+00> : vector<8x256xf32>
    %32 = tpu.matmul %31, %30, %cst_16 {dimension_numbers = #tpu.dot_dimension_numbers<[1], [0], [0], [1], [0, 0, 1, 1], [], []>} : vector<8x128xbf16>, vector<128x256xbf16>, vector<8x256xf32> -> vector<8x256xf32>
    %cst_17 = arith.constant dense<0.000000e+00> : vector<256xf32>
    %33 = vector.multi_reduction <add>, %32, %cst_17 [0] : vector<8x256xf32> to vector<256xf32>
    %34 = vector.shape_cast %33 : vector<256xf32> to vector<1x256xf32>
    %cst_18 = arith.constant 8.000000e+00 : f32
    %35 = vector.broadcast %cst_18 : f32 to vector<1x256xf32>
    %36 = arith.divf %34, %35 : vector<1x256xf32>
    %37 = vector.broadcast %36 : vector<1x256xf32> to vector<8x256xf32>
    %38 = arith.subf %32, %37 : vector<8x256xf32>
    %39 = arith.mulf %38, %38 : vector<8x256xf32>
    %cst_19 = arith.constant dense<0.000000e+00> : vector<256xf32>
    %40 = vector.multi_reduction <add>, %39, %cst_19 [0] : vector<8x256xf32> to vector<256xf32>
    %41 = vector.shape_cast %40 : vector<256xf32> to vector<1x256xf32>
    %cst_20 = arith.constant 8.000000e+00 : f32
    %42 = vector.broadcast %cst_20 : f32 to vector<1x256xf32>
    %43 = arith.divf %41, %42 : vector<1x256xf32>
    %c0_21 = arith.constant 0 : index
    %c0_22 = arith.constant 0 : index
    %44 = vector.load %arg6[%c0_21, %c0_22] : memref<1x256xf32, #tpu.memory_space<vmem>>, vector<1x256xf32>
    %cst_23 = arith.constant 9.99999974E-6 : f32
    %45 = vector.broadcast %cst_23 : f32 to vector<1x256xf32>
    %46 = arith.addf %43, %45 : vector<1x256xf32>
    %47 = math.rsqrt %46 : vector<1x256xf32>
    %48 = arith.mulf %44, %47 : vector<1x256xf32>
    %49 = vector.broadcast %48 : vector<1x256xf32> to vector<8x256xf32>
    %50 = arith.mulf %38, %49 : vector<8x256xf32>
    %c0_24 = arith.constant 0 : index
    %c0_25 = arith.constant 0 : index
    %51 = vector.load %arg7[%c0_24, %c0_25] : memref<1x256xf32, #tpu.memory_space<vmem>>, vector<1x256xf32>
    %52 = vector.broadcast %51 : vector<1x256xf32> to vector<8x256xf32>
    %53 = arith.addf %50, %52 : vector<8x256xf32>
    %cst_26 = arith.constant 0.000000e+00 : f32
    %54 = vector.broadcast %cst_26 : f32 to vector<8x256xf32>
    %55 = arith.maximumf %53, %54 : vector<8x256xf32>
    %c0_27 = arith.constant 0 : index
    %c0_28 = arith.constant 0 : index
    %56 = vector.load %arg8[%c0_27, %c0_28] : memref<256x512xbf16, #tpu.memory_space<vmem>>, vector<256x512xbf16>
    %57 = arith.truncf %55 : vector<8x256xf32> to vector<8x256xbf16>
    %cst_29 = arith.constant dense<0.000000e+00> : vector<8x512xf32>
    %58 = tpu.matmul %57, %56, %cst_29 {dimension_numbers = #tpu.dot_dimension_numbers<[1], [0], [0], [1], [0, 0, 1, 1], [], []>} : vector<8x256xbf16>, vector<256x512xbf16>, vector<8x512xf32> -> vector<8x512xf32>
    %cst_30 = arith.constant dense<0.000000e+00> : vector<512xf32>
    %59 = vector.multi_reduction <add>, %58, %cst_30 [0] : vector<8x512xf32> to vector<512xf32>
    %60 = vector.shape_cast %59 : vector<512xf32> to vector<1x512xf32>
    %cst_31 = arith.constant 8.000000e+00 : f32
    %61 = vector.broadcast %cst_31 : f32 to vector<1x512xf32>
    %62 = arith.divf %60, %61 : vector<1x512xf32>
    %63 = vector.broadcast %62 : vector<1x512xf32> to vector<8x512xf32>
    %64 = arith.subf %58, %63 : vector<8x512xf32>
    %65 = arith.mulf %64, %64 : vector<8x512xf32>
    %cst_32 = arith.constant dense<0.000000e+00> : vector<512xf32>
    %66 = vector.multi_reduction <add>, %65, %cst_32 [0] : vector<8x512xf32> to vector<512xf32>
    %67 = vector.shape_cast %66 : vector<512xf32> to vector<1x512xf32>
    %cst_33 = arith.constant 8.000000e+00 : f32
    %68 = vector.broadcast %cst_33 : f32 to vector<1x512xf32>
    %69 = arith.divf %67, %68 : vector<1x512xf32>
    %c0_34 = arith.constant 0 : index
    %c0_35 = arith.constant 0 : index
    %70 = vector.load %arg9[%c0_34, %c0_35] : memref<1x512xf32, #tpu.memory_space<vmem>>, vector<1x512xf32>
    %cst_36 = arith.constant 9.99999974E-6 : f32
    %71 = vector.broadcast %cst_36 : f32 to vector<1x512xf32>
    %72 = arith.addf %69, %71 : vector<1x512xf32>
    %73 = math.rsqrt %72 : vector<1x512xf32>
    %74 = arith.mulf %70, %73 : vector<1x512xf32>
    %75 = vector.broadcast %74 : vector<1x512xf32> to vector<8x512xf32>
    %76 = arith.mulf %64, %75 : vector<8x512xf32>
    %c0_37 = arith.constant 0 : index
    %c0_38 = arith.constant 0 : index
    %77 = vector.load %arg10[%c0_37, %c0_38] : memref<1x512xf32, #tpu.memory_space<vmem>>, vector<1x512xf32>
    %78 = vector.broadcast %77 : vector<1x512xf32> to vector<8x512xf32>
    %79 = arith.addf %76, %78 : vector<8x512xf32>
    %cst_39 = arith.constant 0.000000e+00 : f32
    %80 = vector.broadcast %cst_39 : f32 to vector<8x512xf32>
    %81 = arith.maximumf %79, %80 : vector<8x512xf32>
    %82 = arith.extui %0 : i1 to i32
    %c0_i32_40 = arith.constant 0 : i32
    %83 = arith.cmpi ne, %82, %c0_i32_40 : i32
    scf.if %83 {
      %c0_i32_64 = arith.constant 0 : i32
      %125 = tpu.memref_slice %arg19[%c0_i32_64] : memref<2x!tpu.dma_semaphore, #tpu.memory_space<semaphore_mem>> -> memref<1x!tpu.dma_semaphore, #tpu.memory_space<semaphore_mem>>
      %126 = tpu.memref_squeeze %125 : memref<1x!tpu.dma_semaphore, #tpu.memory_space<semaphore_mem>> -> memref<!tpu.dma_semaphore, #tpu.memory_space<semaphore_mem>>
      tpu.wait_dma2 semaphore(%126 : memref<!tpu.dma_semaphore, #tpu.memory_space<semaphore_mem>>) src(%arg11 : memref<512x1024xbf16, #tpu.memory_space<any>>) dst(%arg17 : memref<512x1024xbf16, #tpu.memory_space<vmem>>)
    } else {
    }
    %c0_41 = arith.constant 0 : index
    %c0_42 = arith.constant 0 : index
    %84 = vector.load %arg17[%c0_41, %c0_42] : memref<512x1024xbf16, #tpu.memory_space<vmem>>, vector<512x1024xbf16>
    %85 = arith.truncf %81 : vector<8x512xf32> to vector<8x512xbf16>
    %cst_43 = arith.constant dense<0.000000e+00> : vector<8x1024xf32>
    %86 = tpu.matmul %85, %84, %cst_43 {dimension_numbers = #tpu.dot_dimension_numbers<[1], [0], [0], [1], [0, 0, 1, 1], [], []>} : vector<8x512xbf16>, vector<512x1024xbf16>, vector<8x1024xf32> -> vector<8x1024xf32>
    %cst_44 = arith.constant dense<0.000000e+00> : vector<1024xf32>
    %87 = vector.multi_reduction <add>, %86, %cst_44 [0] : vector<8x1024xf32> to vector<1024xf32>
    %88 = vector.shape_cast %87 : vector<1024xf32> to vector<1x1024xf32>
    %cst_45 = arith.constant 8.000000e+00 : f32
    %89 = vector.broadcast %cst_45 : f32 to vector<1x1024xf32>
    %90 = arith.divf %88, %89 : vector<1x1024xf32>
    %91 = vector.broadcast %90 : vector<1x1024xf32> to vector<8x1024xf32>
    %92 = arith.subf %86, %91 : vector<8x1024xf32>
    %93 = arith.mulf %92, %92 : vector<8x1024xf32>
    %cst_46 = arith.constant dense<0.000000e+00> : vector<1024xf32>
    %94 = vector.multi_reduction <add>, %93, %cst_46 [0] : vector<8x1024xf32> to vector<1024xf32>
    %95 = vector.shape_cast %94 : vector<1024xf32> to vector<1x1024xf32>
    %cst_47 = arith.constant 8.000000e+00 : f32
    %96 = vector.broadcast %cst_47 : f32 to vector<1x1024xf32>
    %97 = arith.divf %95, %96 : vector<1x1024xf32>
    %c0_48 = arith.constant 0 : index
    %c0_49 = arith.constant 0 : index
    %98 = vector.load %arg12[%c0_48, %c0_49] : memref<1x1024xf32, #tpu.memory_space<vmem>>, vector<1x1024xf32>
    %cst_50 = arith.constant 9.99999974E-6 : f32
    %99 = vector.broadcast %cst_50 : f32 to vector<1x1024xf32>
    %100 = arith.addf %97, %99 : vector<1x1024xf32>
    %101 = math.rsqrt %100 : vector<1x1024xf32>
    %102 = arith.mulf %98, %101 : vector<1x1024xf32>
    %103 = vector.broadcast %102 : vector<1x1024xf32> to vector<8x1024xf32>
    %104 = arith.mulf %92, %103 : vector<8x1024xf32>
    %c0_51 = arith.constant 0 : index
    %c0_52 = arith.constant 0 : index
    %105 = vector.load %arg13[%c0_51, %c0_52] : memref<1x1024xf32, #tpu.memory_space<vmem>>, vector<1x1024xf32>
    %106 = vector.broadcast %105 : vector<1x1024xf32> to vector<8x1024xf32>
    %107 = arith.addf %104, %106 : vector<8x1024xf32>
    %cst_53 = arith.constant 0.000000e+00 : f32
    %108 = vector.broadcast %cst_53 : f32 to vector<8x1024xf32>
    %109 = arith.maximumf %107, %108 : vector<8x1024xf32>
    %110 = arith.extui %0 : i1 to i32
    %c0_i32_54 = arith.constant 0 : i32
    %111 = arith.cmpi ne, %110, %c0_i32_54 : i32
    scf.if %111 {
      %c1_i32 = arith.constant 1 : i32
      %125 = tpu.memref_slice %arg19[%c1_i32] : memref<2x!tpu.dma_semaphore, #tpu.memory_space<semaphore_mem>> -> memref<1x!tpu.dma_semaphore, #tpu.memory_space<semaphore_mem>>
      %126 = tpu.memref_squeeze %125 : memref<1x!tpu.dma_semaphore, #tpu.memory_space<semaphore_mem>> -> memref<!tpu.dma_semaphore, #tpu.memory_space<semaphore_mem>>
      tpu.wait_dma2 semaphore(%126 : memref<!tpu.dma_semaphore, #tpu.memory_space<semaphore_mem>>) src(%arg14 : memref<1024x896xbf16, #tpu.memory_space<any>>) dst(%arg18 : memref<1024x896xbf16, #tpu.memory_space<vmem>>)
    } else {
    }
    %112 = arith.truncf %109 : vector<8x1024xf32> to vector<8x1024xbf16>
    %c0_55 = arith.constant 0 : index
    %c0_56 = arith.constant 0 : index
    %113 = vector.load %arg18[%c0_55, %c0_56] : memref<1024x896xbf16, #tpu.memory_space<vmem>>, vector<1024x896xbf16>
    %cst_57 = arith.constant dense<0.000000e+00> : vector<8x896xf32>
    %114 = tpu.matmul %112, %113, %cst_57 {dimension_numbers = #tpu.dot_dimension_numbers<[1], [0], [0], [1], [0, 0, 1, 1], [], []>} : vector<8x1024xbf16>, vector<1024x896xbf16>, vector<8x896xf32> -> vector<8x896xf32>
    %c0_58 = arith.constant 0 : index
    %c0_59 = arith.constant 0 : index
    %115 = vector.load %arg15[%c0_58, %c0_59] : memref<1x896xf32, #tpu.memory_space<vmem>>, vector<1x896xf32>
    %116 = vector.broadcast %115 : vector<1x896xf32> to vector<8x896xf32>
    %117 = arith.addf %114, %116 : vector<8x896xf32>
    %cst_60 = arith.constant 0.000000e+00 : f32
    %118 = vector.broadcast %cst_60 : f32 to vector<8x896xf32>
    %119 = arith.subf %118, %117 : vector<8x896xf32>
    %120 = math.exp %119 : vector<8x896xf32>
    %cst_61 = arith.constant 1.000000e+00 : f32
    %121 = vector.broadcast %cst_61 : f32 to vector<8x896xf32>
    %122 = arith.addf %121, %120 : vector<8x896xf32>
    %123 = tpu.reciprocal %122 : vector<8x896xf32> -> vector<8x896xf32>
    %c0_62 = arith.constant 0 : index
    %c0_63 = arith.constant 0 : index
    %124 = vector.load %arg16[%c0_62, %c0_63] : memref<8x896xf32, #tpu.memory_space<vmem>>, vector<8x896xf32>
    tpu.vector_store %arg16[%c0_62, %c0_63], %123 {strides = array<i32>} : memref<8x896xf32, #tpu.memory_space<vmem>>, vector<8x896xf32>,
    return
  }
  func.func @transform_0(%arg0: i32) -> (i32, i32) {
    %c0_i32 = arith.constant 0 : i32
    %c0_i32_0 = arith.constant 0 : i32
    return %arg0, %c0_i32 : i32, i32
  }
  func.func @transform_1(%arg0: i32) -> (i32, i32) {
    %c0_i32 = arith.constant 0 : i32
    %c0_i32_0 = arith.constant 0 : i32
    %c0_i32_1 = arith.constant 0 : i32
    return %c0_i32, %c0_i32_0 : i32, i32
  }
  func.func @transform_2(%arg0: i32) -> (i32, i32) {
    %c0_i32 = arith.constant 0 : i32
    %c0_i32_0 = arith.constant 0 : i32
    %c0_i32_1 = arith.constant 0 : i32
    return %c0_i32, %c0_i32_0 : i32, i32
  }
  func.func @transform_3(%arg0: i32) -> (i32, i32) {
    %c0_i32 = arith.constant 0 : i32
    %c0_i32_0 = arith.constant 0 : i32
    %c0_i32_1 = arith.constant 0 : i32
    return %c0_i32, %c0_i32_0 : i32, i32
  }
  func.func @transform_4(%arg0: i32) -> (i32, i32) {
    %c0_i32 = arith.constant 0 : i32
    %c0_i32_0 = arith.constant 0 : i32
    %c0_i32_1 = arith.constant 0 : i32
    return %c0_i32, %c0_i32_0 : i32, i32
  }
  func.func @transform_5(%arg0: i32) -> (i32, i32) {
    %c0_i32 = arith.constant 0 : i32
    %c0_i32_0 = arith.constant 0 : i32
    %c0_i32_1 = arith.constant 0 : i32
    return %c0_i32, %c0_i32_0 : i32, i32
  }
  func.func @transform_6(%arg0: i32) -> (i32, i32) {
    %c0_i32 = arith.constant 0 : i32
    %c0_i32_0 = arith.constant 0 : i32
    %c0_i32_1 = arith.constant 0 : i32
    return %c0_i32, %c0_i32_0 : i32, i32
  }
  func.func @transform_7(%arg0: i32) -> (i32, i32) {
    %c0_i32 = arith.constant 0 : i32
    %c0_i32_0 = arith.constant 0 : i32
    %c0_i32_1 = arith.constant 0 : i32
    return %c0_i32, %c0_i32_0 : i32, i32
  }
  func.func @transform_8(%arg0: i32) -> (i32, i32) {
    %c0_i32 = arith.constant 0 : i32
    %c0_i32_0 = arith.constant 0 : i32
    %c0_i32_1 = arith.constant 0 : i32
    return %c0_i32, %c0_i32_0 : i32, i32
  }
  func.func @transform_9(%arg0: i32) -> (i32, i32) {
    %c0_i32 = arith.constant 0 : i32
    %c0_i32_0 = arith.constant 0 : i32
    %c0_i32_1 = arith.constant 0 : i32
    return %c0_i32, %c0_i32_0 : i32, i32
  }
  func.func @transform_11(%arg0: i32) -> (i32, i32) {
    %c0_i32 = arith.constant 0 : i32
    %c0_i32_0 = arith.constant 0 : i32
    %c0_i32_1 = arith.constant 0 : i32
    return %c0_i32, %c0_i32_0 : i32, i32
  }
  func.func @transform_12(%arg0: i32) -> (i32, i32) {
    %c0_i32 = arith.constant 0 : i32
    %c0_i32_0 = arith.constant 0 : i32
    %c0_i32_1 = arith.constant 0 : i32
    return %c0_i32, %c0_i32_0 : i32, i32
  }
  func.func @transform_14(%arg0: i32) -> (i32, i32) {
    %c0_i32 = arith.constant 0 : i32
    %c0_i32_0 = arith.constant 0 : i32
    %c0_i32_1 = arith.constant 0 : i32
    return %c0_i32, %c0_i32_0 : i32, i32
  }
  func.func @transform_15(%arg0: i32) -> (i32, i32) {
    %c0_i32 = arith.constant 0 : i32
    %c0_i32_0 = arith.constant 0 : i32
    return %arg0, %c0_i32 : i32, i32
  }
}

</mosaic_0001>

<bundles_post_ra>
// kernel: tpu_custom_call.1
= control target key start
LH: loop header
LB: loop body
LE: loop exit
PB: predicated region body
PF: predicated region fallthrough
CT: control target
= control target key end

     0   :  { %s4756_s0 = inlined_call_operand.hbm [shape: f32[8,64], index: 0, kind: input, shape index: {}]   ;;  %s4757_s1 = inlined_call_operand.hbm [shape: bf16[64,128], index: 1, kind: input, shape index: {}]   ;;  %s4758_s2 = inlined_call_operand.hbm [shape: f32[1,128], index: 2, kind: input, shape index: {}]   ;;  %s4759_s3 = inlined_call_operand.hbm [shape: f32[1,128], index: 3, kind: input, shape index: {}]   ;;  %s4760_s4 = inlined_call_operand.hbm [shape: bf16[128,256], index: 4, kind: input, shape index: {}]   ;;  %s4761_s5 = inlined_call_operand.hbm [shape: f32[1,256], index: 5, kind: input, shape index: {}]   ;;  %s4762_s6 = inlined_call_operand.hbm [shape: f32[1,256], index: 6, kind: input, shape index: {}]   ;;  %s4763_s7 = inlined_call_operand.hbm [shape: bf16[256,512], index: 7, kind: input, shape index: {}]   ;;  %s4764_s8 = inlined_call_operand.hbm [shape: f32[1,512], index: 8, kind: input, shape index: {}]   ;;  %s4765_s9 = inlined_call_operand.hbm [shape: f32[1,512], index: 9, kind: input, shape index: {}]   ;;  %s4766_s10 = inlined_call_operand.hbm [shape: bf16[512,1024], index: 10, kind: input, shape index: {}]   ;;  %s4767_s11 = inlined_call_operand.hbm [shape: f32[1,1024], index: 11, kind: input, shape index: {}]   ;;  %s4768_s12 = inlined_call_operand.hbm [shape: f32[1,1024], index: 12, kind: input, shape index: {}]   ;;  %s4769_s13 = inlined_call_operand.hbm [shape: bf16[1024,896], index: 13, kind: input, shape index: {}]   ;;  %s4770_s14 = inlined_call_operand.hbm [shape: f32[1,896], index: 14, kind: input, shape index: {}]   ;;  %s4771_s15 = inlined_call_operand.hbm [shape: f32[8,896], index: 15, kind: output, shape index: {}]  }
   0x1   :  { %4773 = sst [smem:[#allocation41_spill]] %s4771_s15 }
   0x2   :  { %20 = vsyncpa [#allocation6], 0 }
   0x3   :  { %21 = vsyncpa [#allocation9], 0 }
   0x4   :  { %22 = vsyncpa [#allocation12], 0 }
   0x5   :  { %23 = vsyncpa [#allocation15], 0 }
   0x6   :  { %24 = vsyncpa [#allocation18], 0 }
   0x7   :  { %25 = vsyncpa [#allocation21], 0 }
   0x8   :  { %26 = vsyncpa [#allocation24], 0 }
   0x9   :  { %27 = vsyncpa [#allocation7], 0  ;;  %s4182_s18 = smov [#allocation8]   ;;  %s3854_s22 = scalar_lea.hbm %s4757_s1, 512 }
   0xa   :  { %s43_s19 = sshll.u32 %s4182_s18, 4  ;;  %p3855_p0 = scmp.ne.s32.totalorder %s4757_s1, %s3854_s22  ;;  %s44_s19 = int_to_ptr.vmem [resolvable:$true] %s43_s19 }
   0xb   :  { %p3858_p1 = scmp.lt.u32.totalorder %s3854_s22, %s4757_s1 }
   0xd   :  { %p3860_p2 = pnand %p3858_p1, %p3855_p0 }
   0xf   :  { %3863 = shalt.err (!%p3860_p2)
}
  0x10   :  { %s3864_s27 = scalar_lea.vmem %s44_s19, 512  ;;  %p3869_p4 = scmp.lt.s32.totalorder %s44_s19, %s44_s19 }
  0x11   :  { %p3865_p3 = scmp.ne.s32.totalorder %s44_s19, %s3864_s27  ;;  %p3870_p5 = scmp.lt.s32.totalorder %s3864_s27, %s3864_s27 }
  0x13   :  { %p3871_p6 = por %p3870_p5, %p3869_p4 }
  0x15   :  { %p3872_p7 = pnand %p3871_p6, %p3865_p3 }
  0x17   :  { %3875 = shalt.err (!%p3872_p7)
}
  0x18   :  { %s4183_s28 = smov 64   ;;  %s4184_s29 = smov 4  }
  0x19   :  { %49 = dma.hbm_to_vmem [thread:$0]  %s4757_s1, 512, %s44_s19, [#allocation9], %s4183_s28, %s4183_s28, %s4184_s29  }
  0x1a   :  { %s4185_s17 = smov [#allocation11]   ;;  %s4186_s20 = smov [#allocation14]  }
  0x1b   :  { %s66_s18 = sshll.u32 %s4185_s17, 4  ;;  %s88_s21 = sshll.u32 %s4186_s20, 4  ;;  %s67_s18 = int_to_ptr.vmem [resolvable:$true] %s66_s18  ;;  %s89_s21 = int_to_ptr.vmem [resolvable:$true] %s88_s21 }
  0x1c   :  { %s3876_s24 = scalar_lea.hbm %s4759_s3, 16 }
  0x1d   :  { %p3877_p8 = scmp.ne.s32.totalorder %s4759_s3, %s3876_s24  ;;  %p3880_p9 = scmp.lt.u32.totalorder %s3876_s24, %s4759_s3 }
  0x1f   :  { %p3882_p10 = pnand %p3880_p9, %p3877_p8 }
  0x21   :  { %3885 = shalt.err (!%p3882_p10)
}
  0x22   :  { %s3886_s1 = scalar_lea.vmem %s67_s18, 16  ;;  %s3890_s19 = scalar_lea.vmem %s67_s18, 32 }
  0x23   :  { %p3887_p11 = scmp.ne.s32.totalorder %s67_s18, %s3886_s1  ;;  %p3891_p12 = scmp.lt.s32.totalorder %s67_s18, %s67_s18 }
  0x24   :  { %p3892_p13 = scmp.lt.s32.totalorder %s3890_s19, %s3886_s1 }
  0x26   :  { %p3893_p0 = por %p3892_p13, %p3891_p12 }
  0x28   :  { %p3894_p1 = pnand %p3893_p0, %p3887_p11 }
  0x2a   :  { %3897 = shalt.err (!%p3894_p1)
}
  0x2b   :  { %69 = dma.hbm_to_vmem [thread:$0]  %s4759_s3, 16, %s67_s18, [#allocation12]  }
  0x2c   :  { %s3898_s15 = scalar_lea.hbm %s4761_s5, 32 }
  0x2d   :  { %p3899_p2 = scmp.ne.s32.totalorder %s4761_s5, %s3898_s15  ;;  %p3902_p3 = scmp.lt.u32.totalorder %s3898_s15, %s4761_s5 }
  0x2f   :  { %p3904_p4 = pnand %p3902_p3, %p3899_p2 }
  0x31   :  { %3907 = shalt.err (!%p3904_p4)
}
  0x32   :  { %s3908_s24 = scalar_lea.vmem %s89_s21, 32  ;;  %p3913_p6 = scmp.lt.s32.totalorder %s89_s21, %s89_s21 }
  0x33   :  { %p3909_p5 = scmp.ne.s32.totalorder %s89_s21, %s3908_s24  ;;  %p3914_p7 = scmp.lt.s32.totalorder %s3908_s24, %s3908_s24 }
  0x35   :  { %p3915_p8 = por %p3914_p7, %p3913_p6 }
  0x37   :  { %p3916_p9 = pnand %p3915_p8, %p3909_p5 }
  0x39   :  { %3919 = shalt.err (!%p3916_p9)
}
  0x3a   :  { %91 = dma.hbm_to_vmem [thread:$0]  %s4761_s5, 32, %s89_s21, [#allocation15]  }
  0x3b   :  { %s4187_s25 = smov [#allocation17]   ;;  %s3920_s19 = scalar_lea.hbm %s4763_s7, 8192 }
  0x3c   :  { %s107_s26 = sshll.u32 %s4187_s25, 4  ;;  %p3921_p10 = scmp.ne.s32.totalorder %s4763_s7, %s3920_s19  ;;  %s108_s26 = int_to_ptr.vmem [resolvable:$true] %s107_s26 }
  0x3d   :  { %p3924_p11 = scmp.lt.u32.totalorder %s3920_s19, %s4763_s7 }
  0x3f   :  { %p3926_p12 = pnand %p3924_p11, %p3921_p10 }
  0x41   :  { %3929 = shalt.err (!%p3926_p12)
}
  0x42   :  { %s3930_s15 = scalar_lea.vmem %s108_s26, 8192  ;;  %p3935_p0 = scmp.lt.s32.totalorder %s108_s26, %s108_s26 }
  0x43   :  { %p3931_p13 = scmp.ne.s32.totalorder %s108_s26, %s3930_s15  ;;  %p3936_p1 = scmp.lt.s32.totalorder %s3930_s15, %s3930_s15 }
  0x45   :  { %p3937_p2 = por %p3936_p1, %p3935_p0 }
  0x47   :  { %p3938_p3 = pnand %p3937_p2, %p3931_p13 }
  0x49   :  { %3941 = shalt.err (!%p3938_p3)
}
  0x4a   :  { %s4188_s5 = smov 256   ;;  %s4189_s21 = smov 16  }
  0x4b   :  { %113 = dma.hbm_to_vmem [thread:$0]  %s4763_s7, 8192, %s108_s26, [#allocation18], %s4188_s5, %s4188_s5, %s4189_s21  }
  0x4c   :  { %s4190_s22 = smov [#allocation20]   ;;  %s4191_s24 = smov [#allocation23]  }
  0x4d   :  { %s130_s23 = sshll.u32 %s4190_s22, 4  ;;  %s150_s3 = sshll.u32 %s4191_s24, 4  ;;  %s131_s23 = int_to_ptr.vmem [resolvable:$true] %s130_s23  ;;  %s151_s3 = int_to_ptr.vmem [resolvable:$true] %s150_s3 }
  0x4e   :  { %s3942_s27 = scalar_lea.hbm %s4765_s9, 64 }
  0x4f   :  { %p3943_p4 = scmp.ne.s32.totalorder %s4765_s9, %s3942_s27  ;;  %p3946_p5 = scmp.lt.u32.totalorder %s3942_s27, %s4765_s9 }
  0x51   :  { %p3948_p6 = pnand %p3946_p5, %p3943_p4 }
  0x53   :  { %3951 = shalt.err (!%p3948_p6)
}
  0x54   :  { %s3952_s7 = scalar_lea.vmem %s131_s23, 64  ;;  %p3957_p8 = scmp.lt.s32.totalorder %s131_s23, %s131_s23 }
  0x55   :  { %p3953_p7 = scmp.ne.s32.totalorder %s131_s23, %s3952_s7  ;;  %p3958_p9 = scmp.lt.s32.totalorder %s3952_s7, %s3952_s7 }
  0x57   :  { %p3959_p10 = por %p3958_p9, %p3957_p8 }
  0x59   :  { %p3960_p11 = pnand %p3959_p10, %p3953_p7 }
  0x5b   :  { %3963 = shalt.err (!%p3960_p11)
}
  0x5c   :  { %133 = dma.hbm_to_vmem [thread:$0]  %s4765_s9, 64, %s131_s23, [#allocation21]  }
  0x5d   :  { %s3964_s5 = scalar_lea.hbm %s4768_s12, 128 }
  0x5e   :  { %p3965_p12 = scmp.ne.s32.totalorder %s4768_s12, %s3964_s5  ;;  %p3968_p13 = scmp.lt.u32.totalorder %s3964_s5, %s4768_s12 }
  0x60   :  { %p3970_p0 = pnand %p3968_p13, %p3965_p12 }
  0x62   :  { %3973 = shalt.err (!%p3970_p0)
}
  0x63   :  { %s3974_s24 = scalar_lea.vmem %s151_s3, 128  ;;  %p3979_p2 = scmp.lt.s32.totalorder %s151_s3, %s151_s3 }
  0x64   :  { %p3975_p1 = scmp.ne.s32.totalorder %s151_s3, %s3974_s24  ;;  %p3980_p3 = scmp.lt.s32.totalorder %s3974_s24, %s3974_s24 }
  0x66   :  { %p3981_p4 = por %p3980_p3, %p3979_p2 }
  0x68   :  { %p3982_p5 = pnand %p3981_p4, %p3975_p1 }
  0x6a   :  { %3985 = shalt.err (!%p3982_p5)
}
  0x6b   :  { %153 = dma.hbm_to_vmem [thread:$0]  %s4768_s12, 128, %s151_s3, [#allocation24]  }
  0x6c   :  { %s4192_s18 = smov [#allocation5]   ;;  %s4193_s27 = smov [#allocation10]  }
  0x6d   :  { %s34_s25 = sshll.u32 %s4192_s18, 4  ;;  %s56_s1 = sshll.u32 %s4193_s27, 4  ;;  %s35_s25 = int_to_ptr.vmem [resolvable:$true] %s34_s25  ;;  %s57_s1 = int_to_ptr.vmem [resolvable:$true] %s56_s1 }
  0x6e   :  { %s3986_s29 = scalar_lea.hbm %s4756_s0, 128 }
  0x6f   :  { %p3987_p6 = scmp.ne.s32.totalorder %s4756_s0, %s3986_s29  ;;  %p3990_p7 = scmp.lt.u32.totalorder %s3986_s29, %s4756_s0 }
  0x71   :  { %p3992_p8 = pnand %p3990_p7, %p3987_p6 }
  0x73   :  { %3995 = shalt.err (!%p3992_p8)
}
  0x74   :  { %s3996_s12 = scalar_lea.vmem %s35_s25, 128  ;;  %p4001_p10 = scmp.lt.s32.totalorder %s35_s25, %s35_s25 }
  0x75   :  { %p3997_p9 = scmp.ne.s32.totalorder %s35_s25, %s3996_s12  ;;  %p4002_p11 = scmp.lt.s32.totalorder %s3996_s12, %s3996_s12 }
  0x77   :  { %p4003_p12 = por %p4002_p11, %p4001_p10 }
  0x79   :  { %p4004_p13 = pnand %p4003_p12, %p3997_p9 }
  0x7b   :  { %4007 = shalt.err (!%p4004_p13)
}
  0x7c   :  { %37 = dma.hbm_to_vmem [thread:$0]  %s4756_s0, 128, %s35_s25, [#allocation6]  }
  0x7d   :  { %s4008_s17 = scalar_lea.hbm %s4758_s2, 16 }
  0x7e   :  { %p4009_p0 = scmp.ne.s32.totalorder %s4758_s2, %s4008_s17  ;;  %p4012_p1 = scmp.lt.u32.totalorder %s4008_s17, %s4758_s2 }
  0x80   :  { %p4014_p2 = pnand %p4012_p1, %p4009_p0 }
  0x82   :  { %4017 = shalt.err (!%p4014_p2)
}
  0x83   :  { %s4018_s23 = scalar_lea.vmem %s57_s1, 16  ;;  %s4022_s18 = scalar_lea.vmem %s57_s1, 32 }
  0x84   :  { %p4019_p3 = scmp.ne.s32.totalorder %s57_s1, %s4018_s23  ;;  %p4023_p4 = scmp.lt.s32.totalorder %s57_s1, %s57_s1 }
  0x85   :  { %p4024_p5 = scmp.lt.s32.totalorder %s4022_s18, %s4018_s23 }
  0x87   :  { %p4025_p6 = por %p4024_p5, %p4023_p4 }
  0x89   :  { %p4026_p7 = pnand %p4025_p6, %p4019_p3 }
  0x8b   :  { %4029 = shalt.err (!%p4026_p7)
}
  0x8c   :  { %59 = dma.hbm_to_vmem [thread:$0]  %s4758_s2, 16, %s57_s1, [#allocation9]  }
  0x8d   :  { %s4194_s27 = smov [#allocation13]   ;;  %s4030_s7 = scalar_lea.hbm %s4760_s4, 2048 }
  0x8e   :  { %s75_s19 = sshll.u32 %s4194_s27, 4  ;;  %p4031_p8 = scmp.ne.s32.totalorder %s4760_s4, %s4030_s7  ;;  %s76_s19 = int_to_ptr.vmem [resolvable:$true] %s75_s19 }
  0x8f   :  { %p4034_p9 = scmp.lt.u32.totalorder %s4030_s7, %s4760_s4 }
  0x91   :  { %p4036_p10 = pnand %p4034_p9, %p4031_p8 }
  0x93   :  { %4039 = shalt.err (!%p4036_p10)
}
  0x94   :  { %s4040_s3 = scalar_lea.vmem %s76_s19, 2048  ;;  %p4045_p12 = scmp.lt.s32.totalorder %s76_s19, %s76_s19 }
  0x95   :  { %p4041_p11 = scmp.ne.s32.totalorder %s76_s19, %s4040_s3  ;;  %p4046_p13 = scmp.lt.s32.totalorder %s4040_s3, %s4040_s3 }
  0x97   :  { %p4047_p0 = por %p4046_p13, %p4045_p12 }
  0x99   :  { %p4048_p1 = pnand %p4047_p0, %p4041_p11 }
  0x9b   :  { %4051 = shalt.err (!%p4048_p1)
}
  0x9c   :  { %s4195_s2 = smov 128   ;;  %s4196_s1 = smov 8  }
  0x9d   :  { %81 = dma.hbm_to_vmem [thread:$0]  %s4760_s4, 2048, %s76_s19, [#allocation12], %s4195_s2, %s4195_s2, %s4196_s1  }
  0x9e   :  { %s4197_s21 = smov [#allocation16]   ;;  %s4198_s20 = smov [#allocation19]  }
  0x9f   :  { %s98_s17 = sshll.u32 %s4197_s21, 4  ;;  %s120_s22 = sshll.u32 %s4198_s20, 4  ;;  %s99_s17 = int_to_ptr.vmem [resolvable:$true] %s98_s17  ;;  %s121_s22 = int_to_ptr.vmem [resolvable:$true] %s120_s22 }
  0xa0   :  { %s4052_s23 = scalar_lea.hbm %s4762_s6, 32 }
  0xa1   :  { %p4053_p2 = scmp.ne.s32.totalorder %s4762_s6, %s4052_s23  ;;  %p4056_p3 = scmp.lt.u32.totalorder %s4052_s23, %s4762_s6 }
  0xa3   :  { %p4058_p4 = pnand %p4056_p3, %p4053_p2 }
  0xa5   :  { %4061 = shalt.err (!%p4058_p4)
}
  0xa6   :  { %s4062_s4 = scalar_lea.vmem %s99_s17, 32  ;;  %p4067_p6 = scmp.lt.s32.totalorder %s99_s17, %s99_s17 }
  0xa7   :  { %p4063_p5 = scmp.ne.s32.totalorder %s99_s17, %s4062_s4  ;;  %p4068_p7 = scmp.lt.s32.totalorder %s4062_s4, %s4062_s4 }
  0xa9   :  { %p4069_p8 = por %p4068_p7, %p4067_p6 }
  0xab   :  { %p4070_p9 = pnand %p4069_p8, %p4063_p5 }
  0xad   :  { %4073 = shalt.err (!%p4070_p9)
}
  0xae   :  { %101 = dma.hbm_to_vmem [thread:$0]  %s4762_s6, 32, %s99_s17, [#allocation15]  }
  0xaf   :  { %s4074_s26 = scalar_lea.hbm %s4764_s8, 64 }
  0xb0   :  { %p4075_p10 = scmp.ne.s32.totalorder %s4764_s8, %s4074_s26  ;;  %p4078_p11 = scmp.lt.u32.totalorder %s4074_s26, %s4764_s8 }
  0xb2   :  { %p4080_p12 = pnand %p4078_p11, %p4075_p10 }
  0xb4   :  { %4083 = shalt.err (!%p4080_p12)
}
  0xb5   :  { %s4084_s2 = scalar_lea.vmem %s121_s22, 64  ;;  %p4089_p0 = scmp.lt.s32.totalorder %s121_s22, %s121_s22 }
  0xb6   :  { %p4085_p13 = scmp.ne.s32.totalorder %s121_s22, %s4084_s2  ;;  %p4090_p1 = scmp.lt.s32.totalorder %s4084_s2, %s4084_s2 }
  0xb8   :  { %p4091_p2 = por %p4090_p1, %p4089_p0 }
  0xba   :  { %p4092_p3 = pnand %p4091_p2, %p4085_p13 }
  0xbc   :  { %4095 = shalt.err (!%p4092_p3)
}
  0xbd   :  { %123 = dma.hbm_to_vmem [thread:$0]  %s4764_s8, 64, %s121_s22, [#allocation18]  }
  0xbe   :  { %s4199_s15 = smov [#allocation22]   ;;  %s4200_s21 = smov [#allocation25]  }
  0xbf   :  { %s140_s5 = sshll.u32 %s4199_s15, 4  ;;  %s160_s17 = sshll.u32 %s4200_s21, 4  ;;  %s141_s5 = int_to_ptr.vmem [resolvable:$true] %s140_s5  ;;  %s161_s17 = int_to_ptr.vmem [resolvable:$true] %s160_s17 }
  0xc0   :  { %s4096_s9 = scalar_lea.hbm %s4767_s11, 128 }
  0xc1   :  { %p4097_p4 = scmp.ne.s32.totalorder %s4767_s11, %s4096_s9  ;;  %p4100_p5 = scmp.lt.u32.totalorder %s4096_s9, %s4767_s11 }
  0xc3   :  { %p4102_p6 = pnand %p4100_p5, %p4097_p4 }
  0xc5   :  { %4105 = shalt.err (!%p4102_p6)
}
  0xc6   :  { %s4106_s8 = scalar_lea.vmem %s141_s5, 128  ;;  %p4111_p8 = scmp.lt.s32.totalorder %s141_s5, %s141_s5 }
  0xc7   :  { %p4107_p7 = scmp.ne.s32.totalorder %s141_s5, %s4106_s8  ;;  %p4112_p9 = scmp.lt.s32.totalorder %s4106_s8, %s4106_s8 }
  0xc9   :  { %p4113_p10 = por %p4112_p9, %p4111_p8 }
  0xcb   :  { %p4114_p11 = pnand %p4113_p10, %p4107_p7 }
  0xcd   :  { %4117 = shalt.err (!%p4114_p11)
}
  0xce   :  { %143 = dma.hbm_to_vmem [thread:$0]  %s4767_s11, 128, %s141_s5, [#allocation21]  }
  0xcf   :  { %s4118_s28 = scalar_lea.hbm %s4770_s14, 112 }
  0xd0   :  { %p4119_p12 = scmp.ne.s32.totalorder %s4770_s14, %s4118_s28  ;;  %p4122_p13 = scmp.lt.u32.totalorder %s4118_s28, %s4770_s14 }
  0xd2   :  { %p4124_p0 = pnand %p4122_p13, %p4119_p12 }
  0xd4   :  { %4127 = shalt.err (!%p4124_p0)
}
  0xd5   :  { %s4128_s16 = scalar_lea.vmem %s161_s17, 112  ;;  %s4132_s12 = scalar_lea.vmem %s161_s17, 128 }
  0xd6   :  { %p4129_p1 = scmp.ne.s32.totalorder %s161_s17, %s4128_s16  ;;  %p4133_p2 = scmp.lt.s32.totalorder %s161_s17, %s161_s17 }
  0xd7   :  { %p4134_p3 = scmp.lt.s32.totalorder %s4132_s12, %s4128_s16 }
  0xd9   :  { %p4135_p4 = por %p4134_p3, %p4133_p2 }
  0xdb   :  { %p4136_p5 = pnand %p4135_p4, %p4129_p1 }
  0xdd   :  { %4139 = shalt.err (!%p4136_p5)
}
  0xde   :  { %163 = dma.hbm_to_vmem [thread:$0]  %s4770_s14, 112, %s161_s17, [#allocation24]  }
  0xdf   :  { %4162 = dma.done.wait [#allocation6], 128  }
  0xe0   :  { %4163 = vsyncadd [#allocation6], 4294967168 }
  0xe1   :  { %4164 = dma.done.wait [#allocation9], 528  }
  0xe2   :  { %4165 = vsyncadd [#allocation9], 4294966768 }
  0xe3   :  { %4166 = dma.done.wait [#allocation12], 2064  }
  0xe4   :  { %4167 = vsyncadd [#allocation12], 4294965232 }
  0xe5   :  { %4168 = dma.done.wait [#allocation15], 64  }
  0xe6   :  { %4169 = vsyncadd [#allocation15], 4294967232 }
  0xe7   :  { %4170 = dma.done.wait [#allocation18], 8256  }
  0xe8   :  { %4171 = vsyncadd [#allocation18], 4294959040 }
  0xe9   :  { %4172 = dma.done.wait [#allocation21], 192  }
  0xea   :  { %4173 = vsyncadd [#allocation21], 4294967104 }
  0xeb   :  { %4174 = dma.done.wait [#allocation24], 240  }
  0xec   :  { %4175 = vsyncadd [#allocation24], 4294967056 }
  0xed   :  { %s212_s2 = sld [smem:[#allocation0]]   ;;  %s4201_s6 = smov [#allocation2]   ;;  %v4217_v1 = vmov 0.0   ;;  %vm4218_vm0 = vmmov 0   ;;  %vm312_vm1 = vcmask 523264   ;;  %v4219_v23 = vmov 0  }
  0xee   :  { %s220_s1 = sshll.u32 %s4201_s6, 4  ;;  %s4202_s15 = smov 1024   ;;  %3562 = vmatprep.subr.bf16.mxu0 %v4217_v1  ;;  %3570 = vmatprep.mubr.msk.bf16.mxu0 %vm4218_vm0, %v4217_v1  ;;  %v378_v45 = vlaneseq  ;;  %s221_s1 = int_to_ptr.vmem [resolvable:$true] %s220_s1 }
  0xef   :  { %224 = sst [smem:[#allocation28]] %s4202_s15  ;;  %s4203_s14 = smov 8   ;;  %522 = vmatprep.mubr.bf16.mxu1 %v4219_v23 }
  0xf0   :  { %226 = sst [smem:[#allocation28 + $0x1]] %s4202_s15  ;;  %s4204_s5 = smov 64   ;;  %v4468_v46 = vshrl.u32 %v378_v45, 7 }
  0xf1   :  { %228 = sst [smem:[#allocation28 + $0x2]] %s4203_s14  ;;  %s4205_s17 = smov 128  }
  0xf2   :  { %230 = sst [smem:[#allocation28 + $0x3]] %s4204_s5  ;;  %s4206_s24 = smov 2   ;;  %v4471_v48 = vsub.s32 0, %v4468_v46 }
  0xf3   :  { %s3377_s21 = sshll.u32 %s212_s2, 26  ;;  %232 = sst [smem:[#allocation28 + $0x4]] %s4205_s17 }
  0xf4   :  { %s4458_s20 = sadd.s32 134217728, %s3377_s21  ;;  %234 = sst [smem:[#allocation28 + $0x5]] %s4206_s24 }
  0xf5   :  { %s4207_s9 = smov 512   ;;  %238 = sst [smem:[#allocation28 + $0x7]] %s4204_s5 }
  0xf6   :  { %236 = sst [smem:[#allocation28 + $0x6]] %s4207_s9  ;;  %s4208_s23 = smov 4  }
  0xf7   :  { %240 = sst [smem:[#allocation28 + $0x8]] %s4208_s23  ;;  %s4209_s18 = smov [#allocation4]  }
  0xf8   :  { %s4210_s0 = smov [#allocation27]   ;;  %s4211_s22 = smov 896  }
  0xf9   :  { %242 = dma.general %s4766_s10, 32768, %s221_s1, %s4209_s18, %s4210_s0, [#allocation28], %s4458_s20, 0  }
  0xfa   :  { %259 = sst [smem:[#allocation30]] %s4211_s22  ;;  %s4212_s27 = smov 7  }
  0xfb   :  { %261 = sst [smem:[#allocation30 + $0x1]] %s4211_s22  ;;  %s4213_s4 = smov [#allocation3]  }
  0xfc   :  { %263 = sst [smem:[#allocation30 + $0x2]] %s4212_s27  ;;  %s255_s19 = sshll.u32 %s4213_s4, 4  ;;  %s256_s19 = int_to_ptr.vmem [resolvable:$true] %s255_s19 }
  0xfd   :  { %265 = sst [smem:[#allocation30 + $0x3]] %s4204_s5  ;;  %s4214_s28 = smov 448  }
  0xfe   :  { %267 = sst [smem:[#allocation30 + $0x4]] %s4205_s17  ;;  %s4215_s29 = smov [#allocation4 + $0x1]  }
  0xff   :  { %269 = sst [smem:[#allocation30 + $0x5]] %s4206_s24  ;;  %s4216_s7 = smov [#allocation29]  }
 0x100   :  { %271 = sst [smem:[#allocation30 + $0x6]] %s4214_s28 }
 0x101   :  { %273 = sst [smem:[#allocation30 + $0x7]] %s4204_s5 }
 0x102   :  { %275 = sst [smem:[#allocation30 + $0x8]] %s4208_s23 }
 0x103   :  { %277 = dma.general %s4769_s13, 57344, %s256_s19, %s4215_s29, %s4216_s7, [#allocation30], %s4458_s20, 0  }
 0x104   :  { %v3672_v0 = vld [vmem:[#allocation8] sm:$0xff]   ;;  %v3673_v2 = vld [vmem:[#allocation8 + $0x8] sm:$0xff]   ;;  %v3674_v3 = vld [vmem:[#allocation8 + $0x10] sm:$0xff]  }
 0x105   :  { %3563 = vmatpush3.bf16.msra.mxu0 %v3672_v0  ;;  %v3675_v4 = vld [vmem:[#allocation8 + $0x18] sm:$0xff]   ;;  %v3676_v7 = vld [vmem:[#allocation13 + $0x4] ss:$8 sps:$4 sm:$0xff]   ;;  %v3678_v8 = vld [vmem:[#allocation13] ss:$8 sps:$4 sm:$0xff]  }
 0x106   :  { %3564 = vmatprep.subr.bf16.mxu0 %v4217_v1  ;;  %v278_v5 = vld [vmem:[#allocation5] sm:$0xff]  ;;  %490 = vmatprep.subr.bf16.mxu1 %v3676_v7  ;;  %v3682_v11 = vld [vmem:[#allocation13 + $0x24] ss:$8 sps:$4 sm:$0xff]   ;;  %v3684_v12 = vld [vmem:[#allocation13 + $0x20] ss:$8 sps:$4 sm:$0xff]  }
 0x107   :  { %v287_v6 = vpack.c.bf16 %v278_v5, %v278_v5  ;;  %491 = vmatpush1.bf16.msra.mxu1 %v3678_v8  ;;  %v3679_v9 = vld [vmem:[#allocation13 + $0x14] ss:$8 sps:$4 sm:$0xff]   ;;  %v3681_v10 = vld [vmem:[#allocation13 + $0x10] ss:$8 sps:$4 sm:$0xff]   ;;  %v3688_v15 = vld [vmem:[#allocation13 + $0x44] ss:$8 sps:$4 sm:$0xff]  }
 0x108   :  { %492 = vmatprep.subr.bf16.mxu1 %v3679_v9  ;;  %v3685_v13 = vld [vmem:[#allocation13 + $0x34] ss:$8 sps:$4 sm:$0xff]   ;;  %v3687_v14 = vld [vmem:[#allocation13 + $0x30] ss:$8 sps:$4 sm:$0xff]   ;;  %v3690_v16 = vld [vmem:[#allocation13 + $0x40] ss:$8 sps:$4 sm:$0xff]  }
 0x109   :  { %3565 = vmatpush3.bf16.msra.mxu0 %v3673_v2  ;;  %v3691_v17 = vld [vmem:[#allocation13 + $0x54] ss:$8 sps:$4 sm:$0xff]   ;;  %v3693_v18 = vld [vmem:[#allocation13 + $0x50] ss:$8 sps:$4 sm:$0xff]   ;;  %v3694_v19 = vld [vmem:[#allocation13 + $0x64] ss:$8 sps:$4 sm:$0xff]  }
 0x10a   :  { %3566 = vmatprep.subr.bf16.mxu0 %v4217_v1  ;;  %v3696_v20 = vld [vmem:[#allocation13 + $0x60] ss:$8 sps:$4 sm:$0xff]   ;;  %v3697_v21 = vld [vmem:[#allocation13 + $0x74] ss:$8 sps:$4 sm:$0xff]   ;;  %v3699_v22 = vld [vmem:[#allocation13 + $0x70] ss:$8 sps:$4 sm:$0xff]  }
 0x10b   :  { %493 = vmatpush1.bf16.msra.mxu1 %v3681_v10  ;;  %v373_v47 = vld [vmem:[#allocation10] sm:$0x1]  ;;  %v3386_v52 = vld [vmem:[#allocation11] ss:$0 sm:$0xff]  ;;  %v3702_v57 = vld [vmem:[#allocation17 + $0x4] ss:$16 sps:$4 sm:$0xff]  }
 0x10c   :  { %494 = vmatprep.subr.bf16.mxu1 %v3682_v11  ;;  %v3700_v58 = vld [vmem:[#allocation17] ss:$16 sps:$4 sm:$0xff]   ;;  %v3705_v59 = vld [vmem:[#allocation17 + $0x24] ss:$16 sps:$4 sm:$0xff]  }
 0x10d   :  { %3567 = vmatpush3.bf16.msra.mxu0 %v3674_v3  ;;  %v3703_v60 = vld [vmem:[#allocation17 + $0x20] ss:$16 sps:$4 sm:$0xff]   ;;  %v3708_v61 = vld [vmem:[#allocation17 + $0x44] ss:$16 sps:$4 sm:$0xff]  }
 0x10e   :  { %3568 = vmatprep.subr.bf16.mxu0 %v4217_v1  ;;  %v3706_v62 = vld [vmem:[#allocation17 + $0x40] ss:$16 sps:$4 sm:$0xff]   ;;  %v3711_v63 = vld [vmem:[#allocation17 + $0x64] ss:$16 sps:$4 sm:$0xff]  }
 0x10f   :  { %495 = vmatpush1.bf16.msra.mxu1 %v3684_v12  ;;  %v3709_v0 = vld [vmem:[#allocation17 + $0x60] ss:$16 sps:$4 sm:$0xff]   ;;  %v3714_v1 = vld [vmem:[#allocation17 + $0x84] ss:$16 sps:$4 sm:$0xff]  }
 0x110   :  { %496 = vmatprep.subr.bf16.mxu1 %v3685_v13  ;;  %v3712_v2 = vld [vmem:[#allocation17 + $0x80] ss:$16 sps:$4 sm:$0xff]   ;;  %v3717_v3 = vld [vmem:[#allocation17 + $0xa4] ss:$16 sps:$4 sm:$0xff]  }
 0x111   :  { %3569 = vmatpush3.bf16.msra.mxu0 %v3675_v4  ;;  %v3715_v4 = vld [vmem:[#allocation17 + $0xa0] ss:$16 sps:$4 sm:$0xff]   ;;  %v3720_v5 = vld [vmem:[#allocation17 + $0xc4] ss:$16 sps:$4 sm:$0xff]  }
 0x112   :  { %v3723_v7 = vld [vmem:[#allocation17 + $0xe4] ss:$16 sps:$4 sm:$0xff]   ;;  %v3721_v8 = vld [vmem:[#allocation17 + $0xe0] ss:$16 sps:$4 sm:$0xff]  }
 0x113   :  { %497 = vmatpush1.bf16.msra.mxu1 %v3687_v14  ;;  %v3726_v9 = vld [vmem:[#allocation17 + $0x104] ss:$16 sps:$4 sm:$0xff]   ;;  %v3724_v10 = vld [vmem:[#allocation17 + $0x100] ss:$16 sps:$4 sm:$0xff]  }
 0x114   :  { %3571 = vmatmul.mubr.msk.bf16.vlgmr.msra.gmra.mrb[0].mxu0 %vm312_vm1, %v287_v6  ;;  %498 = vmatprep.subr.bf16.mxu1 %v3688_v15  ;;  %v3718_v6 = vld [vmem:[#allocation17 + $0xc0] ss:$16 sps:$4 sm:$0xff]   ;;  %v3729_v11 = vld [vmem:[#allocation17 + $0x124] ss:$16 sps:$4 sm:$0xff]  }
 0x115   :  { %v3727_v12 = vld [vmem:[#allocation17 + $0x120] ss:$16 sps:$4 sm:$0xff]   ;;  %v3732_v13 = vld [vmem:[#allocation17 + $0x144] ss:$16 sps:$4 sm:$0xff]  }
 0x116   :  { %v3730_v14 = vld [vmem:[#allocation17 + $0x140] ss:$16 sps:$4 sm:$0xff]   ;;  %v3735_v15 = vld [vmem:[#allocation17 + $0x164] ss:$16 sps:$4 sm:$0xff]  }
 0x117   :  { %499 = vmatpush1.bf16.msra.mxu1 %v3690_v16  ;;  %v3733_v16 = vld [vmem:[#allocation17 + $0x160] ss:$16 sps:$4 sm:$0xff]   ;;  %v3747_v23 = vld [vmem:[#allocation17 + $0x1e4] ss:$16 sps:$4 sm:$0xff]  }
 0x118   :  { %500 = vmatprep.subr.bf16.mxu1 %v3691_v17  ;;  %v3738_v17 = vld [vmem:[#allocation17 + $0x184] ss:$16 sps:$4 sm:$0xff]  }
 0x11b   :  { %501 = vmatpush1.bf16.msra.mxu1 %v3693_v18  ;;  %v3736_v18 = vld [vmem:[#allocation17 + $0x180] ss:$16 sps:$4 sm:$0xff]  }
 0x11c   :  { %502 = vmatprep.subr.bf16.mxu1 %v3694_v19  ;;  %v3741_v19 = vld [vmem:[#allocation17 + $0x1a4] ss:$16 sps:$4 sm:$0xff]  }
 0x11f   :  { %503 = vmatpush1.bf16.msra.mxu1 %v3696_v20  ;;  %v3739_v20 = vld [vmem:[#allocation17 + $0x1a0] ss:$16 sps:$4 sm:$0xff]  }
 0x120   :  { %504 = vmatprep.subr.bf16.mxu1 %v3697_v21  ;;  %v3744_v21 = vld [vmem:[#allocation17 + $0x1c4] ss:$16 sps:$4 sm:$0xff]  }
 0x123   :  { %505 = vmatpush1.bf16.msra.mxu1 %v3699_v22  ;;  %v3742_v22 = vld [vmem:[#allocation17 + $0x1c0] ss:$16 sps:$4 sm:$0xff]  }
 0x124   :  { %1002 = vmatprep.subr.bf16.mxu1 %v3702_v57 }
 0x1e7   :  { %v350_v24 = vpop.f32.mrb[0].mxu0 }
 0x1e8   :  { %v356_v25 = vrot.slane %v350_v24, 4  ;;  %v3572_v26 = vpop.f32.mrb[1].mxu0 }
 0x1e9   :  { %v353_v27 = vpop.f32.mrb[2].mxu0 }
 0x1ea   :  { %v357_v28 = vadd.f32 %v356_v25, %v350_v24  ;;  %v3573_v29 = vpop.f32.mrb[3].mxu0  ;;  %v3750_v25 = vld [vmem:[#allocation17 + $0xc] ss:$16 sps:$4 sm:$0xff]  }
 0x1ec   :  { %v358_v30 = vrot.slane %v357_v28, 2 }
 0x1ee   :  { %v359_v31 = vadd.f32 %v358_v30, %v357_v28 }
 0x1f0   :  { %v360_v32 = vrot.slane %v359_v31, 1 }
 0x1f2   :  { %v361_v33 = vadd.f32 %v360_v32, %v359_v31 }
 0x1f4   :  { %v363_v34 = vmul.f32 0.125, %v361_v33 }
 0x1f6   :  { %v364_v35 = vsub.f32 %v350_v24, %v363_v34  ;;  %v3745_v24 = vld [vmem:[#allocation17 + $0x1e0] ss:$16 sps:$4 sm:$0xff]  }
 0x1f8   :  { %v365_v36 = vmul.f32 %v364_v35, %v364_v35 }
 0x1fa   :  { %v366_v37 = vrot.slane %v365_v36, 4 }
 0x1fc   :  { %v367_v38 = vadd.f32 %v366_v37, %v365_v36 }
 0x1fe   :  { %v368_v39 = vrot.slane %v367_v38, 2 }
 0x200   :  { %v369_v40 = vadd.f32 %v368_v39, %v367_v38 }
 0x202   :  { %v370_v41 = vrot.slane %v369_v40, 1 }
 0x204   :  { %v371_v42 = vadd.f32 %v370_v41, %v369_v40 }
 0x206   :  { %v372_v43 = vmul.f32 0.125, %v371_v42 }
 0x208   :  { %v374_v44 = vadd.f32 1e-05, %v372_v43 }
 0x20a   :  { %3796 = vrsqrt.f32 %v374_v44 }
 0x214   :  { %v3797_v49 = vpop.eup %3796 }
 0x215   :  { %v376_v50 = vmul.f32 %v3797_v49, %v373_v47 }
 0x217   :  { %v381_v51 = vrot.slane %v376_v50, %v4471_v48 }
 0x219   :  { %v383_v53 = vmul.f32 %v381_v51, %v364_v35 }
 0x21b   :  { %v391_v54 = vadd.f32 %v3386_v52, %v383_v53 }
 0x21d   :  { %v392_v55 = vmax.f32 %v391_v54, 0.0 }
 0x21f   :  { %v409_v56 = vpack.c.bf16 %v392_v55, %v392_v55 }
 0x221   :  { %523 = vmatmul.mubr.bf16.vlgmr.msra.gmra.mrb[0].mxu1 %v409_v56 }
 0x222   :  { %1003 = vmatpush1.bf16.msra.mxu1 %v3700_v58 }
 0x223   :  { %1004 = vmatprep.subr.bf16.mxu1 %v3705_v59 }
 0x226   :  { %1005 = vmatpush1.bf16.msra.mxu1 %v3703_v60 }
 0x227   :  { %1006 = vmatprep.subr.bf16.mxu1 %v3708_v61 }
 0x22a   :  { %1007 = vmatpush1.bf16.msra.mxu1 %v3706_v62 }
 0x22b   :  { %1008 = vmatprep.subr.bf16.mxu1 %v3711_v63 }
 0x22e   :  { %1009 = vmatpush1.bf16.msra.mxu1 %v3709_v0 }
 0x22f   :  { %1010 = vmatprep.subr.bf16.mxu1 %v3714_v1 }
 0x232   :  { %1011 = vmatpush1.bf16.msra.mxu1 %v3712_v2  ;;  %v4220_v2 = vmov 1966171168  }
 0x233   :  { %1012 = vmatprep.subr.bf16.mxu1 %v3717_v3  ;;  %v572_v3 = vunpack.c.l.s4 %v4220_v2 }
 0x236   :  { %1013 = vmatpush1.bf16.msra.mxu1 %v3715_v4  ;;  %v573_v4 = vunpack.c.0.s8 %v572_v3 }
 0x237   :  { %1014 = vmatprep.subr.bf16.mxu1 %v3720_v5 }
 0x23a   :  { %1015 = vmatpush1.bf16.msra.mxu1 %v3718_v6  ;;  %v4475_v6 = vsub.s32 %v573_v4, %v4468_v46 }
 0x23b   :  { %1016 = vmatprep.subr.bf16.mxu1 %v3723_v7 }
 0x23e   :  { %1017 = vmatpush1.bf16.msra.mxu1 %v3721_v8 }
 0x23f   :  { %1018 = vmatprep.subr.bf16.mxu1 %v3726_v9 }
 0x242   :  { %1019 = vmatpush1.bf16.msra.mxu1 %v3724_v10  ;;  %v563_v10 = vld [vmem:[#allocation14] sm:$0x3] }
 0x243   :  { %1020 = vmatprep.subr.bf16.mxu1 %v3729_v11 }
 0x246   :  { %1021 = vmatpush1.bf16.msra.mxu1 %v3727_v12  ;;  %v4480_v12 = vsub.s32 1, %v4468_v46 }
 0x247   :  { %1022 = vmatprep.subr.bf16.mxu1 %v3732_v13  ;;  %v600_v13 = vld [vmem:[#allocation16] sm:$0x3] }
 0x24a   :  { %1023 = vmatpush1.bf16.msra.mxu1 %v3730_v14 }
 0x24b   :  { %1024 = vmatprep.subr.bf16.mxu1 %v3735_v15 }
 0x24e   :  { %1025 = vmatpush1.bf16.msra.mxu1 %v3733_v16 }
 0x24f   :  { %1026 = vmatprep.subr.bf16.mxu1 %v3738_v17  ;;  %v605_v17 = vrot.slane %v600_v13, %v4471_v48 }
 0x252   :  { %1027 = vmatpush1.bf16.msra.mxu1 %v3736_v18  ;;  %v609_v18 = vrot.slane %v600_v13, %v4480_v12 }
 0x253   :  { %1028 = vmatprep.subr.bf16.mxu1 %v3741_v19 }
 0x256   :  { %1029 = vmatpush1.bf16.msra.mxu1 %v3739_v20 }
 0x257   :  { %1030 = vmatprep.subr.bf16.mxu1 %v3744_v21 }
 0x25a   :  { %1031 = vmatpush1.bf16.msra.mxu1 %v3742_v22 }
 0x25b   :  { %1032 = vmatprep.subr.bf16.mxu1 %v3747_v23 }
 0x25e   :  { %1033 = vmatpush1.bf16.msra.mxu1 %v3745_v24 }
 0x25f   :  { %1043 = vmatprep.subr.bf16.mxu1 %v3750_v25 }
 0x2f4   :  { %v524_v26 = vpop.f32.mrb[0].mxu1 }
 0x2f5   :  { %v531_v27 = vrot.slane %v524_v26, 4  ;;  %v526_v28 = vpop.f32.mrb[1].mxu1 }
 0x2f6   :  { %v537_v29 = vrot.slane %v526_v28, 4  ;;  %v528_v30 = vpop.f32.mrb[2].mxu1 }
 0x2f7   :  { %v532_v31 = vadd.f32 %v531_v27, %v524_v26  ;;  %v529_v32 = vpop.f32.mrb[3].mxu1  ;;  %v3756_v30 = vld [vmem:[#allocation17 + $0x4c] ss:$16 sps:$4 sm:$0xff]  }
 0x2f8   :  { %v538_v33 = vadd.f32 %v537_v29, %v526_v28  ;;  %v3751_v29 = vld [vmem:[#allocation17 + $0x28] ss:$16 sps:$4 sm:$0xff]   ;;  %v3759_v32 = vld [vmem:[#allocation17 + $0x6c] ss:$16 sps:$4 sm:$0xff]  }
 0x2f9   :  { %v533_v34 = vrot.slane %v532_v31, 2 }
 0x2fa   :  { %v539_v35 = vrot.slane %v538_v33, 2 }
 0x2fb   :  { %v534_v36 = vadd.f32 %v533_v34, %v532_v31  ;;  %v3754_v31 = vld [vmem:[#allocation17 + $0x48] ss:$16 sps:$4 sm:$0xff]   ;;  %v3762_v34 = vld [vmem:[#allocation17 + $0x8c] ss:$16 sps:$4 sm:$0xff]  }
 0x2fc   :  { %v540_v37 = vadd.f32 %v539_v35, %v538_v33  ;;  %v3757_v33 = vld [vmem:[#allocation17 + $0x68] ss:$16 sps:$4 sm:$0xff]  }
 0x2fd   :  { %v535_v38 = vrot.slane %v534_v36, 1  ;;  %v3760_v35 = vld [vmem:[#allocation17 + $0x88] ss:$16 sps:$4 sm:$0xff]  }
 0x2fe   :  { %v541_v39 = vrot.slane %v540_v37, 1 }
 0x2ff   :  { %v536_v40 = vadd.f32 %v535_v38, %v534_v36  ;;  %v3765_v36 = vld [vmem:[#allocation17 + $0xac] ss:$16 sps:$4 sm:$0xff]  }
 0x300   :  { %v542_v41 = vadd.f32 %v541_v39, %v540_v37  ;;  %v3763_v37 = vld [vmem:[#allocation17 + $0xa8] ss:$16 sps:$4 sm:$0xff]   ;;  %v3768_v38 = vld [vmem:[#allocation17 + $0xcc] ss:$16 sps:$4 sm:$0xff]  }
 0x301   :  { %v543_v42 = vmul.f32 0.125, %v536_v40  ;;  %v3766_v39 = vld [vmem:[#allocation17 + $0xc8] ss:$16 sps:$4 sm:$0xff]   ;;  %v3771_v40 = vld [vmem:[#allocation17 + $0xec] ss:$16 sps:$4 sm:$0xff]  }
 0x302   :  { %v544_v43 = vmul.f32 0.125, %v542_v41  ;;  %v3769_v41 = vld [vmem:[#allocation17 + $0xe8] ss:$16 sps:$4 sm:$0xff]  }
 0x303   :  { %v545_v44 = vsub.f32 %v524_v26, %v543_v42  ;;  %v3748_v26 = vld [vmem:[#allocation17 + $0x8] ss:$16 sps:$4 sm:$0xff]   ;;  %v3774_v42 = vld [vmem:[#allocation17 + $0x10c] ss:$16 sps:$4 sm:$0xff]  }
 0x304   :  { %v546_v45 = vsub.f32 %v526_v28, %v544_v43  ;;  %v3753_v28 = vld [vmem:[#allocation17 + $0x2c] ss:$16 sps:$4 sm:$0xff]   ;;  %v3772_v43 = vld [vmem:[#allocation17 + $0x108] ss:$16 sps:$4 sm:$0xff]  }
 0x305   :  { %v547_v47 = vmul.f32 %v545_v44, %v545_v44 }
 0x306   :  { %v548_v49 = vmul.f32 %v546_v45, %v546_v45 }
 0x307   :  { %v549_v50 = vrot.slane %v547_v47, 4 }
 0x308   :  { %v555_v51 = vrot.slane %v548_v49, 4 }
 0x309   :  { %v550_v52 = vadd.f32 %v549_v50, %v547_v47  ;;  %v3780_v47 = vld [vmem:[#allocation17 + $0x14c] ss:$16 sps:$4 sm:$0xff]  }
 0x30a   :  { %v556_v53 = vadd.f32 %v555_v51, %v548_v49  ;;  %v3778_v49 = vld [vmem:[#allocation17 + $0x148] ss:$16 sps:$4 sm:$0xff]   ;;  %v3783_v50 = vld [vmem:[#allocation17 + $0x16c] ss:$16 sps:$4 sm:$0xff]  }
 0x30b   :  { %v551_v54 = vrot.slane %v550_v52, 2  ;;  %v3781_v51 = vld [vmem:[#allocation17 + $0x168] ss:$16 sps:$4 sm:$0xff]  }
 0x30c   :  { %v557_v55 = vrot.slane %v556_v53, 2 }
 0x30d   :  { %v552_v56 = vadd.f32 %v551_v54, %v550_v52  ;;  %v3786_v52 = vld [vmem:[#allocation17 + $0x18c] ss:$16 sps:$4 sm:$0xff]  }
 0x30e   :  { %v558_v57 = vadd.f32 %v557_v55, %v556_v53  ;;  %v3784_v53 = vld [vmem:[#allocation17 + $0x188] ss:$16 sps:$4 sm:$0xff]   ;;  %v3789_v54 = vld [vmem:[#allocation17 + $0x1ac] ss:$16 sps:$4 sm:$0xff]  }
 0x30f   :  { %v553_v58 = vrot.slane %v552_v56, 1  ;;  %v3787_v55 = vld [vmem:[#allocation17 + $0x1a8] ss:$16 sps:$4 sm:$0xff]  }
 0x310   :  { %v559_v59 = vrot.slane %v558_v57, 1 }
 0x311   :  { %v554_v60 = vadd.f32 %v553_v58, %v552_v56  ;;  %v3792_v56 = vld [vmem:[#allocation17 + $0x1cc] ss:$16 sps:$4 sm:$0xff]  }
 0x312   :  { %v560_v61 = vadd.f32 %v559_v59, %v558_v57  ;;  %v3790_v57 = vld [vmem:[#allocation17 + $0x1c8] ss:$16 sps:$4 sm:$0xff]   ;;  %v3795_v58 = vld [vmem:[#allocation17 + $0x1ec] ss:$16 sps:$4 sm:$0xff]  }
 0x313   :  { %v561_v62 = vmul.f32 0.125, %v554_v60  ;;  %v3793_v59 = vld [vmem:[#allocation17 + $0x1e8] ss:$16 sps:$4 sm:$0xff]  }
 0x314   :  { %v562_v63 = vmul.f32 0.125, %v560_v61 }
 0x315   :  { %v564_v0 = vadd.f32 1e-05, %v561_v62 }
 0x316   :  { %v565_v1 = vadd.f32 1e-05, %v562_v63 }
 0x317   :  { %3798 = vrsqrt.f32 %v564_v0 }
 0x318   :  { %3800 = vrsqrt.f32 %v565_v1 }
 0x321   :  { %v3799_v5 = vpop.eup %3798 }
 0x322   :  { %v3801_v7 = vpop.eup %3800 }
 0x323   :  { %v570_v8 = vcombine.low %v3799_v5, %v3801_v7 }
 0x325   :  { %v577_v9 = vrot.slane %v570_v8, %v4475_v6 }
 0x327   :  { %v584_v11 = vrot.slane %v577_v9, %v4475_v6 }
 0x329   :  { %v586_v14 = vmul.f32 %v584_v11, %v563_v10 }
 0x32b   :  { %v591_v15 = vrot.slane %v586_v14, %v4471_v48  ;;  %v595_v16 = vrot.slane %v586_v14, %v4480_v12 }
 0x32d   :  { %v599_v19 = vmul.f32 %v595_v16, %v546_v45  ;;  %v598_v20 = vmul.f32 %v591_v15, %v545_v44  ;;  %v3777_v44 = vld [vmem:[#allocation17 + $0x12c] ss:$16 sps:$4 sm:$0xff]   ;;  %v3775_v45 = vld [vmem:[#allocation17 + $0x128] ss:$16 sps:$4 sm:$0xff]  }
 0x32f   :  { %v613_v21 = vadd.f32 %v609_v18, %v599_v19  ;;  %v612_v22 = vadd.f32 %v605_v17, %v598_v20 }
 0x331   :  { %v615_v23 = vmax.f32 %v613_v21, 0.0  ;;  %v614_v24 = vmax.f32 %v612_v22, 0.0 }
 0x333   :  { %v681_v25 = vpack.c.bf16 %v615_v23, %v615_v23  ;;  %v4486_v27 = vpack.c.bf16 %v614_v24, %v614_v24 }
 0x335   :  { %1034 = vmatprep.mubr.bf16.mxu1 %v681_v25 }
 0x336   :  { %1035 = vmatmul.mubr.bf16.vlgmr.msra.gmra.mrb[4].mxu1 %v4486_v27 }
 0x337   :  { %1044 = vmatpush1.bf16.msra.mxu1 %v3748_v26  ;;  %1075 = vmatprep.mubr.bf16.mxu1 %v681_v25 }
 0x338   :  { %1045 = vmatprep.subr.bf16.mxu1 %v3753_v28 }
 0x33b   :  { %1046 = vmatpush1.bf16.msra.mxu1 %v3751_v29 }
 0x33c   :  { %1047 = vmatprep.subr.bf16.mxu1 %v3756_v30 }
 0x33f   :  { %1048 = vmatpush1.bf16.msra.mxu1 %v3754_v31 }
 0x340   :  { %1049 = vmatprep.subr.bf16.mxu1 %v3759_v32 }
 0x343   :  { %1050 = vmatpush1.bf16.msra.mxu1 %v3757_v33 }
 0x344   :  { %1051 = vmatprep.subr.bf16.mxu1 %v3762_v34 }
 0x347   :  { %1052 = vmatpush1.bf16.msra.mxu1 %v3760_v35 }
 0x348   :  { %1053 = vmatprep.subr.bf16.mxu1 %v3765_v36 }
 0x34b   :  { %1054 = vmatpush1.bf16.msra.mxu1 %v3763_v37 }
 0x34c   :  { %1055 = vmatprep.subr.bf16.mxu1 %v3768_v38 }
 0x34f   :  { %1056 = vmatpush1.bf16.msra.mxu1 %v3766_v39 }
 0x350   :  { %1057 = vmatprep.subr.bf16.mxu1 %v3771_v40 }
 0x353   :  { %1058 = vmatpush1.bf16.msra.mxu1 %v3769_v41 }
 0x354   :  { %1059 = vmatprep.subr.bf16.mxu1 %v3774_v42 }
 0x357   :  { %1060 = vmatpush1.bf16.msra.mxu1 %v3772_v43 }
 0x358   :  { %1061 = vmatprep.subr.bf16.mxu1 %v3777_v44 }
 0x35b   :  { %1062 = vmatpush1.bf16.msra.mxu1 %v3775_v45 }
 0x35c   :  { %1063 = vmatprep.subr.bf16.mxu1 %v3780_v47 }
 0x35f   :  { %1064 = vmatpush1.bf16.msra.mxu1 %v3778_v49 }
 0x360   :  { %1065 = vmatprep.subr.bf16.mxu1 %v3783_v50 }
 0x363   :  { %1066 = vmatpush1.bf16.msra.mxu1 %v3781_v51 }
 0x364   :  { %1067 = vmatprep.subr.bf16.mxu1 %v3786_v52 }
 0x367   :  { %1068 = vmatpush1.bf16.msra.mxu1 %v3784_v53 }
 0x368   :  { %1069 = vmatprep.subr.bf16.mxu1 %v3789_v54 }
 0x36b   :  { %1070 = vmatpush1.bf16.msra.mxu1 %v3787_v55 }
 0x36c   :  { %1071 = vmatprep.subr.bf16.mxu1 %v3792_v56 }
 0x36f   :  { %1072 = vmatpush1.bf16.msra.mxu1 %v3790_v57 }
 0x370   :  { %1073 = vmatprep.subr.bf16.mxu1 %v3795_v58 }
 0x373   :  { %1074 = vmatpush1.bf16.msra.mxu1 %v3793_v59 }
 0x376   :  { %1076 = vmatmul.mubr.bf16.vlgmr.msra.gmra.mrb[8].mxu1 %v4486_v27 }
 0x409   :  { %v1036_v60 = vpop.f32.mrb[4].mxu1 }
 0x40a   :  { %v1084_v61 = vrot.slane %v1036_v60, 4  ;;  %v1038_v62 = vpop.f32.mrb[5].mxu1 }
 0x40b   :  { %v1090_v63 = vrot.slane %v1038_v62, 4  ;;  %v1040_v0 = vpop.f32.mrb[6].mxu1 }
 0x40c   :  { %v1085_v1 = vadd.f32 %v1084_v61, %v1036_v60  ;;  %v1041_v2 = vpop.f32.mrb[7].mxu1 }
 0x40d   :  { %v1091_v3 = vadd.f32 %v1090_v63, %v1038_v62 }
 0x40e   :  { %v1086_v4 = vrot.slane %v1085_v1, 2 }
 0x40f   :  { %v1092_v5 = vrot.slane %v1091_v3, 2 }
 0x410   :  { %v1087_v7 = vadd.f32 %v1086_v4, %v1085_v1 }
 0x411   :  { %v1093_v8 = vadd.f32 %v1092_v5, %v1091_v3 }
 0x412   :  { %v1088_v9 = vrot.slane %v1087_v7, 1 }
 0x413   :  { %v1094_v10 = vrot.slane %v1093_v8, 1 }
 0x414   :  { %v1089_v11 = vadd.f32 %v1088_v9, %v1087_v7 }
 0x415   :  { %v1095_v13 = vadd.f32 %v1094_v10, %v1093_v8 }
 0x416   :  { %v1108_v14 = vmul.f32 0.125, %v1089_v11 }
 0x417   :  { %v1109_v15 = vmul.f32 0.125, %v1095_v13 }
 0x418   :  { %v4490_v16 = vsub.f32 %v1036_v60, %v1108_v14 }
 0x419   :  { %v4492_v17 = vsub.f32 %v1038_v62, %v1109_v15 }
 0x41a   :  { %v1116_v18 = vmul.f32 %v4490_v16, %v4490_v16 }
 0x41b   :  { %v1117_v19 = vmul.f32 %v4492_v17, %v4492_v17 }
 0x41c   :  { %v1120_v20 = vrot.slane %v1116_v18, 4 }
 0x41d   :  { %v1126_v21 = vrot.slane %v1117_v19, 4 }
 0x41e   :  { %v1121_v22 = vadd.f32 %v1120_v20, %v1116_v18 }
 0x41f   :  { %v1127_v23 = vadd.f32 %v1126_v21, %v1117_v19 }
 0x420   :  { %v1122_v24 = vrot.slane %v1121_v22, 2 }
 0x421   :  { %v1128_v25 = vrot.slane %v1127_v23, 2 }
 0x422   :  { %v1123_v26 = vadd.f32 %v1122_v24, %v1121_v22 }
 0x423   :  { %v1129_v27 = vadd.f32 %v1128_v25, %v1127_v23  ;;  %v1148_v25 = vld [vmem:[#allocation19] sm:$0xf] }
 0x424   :  { %v1124_v28 = vrot.slane %v1123_v26, 1 }
 0x425   :  { %v1130_v29 = vrot.slane %v1129_v27, 1 }
 0x426   :  { %v1125_v30 = vadd.f32 %v1124_v28, %v1123_v26  ;;  %v4505_v28 = vsub.s32 3, %v4468_v46 }
 0x427   :  { %v1131_v31 = vadd.f32 %v1130_v29, %v1129_v27  ;;  %v4502_v27 = vsub.s32 2, %v4468_v46  ;;  %v1212_v29 = vld [vmem:[#allocation20] sm:$0xf] }
 0x428   :  { %v1144_v32 = vmul.f32 0.125, %v1125_v30 }
 0x429   :  { %v1145_v33 = vmul.f32 0.125, %v1131_v31  ;;  %v1217_v31 = vrot.slane %v1212_v29, %v4471_v48 }
 0x42a   :  { %v1149_v34 = vadd.f32 1e-05, %v1144_v32  ;;  %v1221_v32 = vrot.slane %v1212_v29, %v4480_v12 }
 0x42b   :  { %v1150_v35 = vadd.f32 1e-05, %v1145_v33  ;;  %v1225_v33 = vrot.slane %v1212_v29, %v4502_v27 }
 0x42c   :  { %3802 = vrsqrt.f32 %v1149_v34  ;;  %v1229_v34 = vrot.slane %v1212_v29, %v4505_v28 }
 0x42d   :  { %3804 = vrsqrt.f32 %v1150_v35 }
 0x436   :  { %v3803_v36 = vpop.eup %3802 }
 0x437   :  { %v3805_v37 = vpop.eup %3804 }
 0x438   :  { %v1161_v38 = vcombine.low %v3803_v36, %v3805_v37 }
 0x43a   :  { %v1169_v22 = vrot.slane %v1161_v38, %v4475_v6 }
 0x449   :  { %v1077_v39 = vpop.f32.mrb[8].mxu1 }
 0x44a   :  { %v1096_v40 = vrot.slane %v1077_v39, 4  ;;  %v1079_v41 = vpop.f32.mrb[9].mxu1 }
 0x44b   :  { %v1102_v42 = vrot.slane %v1079_v41, 4  ;;  %v1081_v43 = vpop.f32.mrb[10].mxu1 }
 0x44c   :  { %v1097_v44 = vadd.f32 %v1096_v40, %v1077_v39  ;;  %v1082_v45 = vpop.f32.mrb[11].mxu1 }
 0x44d   :  { %v1103_v47 = vadd.f32 %v1102_v42, %v1079_v41 }
 0x44e   :  { %v1098_v49 = vrot.slane %v1097_v44, 2 }
 0x44f   :  { %v1104_v50 = vrot.slane %v1103_v47, 2 }
 0x450   :  { %v1099_v51 = vadd.f32 %v1098_v49, %v1097_v44 }
 0x451   :  { %v1105_v52 = vadd.f32 %v1104_v50, %v1103_v47 }
 0x452   :  { %v1100_v53 = vrot.slane %v1099_v51, 1 }
 0x453   :  { %v1106_v54 = vrot.slane %v1105_v52, 1 }
 0x454   :  { %v1101_v55 = vadd.f32 %v1100_v53, %v1099_v51 }
 0x455   :  { %v1107_v56 = vadd.f32 %v1106_v54, %v1105_v52 }
 0x456   :  { %v1110_v57 = vmul.f32 0.125, %v1101_v55 }
 0x457   :  { %v1111_v58 = vmul.f32 0.125, %v1107_v56 }
 0x458   :  { %v1114_v59 = vsub.f32 %v1077_v39, %v1110_v57 }
 0x459   :  { %v1115_v60 = vsub.f32 %v1079_v41, %v1111_v58 }
 0x45a   :  { %v1118_v61 = vmul.f32 %v1114_v59, %v1114_v59 }
 0x45b   :  { %v1119_v62 = vmul.f32 %v1115_v60, %v1115_v60 }
 0x45c   :  { %v1132_v63 = vrot.slane %v1118_v61, 4 }
 0x45d   :  { %v1138_v0 = vrot.slane %v1119_v62, 4 }
 0x45e   :  { %v1133_v1 = vadd.f32 %v1132_v63, %v1118_v61 }
 0x45f   :  { %v1139_v2 = vadd.f32 %v1138_v0, %v1119_v62 }
 0x460   :  { %v1134_v3 = vrot.slane %v1133_v1, 2 }
 0x461   :  { %v1140_v4 = vrot.slane %v1139_v2, 2 }
 0x462   :  { %v1135_v5 = vadd.f32 %v1134_v3, %v1133_v1 }
 0x463   :  { %v1141_v7 = vadd.f32 %v1140_v4, %v1139_v2 }
 0x464   :  { %v1136_v8 = vrot.slane %v1135_v5, 1 }
 0x465   :  { %v1142_v9 = vrot.slane %v1141_v7, 1 }
 0x466   :  { %v1137_v10 = vadd.f32 %v1136_v8, %v1135_v5 }
 0x467   :  { %v1143_v11 = vadd.f32 %v1142_v9, %v1141_v7 }
 0x468   :  { %v1146_v13 = vmul.f32 0.125, %v1137_v10 }
 0x469   :  { %v1147_v14 = vmul.f32 0.125, %v1143_v11 }
 0x46a   :  { %v1151_v15 = vadd.f32 1e-05, %v1146_v13 }
 0x46b   :  { %v1152_v18 = vadd.f32 1e-05, %v1147_v14 }
 0x46c   :  { %3806 = vrsqrt.f32 %v1151_v15 }
 0x46d   :  { %3808 = vrsqrt.f32 %v1152_v18 }
 0x476   :  { %v3807_v19 = vpop.eup %3806 }
 0x477   :  { %v3809_v20 = vpop.eup %3808 }
 0x478   :  { %v1162_v21 = vcombine.low %v3807_v19, %v3809_v20 }
 0x47a   :  { %v1176_v23 = vrot.slane %v1162_v21, %v4475_v6 }
 0x47c   :  { %v1177_v24 = vcombine.low %v1169_v22, %v1176_v23 }
 0x47e   :  { %v1184_v26 = vrot.slane %v1177_v24, %v4475_v6 }
 0x480   :  { %v1186_v30 = vmul.f32 %v1184_v26, %v1148_v25 }
 0x482   :  { %v1191_v35 = vrot.slane %v1186_v30, %v4471_v48  ;;  %v1195_v36 = vrot.slane %v1186_v30, %v4480_v12  ;;  %v1199_v37 = vrot.slane %v1186_v30, %v4502_v27  ;;  %v1203_v38 = vrot.slane %v1186_v30, %v4505_v28 }
 0x484   :  { %v1208_v39 = vmul.f32 %v1191_v35, %v4490_v16  ;;  %v1209_v40 = vmul.f32 %v1195_v36, %v4492_v17  ;;  %v1210_v41 = vmul.f32 %v1199_v37, %v1114_v59  ;;  %v1211_v42 = vmul.f32 %v1203_v38, %v1115_v60 }
 0x486   :  { %v4517_v43 = vadd.f32 %v1217_v31, %v1208_v39  ;;  %v1235_v44 = vadd.f32 %v1221_v32, %v1209_v40  ;;  %v4519_v45 = vadd.f32 %v1225_v33, %v1210_v41  ;;  %v4521_v47 = vadd.f32 %v1229_v34, %v1211_v42 }
 0x488   :  { %v1238_v49 = vmax.f32 %v4517_v43, 0.0  ;;  %v1239_v50 = vmax.f32 %v1235_v44, 0.0  ;;  %v1240_v51 = vmax.f32 %v4519_v45, 0.0  ;;  %v1241_v52 = vmax.f32 %v4521_v47, 0.0 }
 0x489   :  { %4176 = dma.done.wait [#allocation4], 32768 }
 0x48a   :  { %4177 = vsyncadd [#allocation4], 4294934528  ;;  %v4526_v16 = vpack.c.bf16 %v1239_v50, %v1239_v50  ;;  %v1250_v17 = vld [vmem:[#allocation2 + $0x8] sm:$0xff]  ;;  %v1252_v53 = vld [vmem:[#allocation2 + $0x18] sm:$0xff] }
 0x48b   :  { %v1249_v54 = vld [vmem:[#allocation2] sm:$0xff]  ;;  %1509 = vmatprep.subr.bf16.mxu0 %v1250_v17  ;;  %1591 = vmatprep.subr.bf16.mxu1 %v1252_v53  ;;  %v1251_v55 = vld [vmem:[#allocation2 + $0x10] sm:$0xff]  ;;  %v1258_v56 = vld [vmem:[#allocation2 + $0x48] sm:$0xff] }
 0x48c   :  { %1541 = vmatprep.mubr.bf16.mxu0 %v4526_v16  ;;  %1623 = vmatprep.mubr.bf16.mxu1 %v4526_v16  ;;  %v1260_v57 = vld [vmem:[#allocation2 + $0x58] sm:$0xff]  ;;  %v1257_v58 = vld [vmem:[#allocation2 + $0x40] sm:$0xff]  ;;  %v1259_v59 = vld [vmem:[#allocation2 + $0x50] sm:$0xff] }
 0x48d   :  { %1510 = vmatpush1.bf16.msra.mxu0 %v1249_v54  ;;  %1592 = vmatpush1.bf16.msra.mxu1 %v1251_v55  ;;  %v1266_v60 = vld [vmem:[#allocation2 + $0x88] sm:$0xff]  ;;  %v1268_v61 = vld [vmem:[#allocation2 + $0x98] sm:$0xff]  ;;  %v1265_v62 = vld [vmem:[#allocation2 + $0x80] sm:$0xff] }
 0x48e   :  { %1511 = vmatprep.subr.bf16.mxu0 %v1258_v56  ;;  %1593 = vmatprep.subr.bf16.mxu1 %v1260_v57  ;;  %v1267_v63 = vld [vmem:[#allocation2 + $0x90] sm:$0xff]  ;;  %v1274_v0 = vld [vmem:[#allocation2 + $0xc8] sm:$0xff]  ;;  %v1276_v1 = vld [vmem:[#allocation2 + $0xd8] sm:$0xff] }
 0x48f   :  { %v1273_v2 = vld [vmem:[#allocation2 + $0xc0] sm:$0xff]  ;;  %v1275_v3 = vld [vmem:[#allocation2 + $0xd0] sm:$0xff]  ;;  %v1282_v4 = vld [vmem:[#allocation2 + $0x108] sm:$0xff] }
 0x490   :  { %v1284_v5 = vld [vmem:[#allocation2 + $0x118] sm:$0xff]  ;;  %v1281_v7 = vld [vmem:[#allocation2 + $0x100] sm:$0xff]  ;;  %v1283_v8 = vld [vmem:[#allocation2 + $0x110] sm:$0xff] }
 0x491   :  { %1512 = vmatpush1.bf16.msra.mxu0 %v1257_v58  ;;  %1594 = vmatpush1.bf16.msra.mxu1 %v1259_v59  ;;  %v1290_v9 = vld [vmem:[#allocation2 + $0x148] sm:$0xff]  ;;  %v1292_v10 = vld [vmem:[#allocation2 + $0x158] sm:$0xff]  ;;  %v1289_v11 = vld [vmem:[#allocation2 + $0x140] sm:$0xff] }
 0x492   :  { %1513 = vmatprep.subr.bf16.mxu0 %v1266_v60  ;;  %1595 = vmatprep.subr.bf16.mxu1 %v1268_v61  ;;  %v1291_v13 = vld [vmem:[#allocation2 + $0x150] sm:$0xff]  ;;  %v1298_v14 = vld [vmem:[#allocation2 + $0x188] sm:$0xff]  ;;  %v1300_v15 = vld [vmem:[#allocation2 + $0x198] sm:$0xff] }
 0x493   :  { %v1297_v18 = vld [vmem:[#allocation2 + $0x180] sm:$0xff]  ;;  %v1299_v19 = vld [vmem:[#allocation2 + $0x190] sm:$0xff]  ;;  %v1306_v20 = vld [vmem:[#allocation2 + $0x1c8] sm:$0xff] }
 0x494   :  { %v1308_v21 = vld [vmem:[#allocation2 + $0x1d8] sm:$0xff]  ;;  %v1305_v22 = vld [vmem:[#allocation2 + $0x1c0] sm:$0xff]  ;;  %v1307_v23 = vld [vmem:[#allocation2 + $0x1d0] sm:$0xff] }
 0x495   :  { %1514 = vmatpush1.bf16.msra.mxu0 %v1265_v62  ;;  %1596 = vmatpush1.bf16.msra.mxu1 %v1267_v63  ;;  %v1314_v24 = vld [vmem:[#allocation2 + $0x208] sm:$0xff]  ;;  %v1316_v25 = vld [vmem:[#allocation2 + $0x218] sm:$0xff]  ;;  %v1313_v26 = vld [vmem:[#allocation2 + $0x200] sm:$0xff] }
 0x496   :  { %1515 = vmatprep.subr.bf16.mxu0 %v1274_v0  ;;  %1597 = vmatprep.subr.bf16.mxu1 %v1276_v1  ;;  %v1315_v29 = vld [vmem:[#allocation2 + $0x210] sm:$0xff]  ;;  %v1322_v30 = vld [vmem:[#allocation2 + $0x248] sm:$0xff]  ;;  %v1324_v31 = vld [vmem:[#allocation2 + $0x258] sm:$0xff] }
 0x497   :  { %v1321_v32 = vld [vmem:[#allocation2 + $0x240] sm:$0xff]  ;;  %v1323_v33 = vld [vmem:[#allocation2 + $0x250] sm:$0xff]  ;;  %v1330_v34 = vld [vmem:[#allocation2 + $0x288] sm:$0xff] }
 0x498   :  { %v1332_v35 = vld [vmem:[#allocation2 + $0x298] sm:$0xff]  ;;  %v1329_v36 = vld [vmem:[#allocation2 + $0x280] sm:$0xff]  ;;  %v1331_v37 = vld [vmem:[#allocation2 + $0x290] sm:$0xff] }
 0x499   :  { %1516 = vmatpush1.bf16.msra.mxu0 %v1273_v2  ;;  %1598 = vmatpush1.bf16.msra.mxu1 %v1275_v3  ;;  %v1338_v38 = vld [vmem:[#allocation2 + $0x2c8] sm:$0xff]  ;;  %v1340_v39 = vld [vmem:[#allocation2 + $0x2d8] sm:$0xff]  ;;  %v1337_v40 = vld [vmem:[#allocation2 + $0x2c0] sm:$0xff]  ;;  %v4533_v3 = vpack.c.bf16 %v1238_v49, %v1238_v49 }
 0x49a   :  { %1517 = vmatprep.subr.bf16.mxu0 %v1282_v4  ;;  %1599 = vmatprep.subr.bf16.mxu1 %v1284_v5  ;;  %v1339_v41 = vld [vmem:[#allocation2 + $0x2d0] sm:$0xff]  ;;  %v1346_v42 = vld [vmem:[#allocation2 + $0x308] sm:$0xff]  ;;  %v1348_v44 = vld [vmem:[#allocation2 + $0x318] sm:$0xff] }
 0x49b   :  { %v1345_v50 = vld [vmem:[#allocation2 + $0x300] sm:$0xff]  ;;  %v1347_v17 = vld [vmem:[#allocation2 + $0x310] sm:$0xff]  ;;  %v1354_v53 = vld [vmem:[#allocation2 + $0x348] sm:$0xff] }
 0x49c   :  { %v1356_v54 = vld [vmem:[#allocation2 + $0x358] sm:$0xff]  ;;  %v1353_v55 = vld [vmem:[#allocation2 + $0x340] sm:$0xff]  ;;  %v1355_v56 = vld [vmem:[#allocation2 + $0x350] sm:$0xff] }
 0x49d   :  { %1518 = vmatpush1.bf16.msra.mxu0 %v1281_v7  ;;  %1600 = vmatpush1.bf16.msra.mxu1 %v1283_v8  ;;  %v1362_v57 = vld [vmem:[#allocation2 + $0x388] sm:$0xff]  ;;  %v1364_v58 = vld [vmem:[#allocation2 + $0x398] sm:$0xff]  ;;  %v1361_v59 = vld [vmem:[#allocation2 + $0x380] sm:$0xff] }
 0x49e   :  { %1519 = vmatprep.subr.bf16.mxu0 %v1290_v9  ;;  %1601 = vmatprep.subr.bf16.mxu1 %v1292_v10  ;;  %v1363_v60 = vld [vmem:[#allocation2 + $0x390] sm:$0xff]  ;;  %v1370_v61 = vld [vmem:[#allocation2 + $0x3c8] sm:$0xff]  ;;  %v1372_v62 = vld [vmem:[#allocation2 + $0x3d8] sm:$0xff]  ;;  %v4538_v9 = vpack.c.bf16 %v1241_v52, %v1241_v52 }
 0x49f   :  { %v1369_v63 = vld [vmem:[#allocation2 + $0x3c0] sm:$0xff]  ;;  %v1371_v0 = vld [vmem:[#allocation2 + $0x3d0] sm:$0xff]  ;;  %v1378_v1 = vld [vmem:[#allocation2 + $0x408] sm:$0xff] }
 0x4a0   :  { %v1380_v2 = vld [vmem:[#allocation2 + $0x418] sm:$0xff]  ;;  %v1377_v4 = vld [vmem:[#allocation2 + $0x400] sm:$0xff]  ;;  %v1379_v5 = vld [vmem:[#allocation2 + $0x410] sm:$0xff] }
 0x4a1   :  { %1520 = vmatpush1.bf16.msra.mxu0 %v1289_v11  ;;  %1602 = vmatpush1.bf16.msra.mxu1 %v1291_v13  ;;  %v1386_v7 = vld [vmem:[#allocation2 + $0x448] sm:$0xff]  ;;  %v1388_v8 = vld [vmem:[#allocation2 + $0x458] sm:$0xff]  ;;  %v1385_v43 = vld [vmem:[#allocation2 + $0x440] sm:$0xff] }
 0x4a2   :  { %1521 = vmatprep.subr.bf16.mxu0 %v1298_v14  ;;  %1603 = vmatprep.subr.bf16.mxu1 %v1300_v15  ;;  %v1387_v49 = vld [vmem:[#allocation2 + $0x450] sm:$0xff]  ;;  %v1394_v10 = vld [vmem:[#allocation2 + $0x488] sm:$0xff]  ;;  %v1396_v11 = vld [vmem:[#allocation2 + $0x498] sm:$0xff] }
 0x4a3   :  { %v1393_v47 = vld [vmem:[#allocation2 + $0x480] sm:$0xff]  ;;  %v1395_v52 = vld [vmem:[#allocation2 + $0x490] sm:$0xff]  ;;  %v1402_v13 = vld [vmem:[#allocation2 + $0x4c8] sm:$0xff] }
 0x4a4   :  { %v1404_v14 = vld [vmem:[#allocation2 + $0x4d8] sm:$0xff]  ;;  %v1401_v15 = vld [vmem:[#allocation2 + $0x4c0] sm:$0xff] }
 0x4a5   :  { %1522 = vmatpush1.bf16.msra.mxu0 %v1297_v18  ;;  %1604 = vmatpush1.bf16.msra.mxu1 %v1299_v19  ;;  %v1403_v18 = vld [vmem:[#allocation2 + $0x4d0] sm:$0xff]  ;;  %v1410_v19 = vld [vmem:[#allocation2 + $0x508] sm:$0xff]  ;;  %v1261_v45 = vld [vmem:[#allocation2 + $0x60] sm:$0xff] }
 0x4a6   :  { %1523 = vmatprep.subr.bf16.mxu0 %v1306_v20  ;;  %1605 = vmatprep.subr.bf16.mxu1 %v1308_v21  ;;  %v1412_v20 = vld [vmem:[#allocation2 + $0x518] sm:$0xff]  ;;  %v1409_v21 = vld [vmem:[#allocation2 + $0x500] sm:$0xff] }
 0x4a9   :  { %1524 = vmatpush1.bf16.msra.mxu0 %v1305_v22  ;;  %1606 = vmatpush1.bf16.msra.mxu1 %v1307_v23  ;;  %v1411_v22 = vld [vmem:[#allocation2 + $0x510] sm:$0xff]  ;;  %v1418_v23 = vld [vmem:[#allocation2 + $0x548] sm:$0xff] }
 0x4aa   :  { %1525 = vmatprep.subr.bf16.mxu0 %v1314_v24  ;;  %1607 = vmatprep.subr.bf16.mxu1 %v1316_v25  ;;  %v1420_v24 = vld [vmem:[#allocation2 + $0x558] sm:$0xff]  ;;  %v1417_v25 = vld [vmem:[#allocation2 + $0x540] sm:$0xff] }
 0x4ad   :  { %1526 = vmatpush1.bf16.msra.mxu0 %v1313_v26  ;;  %1608 = vmatpush1.bf16.msra.mxu1 %v1315_v29  ;;  %v1419_v26 = vld [vmem:[#allocation2 + $0x550] sm:$0xff]  ;;  %v1426_v29 = vld [vmem:[#allocation2 + $0x588] sm:$0xff] }
 0x4ae   :  { %1527 = vmatprep.subr.bf16.mxu0 %v1322_v30  ;;  %1609 = vmatprep.subr.bf16.mxu1 %v1324_v31  ;;  %v1428_v30 = vld [vmem:[#allocation2 + $0x598] sm:$0xff]  ;;  %v1425_v31 = vld [vmem:[#allocation2 + $0x580] sm:$0xff] }
 0x4b1   :  { %1528 = vmatpush1.bf16.msra.mxu0 %v1321_v32  ;;  %1610 = vmatpush1.bf16.msra.mxu1 %v1323_v33  ;;  %v1427_v32 = vld [vmem:[#allocation2 + $0x590] sm:$0xff]  ;;  %v1434_v33 = vld [vmem:[#allocation2 + $0x5c8] sm:$0xff] }
 0x4b2   :  { %1529 = vmatprep.subr.bf16.mxu0 %v1330_v34  ;;  %1611 = vmatprep.subr.bf16.mxu1 %v1332_v35  ;;  %v1436_v34 = vld [vmem:[#allocation2 + $0x5d8] sm:$0xff]  ;;  %v1433_v35 = vld [vmem:[#allocation2 + $0x5c0] sm:$0xff] }
 0x4b5   :  { %1530 = vmatpush1.bf16.msra.mxu0 %v1329_v36  ;;  %1612 = vmatpush1.bf16.msra.mxu1 %v1331_v37  ;;  %v1435_v36 = vld [vmem:[#allocation2 + $0x5d0] sm:$0xff]  ;;  %v1442_v37 = vld [vmem:[#allocation2 + $0x608] sm:$0xff] }
 0x4b6   :  { %1531 = vmatprep.subr.bf16.mxu0 %v1338_v38  ;;  %1613 = vmatprep.subr.bf16.mxu1 %v1340_v39  ;;  %v1444_v38 = vld [vmem:[#allocation2 + $0x618] sm:$0xff]  ;;  %v1441_v39 = vld [vmem:[#allocation2 + $0x600] sm:$0xff] }
 0x4b9   :  { %1532 = vmatpush1.bf16.msra.mxu0 %v1337_v40  ;;  %1614 = vmatpush1.bf16.msra.mxu1 %v1339_v41  ;;  %v1443_v40 = vld [vmem:[#allocation2 + $0x610] sm:$0xff]  ;;  %v1450_v41 = vld [vmem:[#allocation2 + $0x648] sm:$0xff] }
 0x4ba   :  { %1533 = vmatprep.subr.bf16.mxu0 %v1346_v42  ;;  %1615 = vmatprep.subr.bf16.mxu1 %v1348_v44  ;;  %v1452_v42 = vld [vmem:[#allocation2 + $0x658] sm:$0xff]  ;;  %v1449_v44 = vld [vmem:[#allocation2 + $0x640] sm:$0xff] }
 0x4bd   :  { %1534 = vmatpush1.bf16.msra.mxu0 %v1345_v50  ;;  %1616 = vmatpush1.bf16.msra.mxu1 %v1347_v17  ;;  %v1451_v50 = vld [vmem:[#allocation2 + $0x650] sm:$0xff]  ;;  %v1458_v17 = vld [vmem:[#allocation2 + $0x688] sm:$0xff] }
 0x4be   :  { %1535 = vmatprep.subr.bf16.mxu0 %v1354_v53  ;;  %1617 = vmatprep.subr.bf16.mxu1 %v1356_v54  ;;  %v1460_v53 = vld [vmem:[#allocation2 + $0x698] sm:$0xff]  ;;  %v1457_v54 = vld [vmem:[#allocation2 + $0x680] sm:$0xff] }
 0x4c1   :  { %1536 = vmatpush1.bf16.msra.mxu0 %v1353_v55  ;;  %1618 = vmatpush1.bf16.msra.mxu1 %v1355_v56  ;;  %v1459_v55 = vld [vmem:[#allocation2 + $0x690] sm:$0xff]  ;;  %v1466_v56 = vld [vmem:[#allocation2 + $0x6c8] sm:$0xff] }
 0x4c2   :  { %1537 = vmatprep.subr.bf16.mxu0 %v1362_v57  ;;  %1619 = vmatprep.subr.bf16.mxu1 %v1364_v58  ;;  %v1468_v57 = vld [vmem:[#allocation2 + $0x6d8] sm:$0xff]  ;;  %v1465_v58 = vld [vmem:[#allocation2 + $0x6c0] sm:$0xff] }
 0x4c5   :  { %1538 = vmatpush1.bf16.msra.mxu0 %v1361_v59  ;;  %1620 = vmatpush1.bf16.msra.mxu1 %v1363_v60  ;;  %v1467_v59 = vld [vmem:[#allocation2 + $0x6d0] sm:$0xff]  ;;  %v1474_v60 = vld [vmem:[#allocation2 + $0x708] sm:$0xff] }
 0x4c6   :  { %1539 = vmatprep.subr.bf16.mxu0 %v1370_v61  ;;  %1621 = vmatprep.subr.bf16.mxu1 %v1372_v62  ;;  %v1476_v61 = vld [vmem:[#allocation2 + $0x718] sm:$0xff]  ;;  %v1473_v62 = vld [vmem:[#allocation2 + $0x700] sm:$0xff] }
 0x4c9   :  { %1540 = vmatpush1.bf16.msra.mxu0 %v1369_v63  ;;  %1622 = vmatpush1.bf16.msra.mxu1 %v1371_v0  ;;  %v1475_v63 = vld [vmem:[#allocation2 + $0x710] sm:$0xff]  ;;  %v1482_v0 = vld [vmem:[#allocation2 + $0x748] sm:$0xff] }
 0x4ca   :  { %1550 = vmatprep.subr.bf16.mxu0 %v1378_v1  ;;  %1632 = vmatprep.subr.bf16.mxu1 %v1380_v2  ;;  %v1484_v1 = vld [vmem:[#allocation2 + $0x758] sm:$0xff]  ;;  %v1481_v2 = vld [vmem:[#allocation2 + $0x740] sm:$0xff] }
 0x4cc   :  { %1542 = vmatmul.mubr.bf16.vlgmr.msra.gmra.mrb[4].mxu0 %v4533_v3  ;;  %1624 = vmatmul.mubr.bf16.vlgmr.msra.gmra.mrb[12].mxu1 %v4533_v3 }
 0x4cd   :  { %1551 = vmatpush1.bf16.msra.mxu0 %v1377_v4  ;;  %1633 = vmatpush1.bf16.msra.mxu1 %v1379_v5  ;;  %v1483_v4 = vld [vmem:[#allocation2 + $0x750] sm:$0xff]  ;;  %v1490_v5 = vld [vmem:[#allocation2 + $0x788] sm:$0xff] }
 0x4ce   :  { %1552 = vmatprep.subr.bf16.mxu0 %v1386_v7  ;;  %1634 = vmatprep.subr.bf16.mxu1 %v1388_v8  ;;  %v1492_v7 = vld [vmem:[#allocation2 + $0x798] sm:$0xff]  ;;  %v1489_v8 = vld [vmem:[#allocation2 + $0x780] sm:$0xff] }
 0x4cf   :  { %1582 = vmatprep.mubr.bf16.mxu0 %v4538_v9  ;;  %1664 = vmatprep.mubr.bf16.mxu1 %v4538_v9 }
 0x4d1   :  { %1553 = vmatpush1.bf16.msra.mxu0 %v1385_v43  ;;  %1635 = vmatpush1.bf16.msra.mxu1 %v1387_v49  ;;  %v1491_v43 = vld [vmem:[#allocation2 + $0x790] sm:$0xff]  ;;  %v1498_v49 = vld [vmem:[#allocation2 + $0x7c8] sm:$0xff] }
 0x4d2   :  { %1554 = vmatprep.subr.bf16.mxu0 %v1394_v10  ;;  %1636 = vmatprep.subr.bf16.mxu1 %v1396_v11  ;;  %v1500_v10 = vld [vmem:[#allocation2 + $0x7d8] sm:$0xff]  ;;  %v1497_v11 = vld [vmem:[#allocation2 + $0x7c0] sm:$0xff] }
 0x4d5   :  { %1555 = vmatpush1.bf16.msra.mxu0 %v1393_v47  ;;  %1637 = vmatpush1.bf16.msra.mxu1 %v1395_v52  ;;  %v1499_v47 = vld [vmem:[#allocation2 + $0x7d0] sm:$0xff]  ;;  %v1254_v52 = vld [vmem:[#allocation2 + $0x28] sm:$0xff] }
 0x4d6   :  { %1556 = vmatprep.subr.bf16.mxu0 %v1402_v13  ;;  %1638 = vmatprep.subr.bf16.mxu1 %v1404_v14  ;;  %v1256_v13 = vld [vmem:[#allocation2 + $0x38] sm:$0xff]  ;;  %v4547_v14 = vpack.c.bf16 %v1240_v51, %v1240_v51  ;;  %v1270_v51 = vld [vmem:[#allocation2 + $0xa8] sm:$0xff] }
 0x4d9   :  { %1557 = vmatpush1.bf16.msra.mxu0 %v1401_v15  ;;  %1639 = vmatpush1.bf16.msra.mxu1 %v1403_v18  ;;  %v1253_v15 = vld [vmem:[#allocation2 + $0x20] sm:$0xff]  ;;  %v1255_v18 = vld [vmem:[#allocation2 + $0x30] sm:$0xff] }
 0x4da   :  { %1558 = vmatprep.subr.bf16.mxu0 %v1410_v19  ;;  %1640 = vmatprep.subr.bf16.mxu1 %v1412_v20  ;;  %v1262_v19 = vld [vmem:[#allocation2 + $0x68] sm:$0xff]  ;;  %v1264_v20 = vld [vmem:[#allocation2 + $0x78] sm:$0xff] }
 0x4dd   :  { %1559 = vmatpush1.bf16.msra.mxu0 %v1409_v21  ;;  %1641 = vmatpush1.bf16.msra.mxu1 %v1411_v22  ;;  %v1263_v21 = vld [vmem:[#allocation2 + $0x70] sm:$0xff]  ;;  %v1272_v22 = vld [vmem:[#allocation2 + $0xb8] sm:$0xff] }
 0x4de   :  { %1560 = vmatprep.subr.bf16.mxu0 %v1418_v23  ;;  %1642 = vmatprep.subr.bf16.mxu1 %v1420_v24  ;;  %v1269_v23 = vld [vmem:[#allocation2 + $0xa0] sm:$0xff]  ;;  %v1271_v24 = vld [vmem:[#allocation2 + $0xb0] sm:$0xff] }
 0x4e1   :  { %1561 = vmatpush1.bf16.msra.mxu0 %v1417_v25  ;;  %1643 = vmatpush1.bf16.msra.mxu1 %v1419_v26  ;;  %v1278_v25 = vld [vmem:[#allocation2 + $0xe8] sm:$0xff]  ;;  %v1280_v26 = vld [vmem:[#allocation2 + $0xf8] sm:$0xff] }
 0x4e2   :  { %1562 = vmatprep.subr.bf16.mxu0 %v1426_v29  ;;  %1644 = vmatprep.subr.bf16.mxu1 %v1428_v30  ;;  %v1277_v29 = vld [vmem:[#allocation2 + $0xe0] sm:$0xff]  ;;  %v1279_v30 = vld [vmem:[#allocation2 + $0xf0] sm:$0xff] }
 0x4e5   :  { %1563 = vmatpush1.bf16.msra.mxu0 %v1425_v31  ;;  %1645 = vmatpush1.bf16.msra.mxu1 %v1427_v32  ;;  %v1286_v31 = vld [vmem:[#allocation2 + $0x128] sm:$0xff]  ;;  %v1288_v32 = vld [vmem:[#allocation2 + $0x138] sm:$0xff] }
 0x4e6   :  { %1564 = vmatprep.subr.bf16.mxu0 %v1434_v33  ;;  %1646 = vmatprep.subr.bf16.mxu1 %v1436_v34  ;;  %v1287_v33 = vld [vmem:[#allocation2 + $0x130] sm:$0xff]  ;;  %v1294_v34 = vld [vmem:[#allocation2 + $0x168] sm:$0xff] }
 0x4e9   :  { %1565 = vmatpush1.bf16.msra.mxu0 %v1433_v35  ;;  %1647 = vmatpush1.bf16.msra.mxu1 %v1435_v36  ;;  %v1296_v35 = vld [vmem:[#allocation2 + $0x178] sm:$0xff]  ;;  %v1293_v36 = vld [vmem:[#allocation2 + $0x160] sm:$0xff] }
 0x4ea   :  { %1566 = vmatprep.subr.bf16.mxu0 %v1442_v37  ;;  %1648 = vmatprep.subr.bf16.mxu1 %v1444_v38  ;;  %v1295_v37 = vld [vmem:[#allocation2 + $0x170] sm:$0xff]  ;;  %v1302_v38 = vld [vmem:[#allocation2 + $0x1a8] sm:$0xff] }
 0x4ed   :  { %1567 = vmatpush1.bf16.msra.mxu0 %v1441_v39  ;;  %1649 = vmatpush1.bf16.msra.mxu1 %v1443_v40  ;;  %v1304_v39 = vld [vmem:[#allocation2 + $0x1b8] sm:$0xff]  ;;  %v1301_v40 = vld [vmem:[#allocation2 + $0x1a0] sm:$0xff] }
 0x4ee   :  { %1568 = vmatprep.subr.bf16.mxu0 %v1450_v41  ;;  %1650 = vmatprep.subr.bf16.mxu1 %v1452_v42  ;;  %v1303_v41 = vld [vmem:[#allocation2 + $0x1b0] sm:$0xff]  ;;  %v1310_v42 = vld [vmem:[#allocation2 + $0x1e8] sm:$0xff] }
 0x4f1   :  { %1569 = vmatpush1.bf16.msra.mxu0 %v1449_v44  ;;  %1651 = vmatpush1.bf16.msra.mxu1 %v1451_v50  ;;  %v1312_v44 = vld [vmem:[#allocation2 + $0x1f8] sm:$0xff]  ;;  %v1309_v50 = vld [vmem:[#allocation2 + $0x1e0] sm:$0xff] }
 0x4f2   :  { %1570 = vmatprep.subr.bf16.mxu0 %v1458_v17  ;;  %1652 = vmatprep.subr.bf16.mxu1 %v1460_v53  ;;  %v1311_v17 = vld [vmem:[#allocation2 + $0x1f0] sm:$0xff]  ;;  %v1318_v53 = vld [vmem:[#allocation2 + $0x228] sm:$0xff] }
 0x4f5   :  { %1571 = vmatpush1.bf16.msra.mxu0 %v1457_v54  ;;  %1653 = vmatpush1.bf16.msra.mxu1 %v1459_v55  ;;  %v1320_v54 = vld [vmem:[#allocation2 + $0x238] sm:$0xff]  ;;  %v1317_v55 = vld [vmem:[#allocation2 + $0x220] sm:$0xff] }
 0x4f6   :  { %1572 = vmatprep.subr.bf16.mxu0 %v1466_v56  ;;  %1654 = vmatprep.subr.bf16.mxu1 %v1468_v57  ;;  %v1319_v56 = vld [vmem:[#allocation2 + $0x230] sm:$0xff]  ;;  %v1326_v57 = vld [vmem:[#allocation2 + $0x268] sm:$0xff] }
 0x4f9   :  { %1573 = vmatpush1.bf16.msra.mxu0 %v1465_v58  ;;  %1655 = vmatpush1.bf16.msra.mxu1 %v1467_v59  ;;  %v1328_v58 = vld [vmem:[#allocation2 + $0x278] sm:$0xff]  ;;  %v1325_v59 = vld [vmem:[#allocation2 + $0x260] sm:$0xff] }
 0x4fa   :  { %1574 = vmatprep.subr.bf16.mxu0 %v1474_v60  ;;  %1656 = vmatprep.subr.bf16.mxu1 %v1476_v61  ;;  %v1327_v60 = vld [vmem:[#allocation2 + $0x270] sm:$0xff]  ;;  %v1334_v61 = vld [vmem:[#allocation2 + $0x2a8] sm:$0xff] }
 0x4fd   :  { %1575 = vmatpush1.bf16.msra.mxu0 %v1473_v62  ;;  %1657 = vmatpush1.bf16.msra.mxu1 %v1475_v63  ;;  %v1336_v62 = vld [vmem:[#allocation2 + $0x2b8] sm:$0xff]  ;;  %v1333_v63 = vld [vmem:[#allocation2 + $0x2a0] sm:$0xff] }
 0x4fe   :  { %1576 = vmatprep.subr.bf16.mxu0 %v1482_v0  ;;  %1658 = vmatprep.subr.bf16.mxu1 %v1484_v1  ;;  %v1335_v0 = vld [vmem:[#allocation2 + $0x2b0] sm:$0xff]  ;;  %v1342_v1 = vld [vmem:[#allocation2 + $0x2e8] sm:$0xff] }
 0x501   :  { %1577 = vmatpush1.bf16.msra.mxu0 %v1481_v2  ;;  %1659 = vmatpush1.bf16.msra.mxu1 %v1483_v4  ;;  %v1344_v2 = vld [vmem:[#allocation2 + $0x2f8] sm:$0xff]  ;;  %v1341_v4 = vld [vmem:[#allocation2 + $0x2e0] sm:$0xff] }
 0x502   :  { %1578 = vmatprep.subr.bf16.mxu0 %v1490_v5  ;;  %1660 = vmatprep.subr.bf16.mxu1 %v1492_v7  ;;  %v1343_v5 = vld [vmem:[#allocation2 + $0x2f0] sm:$0xff]  ;;  %v1350_v7 = vld [vmem:[#allocation2 + $0x328] sm:$0xff] }
 0x505   :  { %1579 = vmatpush1.bf16.msra.mxu0 %v1489_v8  ;;  %1661 = vmatpush1.bf16.msra.mxu1 %v1491_v43  ;;  %v1352_v8 = vld [vmem:[#allocation2 + $0x338] sm:$0xff]  ;;  %v1349_v43 = vld [vmem:[#allocation2 + $0x320] sm:$0xff] }
 0x506   :  { %1580 = vmatprep.subr.bf16.mxu0 %v1498_v49  ;;  %1662 = vmatprep.subr.bf16.mxu1 %v1500_v10  ;;  %v1351_v49 = vld [vmem:[#allocation2 + $0x330] sm:$0xff]  ;;  %v1358_v10 = vld [vmem:[#allocation2 + $0x368] sm:$0xff] }
 0x509   :  { %1581 = vmatpush1.bf16.msra.mxu0 %v1497_v11  ;;  %1663 = vmatpush1.bf16.msra.mxu1 %v1499_v47  ;;  %v1360_v11 = vld [vmem:[#allocation2 + $0x378] sm:$0xff]  ;;  %v1357_v47 = vld [vmem:[#allocation2 + $0x360] sm:$0xff] }
 0x50a   :  { %1673 = vmatprep.subr.bf16.mxu0 %v1254_v52  ;;  %1755 = vmatprep.subr.bf16.mxu1 %v1256_v13  ;;  %v1359_v52 = vld [vmem:[#allocation2 + $0x370] sm:$0xff]  ;;  %v1366_v13 = vld [vmem:[#allocation2 + $0x3a8] sm:$0xff] }
 0x50c   :  { %1583 = vmatmul.mubr.bf16.vlgmr.msra.gmra.mrb[4].mxu0 %v4547_v14  ;;  %1665 = vmatmul.mubr.bf16.vlgmr.msra.gmra.mrb[12].mxu1 %v4547_v14 }
 0x50d   :  { %1674 = vmatpush1.bf16.msra.mxu0 %v1253_v15  ;;  %1756 = vmatpush1.bf16.msra.mxu1 %v1255_v18  ;;  %v1368_v15 = vld [vmem:[#allocation2 + $0x3b8] sm:$0xff]  ;;  %v1365_v18 = vld [vmem:[#allocation2 + $0x3a0] sm:$0xff] }
 0x50e   :  { %1675 = vmatprep.subr.bf16.mxu0 %v1262_v19  ;;  %1757 = vmatprep.subr.bf16.mxu1 %v1264_v20  ;;  %v1367_v19 = vld [vmem:[#allocation2 + $0x3b0] sm:$0xff]  ;;  %v1374_v20 = vld [vmem:[#allocation2 + $0x3e8] sm:$0xff] }
 0x50f   :  { %1705 = vmatprep.mubr.bf16.mxu0 %v4526_v16  ;;  %1787 = vmatprep.mubr.bf16.mxu1 %v4526_v16  ;;  %v1285_v16 = vld [vmem:[#allocation2 + $0x120] sm:$0xff] }
 0x511   :  { %1676 = vmatpush1.bf16.msra.mxu0 %v1261_v45  ;;  %1758 = vmatpush1.bf16.msra.mxu1 %v1263_v21  ;;  %v1376_v45 = vld [vmem:[#allocation2 + $0x3f8] sm:$0xff]  ;;  %v1373_v21 = vld [vmem:[#allocation2 + $0x3e0] sm:$0xff] }
 0x512   :  { %1677 = vmatprep.subr.bf16.mxu0 %v1270_v51  ;;  %1759 = vmatprep.subr.bf16.mxu1 %v1272_v22  ;;  %v1375_v51 = vld [vmem:[#allocation2 + $0x3f0] sm:$0xff]  ;;  %v1382_v22 = vld [vmem:[#allocation2 + $0x428] sm:$0xff] }
 0x515   :  { %1678 = vmatpush1.bf16.msra.mxu0 %v1269_v23  ;;  %1760 = vmatpush1.bf16.msra.mxu1 %v1271_v24  ;;  %v1384_v23 = vld [vmem:[#allocation2 + $0x438] sm:$0xff]  ;;  %v1381_v24 = vld [vmem:[#allocation2 + $0x420] sm:$0xff] }
 0x516   :  { %1679 = vmatprep.subr.bf16.mxu0 %v1278_v25  ;;  %1761 = vmatprep.subr.bf16.mxu1 %v1280_v26  ;;  %v1383_v25 = vld [vmem:[#allocation2 + $0x430] sm:$0xff]  ;;  %v1390_v26 = vld [vmem:[#allocation2 + $0x468] sm:$0xff] }
 0x519   :  { %1680 = vmatpush1.bf16.msra.mxu0 %v1277_v29  ;;  %1762 = vmatpush1.bf16.msra.mxu1 %v1279_v30  ;;  %v1392_v29 = vld [vmem:[#allocation2 + $0x478] sm:$0xff]  ;;  %v1389_v30 = vld [vmem:[#allocation2 + $0x460] sm:$0xff] }
 0x51a   :  { %1681 = vmatprep.subr.bf16.mxu0 %v1286_v31  ;;  %1763 = vmatprep.subr.bf16.mxu1 %v1288_v32  ;;  %v1391_v31 = vld [vmem:[#allocation2 + $0x470] sm:$0xff]  ;;  %v1398_v32 = vld [vmem:[#allocation2 + $0x4a8] sm:$0xff] }
 0x51d   :  { %1682 = vmatpush1.bf16.msra.mxu0 %v1285_v16  ;;  %1764 = vmatpush1.bf16.msra.mxu1 %v1287_v33  ;;  %v1400_v16 = vld [vmem:[#allocation2 + $0x4b8] sm:$0xff]  ;;  %v1397_v33 = vld [vmem:[#allocation2 + $0x4a0] sm:$0xff] }
 0x51e   :  { %1683 = vmatprep.subr.bf16.mxu0 %v1294_v34  ;;  %1765 = vmatprep.subr.bf16.mxu1 %v1296_v35  ;;  %v1399_v34 = vld [vmem:[#allocation2 + $0x4b0] sm:$0xff]  ;;  %v1406_v35 = vld [vmem:[#allocation2 + $0x4e8] sm:$0xff] }
 0x521   :  { %1684 = vmatpush1.bf16.msra.mxu0 %v1293_v36  ;;  %1766 = vmatpush1.bf16.msra.mxu1 %v1295_v37  ;;  %v1405_v36 = vld [vmem:[#allocation2 + $0x4e0] sm:$0xff]  ;;  %v1407_v37 = vld [vmem:[#allocation2 + $0x4f0] sm:$0xff] }
 0x522   :  { %1685 = vmatprep.subr.bf16.mxu0 %v1302_v38  ;;  %1767 = vmatprep.subr.bf16.mxu1 %v1304_v39  ;;  %v1414_v38 = vld [vmem:[#allocation2 + $0x528] sm:$0xff]  ;;  %v1416_v39 = vld [vmem:[#allocation2 + $0x538] sm:$0xff] }
 0x525   :  { %1686 = vmatpush1.bf16.msra.mxu0 %v1301_v40  ;;  %1768 = vmatpush1.bf16.msra.mxu1 %v1303_v41  ;;  %v1415_v40 = vld [vmem:[#allocation2 + $0x530] sm:$0xff]  ;;  %v1422_v41 = vld [vmem:[#allocation2 + $0x568] sm:$0xff] }
 0x526   :  { %1687 = vmatprep.subr.bf16.mxu0 %v1310_v42  ;;  %1769 = vmatprep.subr.bf16.mxu1 %v1312_v44  ;;  %v1424_v42 = vld [vmem:[#allocation2 + $0x578] sm:$0xff]  ;;  %v1421_v44 = vld [vmem:[#allocation2 + $0x560] sm:$0xff] }
 0x529   :  { %1688 = vmatpush1.bf16.msra.mxu0 %v1309_v50  ;;  %1770 = vmatpush1.bf16.msra.mxu1 %v1311_v17  ;;  %v1423_v50 = vld [vmem:[#allocation2 + $0x570] sm:$0xff]  ;;  %v1430_v17 = vld [vmem:[#allocation2 + $0x5a8] sm:$0xff] }
 0x52a   :  { %1689 = vmatprep.subr.bf16.mxu0 %v1318_v53  ;;  %1771 = vmatprep.subr.bf16.mxu1 %v1320_v54  ;;  %v1432_v53 = vld [vmem:[#allocation2 + $0x5b8] sm:$0xff]  ;;  %v1429_v54 = vld [vmem:[#allocation2 + $0x5a0] sm:$0xff] }
 0x52d   :  { %1690 = vmatpush1.bf16.msra.mxu0 %v1317_v55  ;;  %1772 = vmatpush1.bf16.msra.mxu1 %v1319_v56  ;;  %v1431_v55 = vld [vmem:[#allocation2 + $0x5b0] sm:$0xff]  ;;  %v1438_v56 = vld [vmem:[#allocation2 + $0x5e8] sm:$0xff] }
 0x52e   :  { %1691 = vmatprep.subr.bf16.mxu0 %v1326_v57  ;;  %1773 = vmatprep.subr.bf16.mxu1 %v1328_v58  ;;  %v1440_v57 = vld [vmem:[#allocation2 + $0x5f8] sm:$0xff]  ;;  %v1437_v58 = vld [vmem:[#allocation2 + $0x5e0] sm:$0xff] }
 0x531   :  { %1692 = vmatpush1.bf16.msra.mxu0 %v1325_v59  ;;  %1774 = vmatpush1.bf16.msra.mxu1 %v1327_v60  ;;  %v1439_v59 = vld [vmem:[#allocation2 + $0x5f0] sm:$0xff]  ;;  %v1446_v60 = vld [vmem:[#allocation2 + $0x628] sm:$0xff] }
 0x532   :  { %1693 = vmatprep.subr.bf16.mxu0 %v1334_v61  ;;  %1775 = vmatprep.subr.bf16.mxu1 %v1336_v62  ;;  %v1448_v61 = vld [vmem:[#allocation2 + $0x638] sm:$0xff]  ;;  %v1445_v62 = vld [vmem:[#allocation2 + $0x620] sm:$0xff] }
 0x535   :  { %1694 = vmatpush1.bf16.msra.mxu0 %v1333_v63  ;;  %1776 = vmatpush1.bf16.msra.mxu1 %v1335_v0  ;;  %v1447_v63 = vld [vmem:[#allocation2 + $0x630] sm:$0xff]  ;;  %v1454_v0 = vld [vmem:[#allocation2 + $0x668] sm:$0xff] }
 0x536   :  { %1695 = vmatprep.subr.bf16.mxu0 %v1342_v1  ;;  %1777 = vmatprep.subr.bf16.mxu1 %v1344_v2  ;;  %v1456_v1 = vld [vmem:[#allocation2 + $0x678] sm:$0xff]  ;;  %v1453_v2 = vld [vmem:[#allocation2 + $0x660] sm:$0xff] }
 0x539   :  { %1696 = vmatpush1.bf16.msra.mxu0 %v1341_v4  ;;  %1778 = vmatpush1.bf16.msra.mxu1 %v1343_v5  ;;  %v1455_v4 = vld [vmem:[#allocation2 + $0x670] sm:$0xff]  ;;  %v1462_v5 = vld [vmem:[#allocation2 + $0x6a8] sm:$0xff] }
 0x53a   :  { %1697 = vmatprep.subr.bf16.mxu0 %v1350_v7  ;;  %1779 = vmatprep.subr.bf16.mxu1 %v1352_v8  ;;  %v1464_v7 = vld [vmem:[#allocation2 + $0x6b8] sm:$0xff]  ;;  %v1461_v8 = vld [vmem:[#allocation2 + $0x6a0] sm:$0xff] }
 0x53d   :  { %1698 = vmatpush1.bf16.msra.mxu0 %v1349_v43  ;;  %1780 = vmatpush1.bf16.msra.mxu1 %v1351_v49  ;;  %v1463_v43 = vld [vmem:[#allocation2 + $0x6b0] sm:$0xff]  ;;  %v1470_v49 = vld [vmem:[#allocation2 + $0x6e8] sm:$0xff] }
 0x53e   :  { %1699 = vmatprep.subr.bf16.mxu0 %v1358_v10  ;;  %1781 = vmatprep.subr.bf16.mxu1 %v1360_v11  ;;  %v1472_v10 = vld [vmem:[#allocation2 + $0x6f8] sm:$0xff]  ;;  %v1469_v11 = vld [vmem:[#allocation2 + $0x6e0] sm:$0xff] }
 0x541   :  { %1700 = vmatpush1.bf16.msra.mxu0 %v1357_v47  ;;  %1782 = vmatpush1.bf16.msra.mxu1 %v1359_v52  ;;  %v1471_v47 = vld [vmem:[#allocation2 + $0x6f0] sm:$0xff]  ;;  %v1478_v52 = vld [vmem:[#allocation2 + $0x728] sm:$0xff] }
 0x542   :  { %1701 = vmatprep.subr.bf16.mxu0 %v1366_v13  ;;  %1783 = vmatprep.subr.bf16.mxu1 %v1368_v15  ;;  %v1480_v13 = vld [vmem:[#allocation2 + $0x738] sm:$0xff]  ;;  %v1477_v15 = vld [vmem:[#allocation2 + $0x720] sm:$0xff] }
 0x545   :  { %1702 = vmatpush1.bf16.msra.mxu0 %v1365_v18  ;;  %1784 = vmatpush1.bf16.msra.mxu1 %v1367_v19  ;;  %v1479_v18 = vld [vmem:[#allocation2 + $0x730] sm:$0xff]  ;;  %v1486_v19 = vld [vmem:[#allocation2 + $0x768] sm:$0xff] }
 0x546   :  { %1703 = vmatprep.subr.bf16.mxu0 %v1374_v20  ;;  %1785 = vmatprep.subr.bf16.mxu1 %v1376_v45  ;;  %v1488_v20 = vld [vmem:[#allocation2 + $0x778] sm:$0xff]  ;;  %v1485_v45 = vld [vmem:[#allocation2 + $0x760] sm:$0xff] }
 0x549   :  { %1704 = vmatpush1.bf16.msra.mxu0 %v1373_v21  ;;  %1786 = vmatpush1.bf16.msra.mxu1 %v1375_v51  ;;  %v1487_v21 = vld [vmem:[#allocation2 + $0x770] sm:$0xff]  ;;  %v1494_v51 = vld [vmem:[#allocation2 + $0x7a8] sm:$0xff] }
 0x54a   :  { %1714 = vmatprep.subr.bf16.mxu0 %v1382_v22  ;;  %1796 = vmatprep.subr.bf16.mxu1 %v1384_v23  ;;  %v1496_v22 = vld [vmem:[#allocation2 + $0x7b8] sm:$0xff]  ;;  %v1493_v23 = vld [vmem:[#allocation2 + $0x7a0] sm:$0xff] }
 0x54c   :  { %1706 = vmatmul.mubr.bf16.vlgmr.msra.gmra.mrb[8].mxu0 %v4533_v3  ;;  %1788 = vmatmul.mubr.bf16.vlgmr.msra.gmra.mrb[16].mxu1 %v4533_v3  ;;  %v1408_v3 = vld [vmem:[#allocation2 + $0x4f8] sm:$0xff] }
 0x54d   :  { %1715 = vmatpush1.bf16.msra.mxu0 %v1381_v24  ;;  %1797 = vmatpush1.bf16.msra.mxu1 %v1383_v25  ;;  %v1495_v24 = vld [vmem:[#allocation2 + $0x7b0] sm:$0xff]  ;;  %v1502_v25 = vld [vmem:[#allocation2 + $0x7e8] sm:$0xff] }
 0x54e   :  { %1716 = vmatprep.subr.bf16.mxu0 %v1390_v26  ;;  %1798 = vmatprep.subr.bf16.mxu1 %v1392_v29  ;;  %v1504_v26 = vld [vmem:[#allocation2 + $0x7f8] sm:$0xff]  ;;  %v1501_v29 = vld [vmem:[#allocation2 + $0x7e0] sm:$0xff] }
 0x54f   :  { %1746 = vmatprep.mubr.bf16.mxu0 %v4538_v9  ;;  %1828 = vmatprep.mubr.bf16.mxu1 %v4538_v9  ;;  %v1413_v9 = vld [vmem:[#allocation2 + $0x520] sm:$0xff] }
 0x551   :  { %1717 = vmatpush1.bf16.msra.mxu0 %v1389_v30  ;;  %1799 = vmatpush1.bf16.msra.mxu1 %v1391_v31  ;;  %v1503_v30 = vld [vmem:[#allocation2 + $0x7f0] sm:$0xff] }
 0x552   :  { %1718 = vmatprep.subr.bf16.mxu0 %v1398_v32  ;;  %1800 = vmatprep.subr.bf16.mxu1 %v1400_v16 }
 0x555   :  { %1719 = vmatpush1.bf16.msra.mxu0 %v1397_v33  ;;  %1801 = vmatpush1.bf16.msra.mxu1 %v1399_v34 }
 0x556   :  { %1720 = vmatprep.subr.bf16.mxu0 %v1406_v35  ;;  %1802 = vmatprep.subr.bf16.mxu1 %v1408_v3 }
 0x559   :  { %1721 = vmatpush1.bf16.msra.mxu0 %v1405_v36  ;;  %1803 = vmatpush1.bf16.msra.mxu1 %v1407_v37 }
 0x55a   :  { %1722 = vmatprep.subr.bf16.mxu0 %v1414_v38  ;;  %1804 = vmatprep.subr.bf16.mxu1 %v1416_v39 }
 0x55d   :  { %1723 = vmatpush1.bf16.msra.mxu0 %v1413_v9  ;;  %1805 = vmatpush1.bf16.msra.mxu1 %v1415_v40 }
 0x55e   :  { %1724 = vmatprep.subr.bf16.mxu0 %v1422_v41  ;;  %1806 = vmatprep.subr.bf16.mxu1 %v1424_v42 }
 0x561   :  { %1725 = vmatpush1.bf16.msra.mxu0 %v1421_v44  ;;  %1807 = vmatpush1.bf16.msra.mxu1 %v1423_v50 }
 0x562   :  { %1726 = vmatprep.subr.bf16.mxu0 %v1430_v17  ;;  %1808 = vmatprep.subr.bf16.mxu1 %v1432_v53 }
 0x565   :  { %1727 = vmatpush1.bf16.msra.mxu0 %v1429_v54  ;;  %1809 = vmatpush1.bf16.msra.mxu1 %v1431_v55 }
 0x566   :  { %1728 = vmatprep.subr.bf16.mxu0 %v1438_v56  ;;  %1810 = vmatprep.subr.bf16.mxu1 %v1440_v57 }
 0x569   :  { %1729 = vmatpush1.bf16.msra.mxu0 %v1437_v58  ;;  %1811 = vmatpush1.bf16.msra.mxu1 %v1439_v59 }
 0x56a   :  { %1730 = vmatprep.subr.bf16.mxu0 %v1446_v60  ;;  %1812 = vmatprep.subr.bf16.mxu1 %v1448_v61 }
 0x56d   :  { %1731 = vmatpush1.bf16.msra.mxu0 %v1445_v62  ;;  %1813 = vmatpush1.bf16.msra.mxu1 %v1447_v63 }
 0x56e   :  { %1732 = vmatprep.subr.bf16.mxu0 %v1454_v0  ;;  %1814 = vmatprep.subr.bf16.mxu1 %v1456_v1 }
 0x571   :  { %1733 = vmatpush1.bf16.msra.mxu0 %v1453_v2  ;;  %1815 = vmatpush1.bf16.msra.mxu1 %v1455_v4 }
 0x572   :  { %1734 = vmatprep.subr.bf16.mxu0 %v1462_v5  ;;  %1816 = vmatprep.subr.bf16.mxu1 %v1464_v7 }
 0x575   :  { %1735 = vmatpush1.bf16.msra.mxu0 %v1461_v8  ;;  %1817 = vmatpush1.bf16.msra.mxu1 %v1463_v43 }
 0x576   :  { %1736 = vmatprep.subr.bf16.mxu0 %v1470_v49  ;;  %1818 = vmatprep.subr.bf16.mxu1 %v1472_v10 }
 0x579   :  { %1737 = vmatpush1.bf16.msra.mxu0 %v1469_v11  ;;  %1819 = vmatpush1.bf16.msra.mxu1 %v1471_v47 }
 0x57a   :  { %1738 = vmatprep.subr.bf16.mxu0 %v1478_v52  ;;  %1820 = vmatprep.subr.bf16.mxu1 %v1480_v13 }
 0x57d   :  { %1739 = vmatpush1.bf16.msra.mxu0 %v1477_v15  ;;  %1821 = vmatpush1.bf16.msra.mxu1 %v1479_v18 }
 0x57e   :  { %1740 = vmatprep.subr.bf16.mxu0 %v1486_v19  ;;  %1822 = vmatprep.subr.bf16.mxu1 %v1488_v20 }
 0x581   :  { %1741 = vmatpush1.bf16.msra.mxu0 %v1485_v45  ;;  %1823 = vmatpush1.bf16.msra.mxu1 %v1487_v21 }
 0x582   :  { %1742 = vmatprep.subr.bf16.mxu0 %v1494_v51  ;;  %1824 = vmatprep.subr.bf16.mxu1 %v1496_v22 }
 0x585   :  { %1743 = vmatpush1.bf16.msra.mxu0 %v1493_v23  ;;  %1825 = vmatpush1.bf16.msra.mxu1 %v1495_v24 }
 0x586   :  { %1744 = vmatprep.subr.bf16.mxu0 %v1502_v25  ;;  %1826 = vmatprep.subr.bf16.mxu1 %v1504_v26 }
 0x589   :  { %1745 = vmatpush1.bf16.msra.mxu0 %v1501_v29  ;;  %1827 = vmatpush1.bf16.msra.mxu1 %v1503_v30 }
 0x58c   :  { %1747 = vmatmul.mubr.bf16.vlgmr.msra.gmra.mrb[8].mxu0 %v4547_v14  ;;  %1829 = vmatmul.mubr.bf16.vlgmr.msra.gmra.mrb[16].mxu1 %v4547_v14 }
 0x5df   :  { %v1584_v31 = vpop.f32.mrb[4].mxu0  ;;  %v1666_v32 = vpop.f32.mrb[12].mxu1 }
 0x5e0   :  { %v1837_v16 = vrot.slane %v1584_v31, 4  ;;  %v1849_v33 = vrot.slane %v1666_v32, 4  ;;  %v1586_v34 = vpop.f32.mrb[5].mxu0  ;;  %v1668_v35 = vpop.f32.mrb[13].mxu1 }
 0x5e1   :  { %v1843_v3 = vrot.slane %v1586_v34, 4  ;;  %v1855_v36 = vrot.slane %v1668_v35, 4  ;;  %v1588_v37 = vpop.f32.mrb[6].mxu0  ;;  %v1670_v38 = vpop.f32.mrb[14].mxu1 }
 0x5e2   :  { %v1838_v39 = vadd.f32 %v1837_v16, %v1584_v31  ;;  %v1850_v9 = vadd.f32 %v1849_v33, %v1666_v32  ;;  %v1589_v40 = vpop.f32.mrb[7].mxu0  ;;  %v1671_v41 = vpop.f32.mrb[15].mxu1 }
 0x5e3   :  { %v1844_v42 = vadd.f32 %v1843_v3, %v1586_v34  ;;  %v1856_v44 = vadd.f32 %v1855_v36, %v1668_v35 }
 0x5e4   :  { %v1839_v50 = vrot.slane %v1838_v39, 2  ;;  %v1851_v17 = vrot.slane %v1850_v9, 2 }
 0x5e5   :  { %v1845_v53 = vrot.slane %v1844_v42, 2  ;;  %v1857_v14 = vrot.slane %v1856_v44, 2 }
 0x5e6   :  { %v1840_v54 = vadd.f32 %v1839_v50, %v1838_v39  ;;  %v1852_v55 = vadd.f32 %v1851_v17, %v1850_v9 }
 0x5e7   :  { %v1846_v56 = vadd.f32 %v1845_v53, %v1844_v42  ;;  %v1858_v57 = vadd.f32 %v1857_v14, %v1856_v44 }
 0x5e8   :  { %v1841_v58 = vrot.slane %v1840_v54, 1  ;;  %v1853_v59 = vrot.slane %v1852_v55, 1 }
 0x5e9   :  { %v1847_v60 = vrot.slane %v1846_v56, 1  ;;  %v1859_v61 = vrot.slane %v1858_v57, 1 }
 0x5ea   :  { %v1842_v62 = vadd.f32 %v1841_v58, %v1840_v54  ;;  %v1854_v63 = vadd.f32 %v1853_v59, %v1852_v55 }
 0x5eb   :  { %v1848_v0 = vadd.f32 %v1847_v60, %v1846_v56  ;;  %v1860_v1 = vadd.f32 %v1859_v61, %v1858_v57 }
 0x5ec   :  { %v1885_v2 = vmul.f32 0.125, %v1842_v62  ;;  %v1887_v4 = vmul.f32 0.125, %v1854_v63 }
 0x5ed   :  { %v1886_v5 = vmul.f32 0.125, %v1848_v0  ;;  %v1888_v7 = vmul.f32 0.125, %v1860_v1 }
 0x5ee   :  { %v4559_v8 = vsub.f32 %v1584_v31, %v1885_v2  ;;  %v4561_v43 = vsub.f32 %v1666_v32, %v1887_v4 }
 0x5ef   :  { %v4563_v49 = vsub.f32 %v1586_v34, %v1886_v5  ;;  %v4565_v10 = vsub.f32 %v1668_v35, %v1888_v7 }
 0x5f0   :  { %v1901_v11 = vmul.f32 %v4559_v8, %v4559_v8  ;;  %v1903_v47 = vmul.f32 %v4561_v43, %v4561_v43 }
 0x5f1   :  { %v1902_v52 = vmul.f32 %v4563_v49, %v4563_v49  ;;  %v1904_v13 = vmul.f32 %v4565_v10, %v4565_v10 }
 0x5f2   :  { %v1909_v15 = vrot.slane %v1901_v11, 4  ;;  %v1921_v18 = vrot.slane %v1903_v47, 4 }
 0x5f3   :  { %v1915_v19 = vrot.slane %v1902_v52, 4  ;;  %v1927_v20 = vrot.slane %v1904_v13, 4 }
 0x5f4   :  { %v1910_v45 = vadd.f32 %v1909_v15, %v1901_v11  ;;  %v1922_v21 = vadd.f32 %v1921_v18, %v1903_v47 }
 0x5f5   :  { %v1916_v51 = vadd.f32 %v1915_v19, %v1902_v52  ;;  %v1928_v22 = vadd.f32 %v1927_v20, %v1904_v13 }
 0x5f6   :  { %v1911_v23 = vrot.slane %v1910_v45, 2  ;;  %v1923_v24 = vrot.slane %v1922_v21, 2 }
 0x5f7   :  { %v1917_v25 = vrot.slane %v1916_v51, 2  ;;  %v1929_v26 = vrot.slane %v1928_v22, 2 }
 0x5f8   :  { %v1912_v29 = vadd.f32 %v1911_v23, %v1910_v45  ;;  %v1924_v30 = vadd.f32 %v1923_v24, %v1922_v21 }
 0x5f9   :  { %v1918_v31 = vadd.f32 %v1917_v25, %v1916_v51  ;;  %v1930_v32 = vadd.f32 %v1929_v26, %v1928_v22 }
 0x5fa   :  { %v1913_v16 = vrot.slane %v1912_v29, 1  ;;  %v1925_v33 = vrot.slane %v1924_v30, 1 }
 0x5fb   :  { %v1919_v34 = vrot.slane %v1918_v31, 1  ;;  %v1931_v35 = vrot.slane %v1930_v32, 1 }
 0x5fc   :  { %v1914_v3 = vadd.f32 %v1913_v16, %v1912_v29  ;;  %v1926_v36 = vadd.f32 %v1925_v33, %v1924_v30 }
 0x5fd   :  { %v1920_v37 = vadd.f32 %v1919_v34, %v1918_v31  ;;  %v1932_v38 = vadd.f32 %v1931_v35, %v1930_v32 }
 0x5fe   :  { %v1957_v39 = vmul.f32 0.125, %v1914_v3  ;;  %v1959_v9 = vmul.f32 0.125, %v1926_v36 }
 0x5ff   :  { %v1958_v40 = vmul.f32 0.125, %v1920_v37  ;;  %v1960_v41 = vmul.f32 0.125, %v1932_v38 }
 0x600   :  { %v1966_v42 = vadd.f32 1e-05, %v1957_v39  ;;  %v1968_v44 = vadd.f32 1e-05, %v1959_v9 }
 0x601   :  { %v1967_v50 = vadd.f32 1e-05, %v1958_v40  ;;  %v1969_v17 = vadd.f32 1e-05, %v1960_v41 }
 0x602   :  { %3810 = vrsqrt.f32 %v1966_v42 }
 0x603   :  { %3812 = vrsqrt.f32 %v1968_v44 }
 0x604   :  { %3814 = vrsqrt.f32 %v1967_v50 }
 0x605   :  { %3816 = vrsqrt.f32 %v1969_v17 }
 0x60c   :  { %v3811_v53 = vpop.eup %3810 }
 0x60d   :  { %v3813_v14 = vpop.eup %3812 }
 0x60e   :  { %v3815_v54 = vpop.eup %3814 }
 0x60f   :  { %v3817_v55 = vpop.eup %3816  ;;  %v1990_v56 = vcombine.low %v3811_v53, %v3815_v54 }
 0x610   :  { %v1991_v57 = vcombine.low %v3813_v14, %v3817_v55 }
 0x611   :  { %v4576_v58 = vrot.slane %v1990_v56, %v4475_v6 }
 0x612   :  { %v4579_v59 = vrot.slane %v1991_v57, %v4475_v6 }
 0x614   :  { %v2022_v60 = vcombine.low %v4576_v58, %v4579_v59 }
 0x65f   :  { %v1748_v61 = vpop.f32.mrb[8].mxu0  ;;  %v1830_v62 = vpop.f32.mrb[16].mxu1 }
 0x660   :  { %v1861_v63 = vrot.slane %v1748_v61, 4  ;;  %v1873_v0 = vrot.slane %v1830_v62, 4  ;;  %v1750_v1 = vpop.f32.mrb[9].mxu0  ;;  %v1832_v2 = vpop.f32.mrb[17].mxu1 }
 0x661   :  { %v1867_v4 = vrot.slane %v1750_v1, 4  ;;  %v1879_v5 = vrot.slane %v1832_v2, 4  ;;  %v1752_v7 = vpop.f32.mrb[10].mxu0  ;;  %v1834_v11 = vpop.f32.mrb[18].mxu1 }
 0x662   :  { %v1862_v47 = vadd.f32 %v1861_v63, %v1748_v61  ;;  %v1874_v52 = vadd.f32 %v1873_v0, %v1830_v62  ;;  %v1753_v13 = vpop.f32.mrb[11].mxu0  ;;  %v1835_v15 = vpop.f32.mrb[19].mxu1 }
 0x663   :  { %v1868_v18 = vadd.f32 %v1867_v4, %v1750_v1  ;;  %v1880_v19 = vadd.f32 %v1879_v5, %v1832_v2 }
 0x664   :  { %v1863_v20 = vrot.slane %v1862_v47, 2  ;;  %v1875_v45 = vrot.slane %v1874_v52, 2 }
 0x665   :  { %v1869_v21 = vrot.slane %v1868_v18, 2  ;;  %v1881_v51 = vrot.slane %v1880_v19, 2 }
 0x666   :  { %v1864_v22 = vadd.f32 %v1863_v20, %v1862_v47  ;;  %v1876_v23 = vadd.f32 %v1875_v45, %v1874_v52 }
 0x667   :  { %v1870_v24 = vadd.f32 %v1869_v21, %v1868_v18  ;;  %v1882_v25 = vadd.f32 %v1881_v51, %v1880_v19 }
 0x668   :  { %v1865_v26 = vrot.slane %v1864_v22, 1  ;;  %v1877_v29 = vrot.slane %v1876_v23, 1 }
 0x669   :  { %v1871_v30 = vrot.slane %v1870_v24, 1  ;;  %v1883_v31 = vrot.slane %v1882_v25, 1 }
 0x66a   :  { %v1866_v32 = vadd.f32 %v1865_v26, %v1864_v22  ;;  %v1878_v16 = vadd.f32 %v1877_v29, %v1876_v23 }
 0x66b   :  { %v1872_v33 = vadd.f32 %v1871_v30, %v1870_v24  ;;  %v1884_v34 = vadd.f32 %v1883_v31, %v1882_v25 }
 0x66c   :  { %v1889_v35 = vmul.f32 0.125, %v1866_v32  ;;  %v1891_v3 = vmul.f32 0.125, %v1878_v16 }
 0x66d   :  { %v1890_v36 = vmul.f32 0.125, %v1872_v33  ;;  %v1892_v37 = vmul.f32 0.125, %v1884_v34 }
 0x66e   :  { %v4583_v38 = vsub.f32 %v1748_v61, %v1889_v35  ;;  %v4585_v39 = vsub.f32 %v1830_v62, %v1891_v3 }
 0x66f   :  { %v4587_v9 = vsub.f32 %v1750_v1, %v1890_v36  ;;  %v4589_v40 = vsub.f32 %v1832_v2, %v1892_v37  ;;  %v2030_v36 = vrot.slane %v2022_v60, %v4475_v6 }
 0x670   :  { %v1905_v41 = vmul.f32 %v4583_v38, %v4583_v38  ;;  %v1907_v42 = vmul.f32 %v4585_v39, %v4585_v39 }
 0x671   :  { %v1906_v44 = vmul.f32 %v4587_v9, %v4587_v9  ;;  %v1908_v50 = vmul.f32 %v4589_v40, %v4589_v40 }
 0x672   :  { %v1933_v17 = vrot.slane %v1905_v41, 4  ;;  %v1945_v53 = vrot.slane %v1907_v42, 4 }
 0x673   :  { %v1939_v14 = vrot.slane %v1906_v44, 4  ;;  %v1951_v54 = vrot.slane %v1908_v50, 4 }
 0x674   :  { %v1934_v55 = vadd.f32 %v1933_v17, %v1905_v41  ;;  %v1946_v56 = vadd.f32 %v1945_v53, %v1907_v42  ;;  %v2090_v41 = vld [vmem:[#allocation23] sm:$0xff]  ;;  %v1965_v42 = vld [vmem:[#allocation22] sm:$0xff]  ;;  %v4610_v17 = vsub.s32 5, %v4468_v46  ;;  %v4613_v53 = vsub.s32 6, %v4468_v46 }
 0x675   :  { %v1940_v57 = vadd.f32 %v1939_v14, %v1906_v44  ;;  %v1952_v61 = vadd.f32 %v1951_v54, %v1908_v50  ;;  %v4607_v50 = vsub.s32 4, %v4468_v46  ;;  %v2072_v14 = vsub.s32 7, %v4468_v46 }
 0x676   :  { %v1935_v62 = vrot.slane %v1934_v55, 2  ;;  %v1947_v63 = vrot.slane %v1946_v56, 2  ;;  %v2095_v54 = vrot.slane %v2090_v41, %v4471_v48  ;;  %v2099_v59 = vrot.slane %v2090_v41, %v4480_v12 }
 0x677   :  { %v1941_v0 = vrot.slane %v1940_v57, 2  ;;  %v1953_v1 = vrot.slane %v1952_v61, 2  ;;  %v2107_v60 = vrot.slane %v2090_v41, %v4505_v28 }
 0x678   :  { %v1936_v2 = vadd.f32 %v1935_v62, %v1934_v55  ;;  %v1948_v4 = vadd.f32 %v1947_v63, %v1946_v56  ;;  %v2111_v55 = vrot.slane %v2090_v41, %v4607_v50  ;;  %v2115_v56 = vrot.slane %v2090_v41, %v4610_v17 }
 0x679   :  { %v1942_v5 = vadd.f32 %v1941_v0, %v1940_v57  ;;  %v1954_v7 = vadd.f32 %v1953_v1, %v1952_v61  ;;  %v2119_v57 = vrot.slane %v2090_v41, %v4613_v53  ;;  %v2123_v61 = vrot.slane %v2090_v41, %v2072_v14 }
 0x67a   :  { %v1937_v11 = vrot.slane %v1936_v2, 1  ;;  %v1949_v47 = vrot.slane %v1948_v4, 1 }
 0x67b   :  { %v1943_v52 = vrot.slane %v1942_v5, 1  ;;  %v1955_v13 = vrot.slane %v1954_v7, 1 }
 0x67c   :  { %v1938_v15 = vadd.f32 %v1937_v11, %v1936_v2  ;;  %v1950_v18 = vadd.f32 %v1949_v47, %v1948_v4 }
 0x67d   :  { %v1944_v19 = vadd.f32 %v1943_v52, %v1942_v5  ;;  %v1956_v20 = vadd.f32 %v1955_v13, %v1954_v7 }
 0x67e   :  { %v1961_v45 = vmul.f32 0.125, %v1938_v15  ;;  %v1963_v21 = vmul.f32 0.125, %v1950_v18 }
 0x67f   :  { %v1962_v51 = vmul.f32 0.125, %v1944_v19  ;;  %v1964_v22 = vmul.f32 0.125, %v1956_v20 }
 0x680   :  { %v1970_v23 = vadd.f32 1e-05, %v1961_v45  ;;  %v1972_v24 = vadd.f32 1e-05, %v1963_v21 }
 0x681   :  { %v1971_v25 = vadd.f32 1e-05, %v1962_v51  ;;  %v1973_v26 = vadd.f32 1e-05, %v1964_v22 }
 0x682   :  { %3818 = vrsqrt.f32 %v1970_v23 }
 0x683   :  { %3820 = vrsqrt.f32 %v1972_v24 }
 0x684   :  { %3822 = vrsqrt.f32 %v1971_v25 }
 0x685   :  { %3824 = vrsqrt.f32 %v1973_v26 }
 0x68c   :  { %v3819_v29 = vpop.eup %3818 }
 0x68d   :  { %v3821_v30 = vpop.eup %3820 }
 0x68e   :  { %v3823_v31 = vpop.eup %3822 }
 0x68f   :  { %v3825_v32 = vpop.eup %3824  ;;  %v1992_v16 = vcombine.low %v3819_v29, %v3823_v31 }
 0x690   :  { %v1993_v33 = vcombine.low %v3821_v30, %v3825_v32 }
 0x691   :  { %v2014_v34 = vrot.slane %v1992_v16, %v4475_v6 }
 0x692   :  { %v2021_v35 = vrot.slane %v1993_v33, %v4475_v6 }
 0x694   :  { %v2023_v3 = vcombine.low %v2014_v34, %v2021_v35 }
 0x696   :  { %v2037_v37 = vrot.slane %v2023_v3, %v4475_v6  ;;  %v2103_v6 = vrot.slane %v2090_v41, %v4502_v27 }
 0x698   :  { %v2038_v44 = vcombine.low %v2030_v36, %v2037_v37 }
 0x69a   :  { %v2040_v58 = vmul.f32 %v2038_v44, %v1965_v42 }
 0x69c   :  { %v2045_v62 = vrot.slane %v2040_v58, %v4471_v48  ;;  %v2049_v46 = vrot.slane %v2040_v58, %v4480_v12  ;;  %v2053_v63 = vrot.slane %v2040_v58, %v4502_v27  ;;  %v2057_v0 = vrot.slane %v2040_v58, %v4505_v28 }
 0x69d   :  { %v2061_v1 = vrot.slane %v2040_v58, %v4607_v50  ;;  %v2065_v2 = vrot.slane %v2040_v58, %v4610_v17  ;;  %v2069_v4 = vrot.slane %v2040_v58, %v4613_v53  ;;  %v2073_v5 = vrot.slane %v2040_v58, %v2072_v14 }
 0x69e   :  { %v2082_v7 = vmul.f32 %v2045_v62, %v4559_v8  ;;  %v2083_v11 = vmul.f32 %v2049_v46, %v4563_v49  ;;  %v2084_v47 = vmul.f32 %v2053_v63, %v4561_v43  ;;  %v2085_v52 = vmul.f32 %v2057_v0, %v4565_v10 }
 0x69f   :  { %v2086_v13 = vmul.f32 %v2061_v1, %v4583_v38  ;;  %v2087_v15 = vmul.f32 %v2065_v2, %v4587_v9  ;;  %v2088_v18 = vmul.f32 %v2069_v4, %v4585_v39  ;;  %v2089_v19 = vmul.f32 %v2073_v5, %v4589_v40 }
 0x6a0   :  { %v4638_v20 = vadd.f32 %v2095_v54, %v2082_v7  ;;  %v2133_v45 = vadd.f32 %v2099_v59, %v2083_v11  ;;  %v4640_v21 = vadd.f32 %v2103_v6, %v2084_v47  ;;  %v4642_v8 = vadd.f32 %v2107_v60, %v2085_v52 }
 0x6a1   :  { %v4644_v49 = vadd.f32 %v2111_v55, %v2086_v13  ;;  %v4646_v43 = vadd.f32 %v2115_v56, %v2087_v15  ;;  %v4648_v10 = vadd.f32 %v2119_v57, %v2088_v18  ;;  %v4650_v38 = vadd.f32 %v2123_v61, %v2089_v19 }
 0x6a2   :  { %v2140_v9 = vmax.f32 %v4638_v20, 0.0  ;;  %v2141_v39 = vmax.f32 %v2133_v45, 0.0  ;;  %v2142_v40 = vmax.f32 %v4640_v21, 0.0  ;;  %v2143_v51 = vmax.f32 %v4642_v8, 0.0 }
 0x6a3   :  { %v2144_v22 = vmax.f32 %v4644_v49, 0.0  ;;  %v2145_v23 = vmax.f32 %v4646_v43, 0.0  ;;  %v2146_v24 = vmax.f32 %v4648_v10, 0.0  ;;  %v2147_v25 = vmax.f32 %v4650_v38, 0.0 }
 0x6a4   :  { %4178 = dma.done.wait [#allocation4 + $0x1], 57344 }
 0x6a5   :  { %4179 = vsyncadd [#allocation4 + $0x1], 4294909952  ;;  %v4659_v26 = vpack.c.bf16 %v2141_v39, %v2141_v39  ;;  %v2165_v29 = vld [vmem:[#allocation3 + $0x8] sm:$0xff]  ;;  %v2167_v30 = vld [vmem:[#allocation3 + $0x18] sm:$0xff]  ;;  %s4221_s13 = smov [#allocation26]  }
 0x6a6   :  { %v2164_v31 = vld [vmem:[#allocation3] sm:$0xff]  ;;  %2649 = vmatprep.subr.bf16.mxu0 %v2165_v29  ;;  %2813 = vmatprep.subr.bf16.mxu1 %v2167_v30  ;;  %v2166_v32 = vld [vmem:[#allocation3 + $0x10] sm:$0xff]  ;;  %v2171_v34 = vld [vmem:[#allocation3 + $0x38] sm:$0xff]  ;;  %s3349_s30 = sshll.u32 %s4221_s13, 4  ;;  %s3350_s30 = int_to_ptr.vmem [resolvable:$true] %s3349_s30 }
 0x6a7   :  { %2681 = vmatprep.mubr.bf16.mxu0 %v4659_v26  ;;  %2845 = vmatprep.mubr.bf16.mxu1 %v4659_v26  ;;  %v2172_v16 = vld [vmem:[#allocation3 + $0x40] sm:$0xff]  ;;  %v2174_v33 = vld [vmem:[#allocation3 + $0x50] sm:$0xff]  ;;  %v2173_v35 = vld [vmem:[#allocation3 + $0x48] sm:$0xff]  ;;  %s4140_s16 = scalar_lea.vmem %s3350_s30, 896  ;;  %p4145_p7 = scmp.lt.s32.totalorder %s3350_s30, %s3350_s30 }
 0x6a8   :  { %2650 = vmatpush1.bf16.msra.mxu0 %v2164_v31  ;;  %2814 = vmatpush1.bf16.msra.mxu1 %v2166_v32  ;;  %v2179_v3 = vld [vmem:[#allocation3 + $0x78] sm:$0xff]  ;;  %v2181_v36 = vld [vmem:[#allocation3 + $0x88] sm:$0xff]  ;;  %v2178_v37 = vld [vmem:[#allocation3 + $0x70] sm:$0xff]  ;;  %p4141_p6 = scmp.ne.s32.totalorder %s3350_s30, %s4140_s16  ;;  %p4146_p8 = scmp.lt.s32.totalorder %s4140_s16, %s4140_s16 }
 0x6a9   :  { %2651 = vmatprep.subr.bf16.mxu0 %v2172_v16  ;;  %2815 = vmatprep.subr.bf16.mxu1 %v2174_v33  ;;  %v2180_v41 = vld [vmem:[#allocation3 + $0x80] sm:$0xff]  ;;  %v2186_v42 = vld [vmem:[#allocation3 + $0xb0] sm:$0xff]  ;;  %v2185_v14 = vld [vmem:[#allocation3 + $0xa8] sm:$0xff] }
 0x6aa   :  { %v2188_v44 = vld [vmem:[#allocation3 + $0xc0] sm:$0xff]  ;;  %v2187_v54 = vld [vmem:[#allocation3 + $0xb8] sm:$0xff]  ;;  %v2193_v58 = vld [vmem:[#allocation3 + $0xe8] sm:$0xff]  ;;  %p4147_p9 = por %p4146_p8, %p4145_p7 }
 0x6ab   :  { %v2195_v59 = vld [vmem:[#allocation3 + $0xf8] sm:$0xff]  ;;  %v2192_v6 = vld [vmem:[#allocation3 + $0xe0] sm:$0xff]  ;;  %v2194_v60 = vld [vmem:[#allocation3 + $0xf0] sm:$0xff] }
 0x6ac   :  { %2652 = vmatpush1.bf16.msra.mxu0 %v2171_v34  ;;  %2816 = vmatpush1.bf16.msra.mxu1 %v2173_v35  ;;  %v2200_v55 = vld [vmem:[#allocation3 + $0x120] sm:$0xff]  ;;  %v2202_v56 = vld [vmem:[#allocation3 + $0x130] sm:$0xff]  ;;  %v2199_v57 = vld [vmem:[#allocation3 + $0x118] sm:$0xff]  ;;  %p4148_p10 = pnand %p4147_p9, %p4141_p6 }
 0x6ad   :  { %2653 = vmatprep.subr.bf16.mxu0 %v2179_v3  ;;  %2817 = vmatprep.subr.bf16.mxu1 %v2181_v36  ;;  %v2201_v61 = vld [vmem:[#allocation3 + $0x128] sm:$0xff]  ;;  %v2207_v62 = vld [vmem:[#allocation3 + $0x158] sm:$0xff]  ;;  %v2206_v63 = vld [vmem:[#allocation3 + $0x150] sm:$0xff] }
 0x6ae   :  { %v2209_v46 = vld [vmem:[#allocation3 + $0x168] sm:$0xff]  ;;  %v2208_v0 = vld [vmem:[#allocation3 + $0x160] sm:$0xff]  ;;  %v2214_v1 = vld [vmem:[#allocation3 + $0x190] sm:$0xff] }
 0x6af   :  { %v2216_v2 = vld [vmem:[#allocation3 + $0x1a0] sm:$0xff]  ;;  %v2213_v4 = vld [vmem:[#allocation3 + $0x188] sm:$0xff]  ;;  %v2215_v5 = vld [vmem:[#allocation3 + $0x198] sm:$0xff] }
 0x6b0   :  { %2654 = vmatpush1.bf16.msra.mxu0 %v2178_v37  ;;  %2818 = vmatpush1.bf16.msra.mxu1 %v2180_v41  ;;  %v2221_v7 = vld [vmem:[#allocation3 + $0x1c8] sm:$0xff]  ;;  %v2223_v11 = vld [vmem:[#allocation3 + $0x1d8] sm:$0xff]  ;;  %v2220_v47 = vld [vmem:[#allocation3 + $0x1c0] sm:$0xff] }
 0x6b1   :  { %2655 = vmatprep.subr.bf16.mxu0 %v2186_v42  ;;  %2819 = vmatprep.subr.bf16.mxu1 %v2188_v44  ;;  %v2222_v52 = vld [vmem:[#allocation3 + $0x1d0] sm:$0xff]  ;;  %v2228_v13 = vld [vmem:[#allocation3 + $0x200] sm:$0xff]  ;;  %v2227_v18 = vld [vmem:[#allocation3 + $0x1f8] sm:$0xff] }
 0x6b2   :  { %v2230_v15 = vld [vmem:[#allocation3 + $0x210] sm:$0xff]  ;;  %v2229_v19 = vld [vmem:[#allocation3 + $0x208] sm:$0xff]  ;;  %v2235_v45 = vld [vmem:[#allocation3 + $0x238] sm:$0xff] }
 0x6b3   :  { %v2237_v39 = vld [vmem:[#allocation3 + $0x248] sm:$0xff]  ;;  %v2234_v29 = vld [vmem:[#allocation3 + $0x230] sm:$0xff]  ;;  %v2236_v30 = vld [vmem:[#allocation3 + $0x240] sm:$0xff] }
 0x6b4   :  { %2656 = vmatpush1.bf16.msra.mxu0 %v2185_v14  ;;  %2820 = vmatpush1.bf16.msra.mxu1 %v2187_v54  ;;  %v2242_v31 = vld [vmem:[#allocation3 + $0x270] sm:$0xff]  ;;  %v2244_v32 = vld [vmem:[#allocation3 + $0x280] sm:$0xff]  ;;  %v2241_v16 = vld [vmem:[#allocation3 + $0x268] sm:$0xff] }
 0x6b5   :  { %2657 = vmatprep.subr.bf16.mxu0 %v2193_v58  ;;  %2821 = vmatprep.subr.bf16.mxu1 %v2195_v59  ;;  %v2243_v33 = vld [vmem:[#allocation3 + $0x278] sm:$0xff]  ;;  %v2249_v34 = vld [vmem:[#allocation3 + $0x2a8] sm:$0xff]  ;;  %v2248_v3 = vld [vmem:[#allocation3 + $0x2a0] sm:$0xff] }
 0x6b6   :  { %v2251_v35 = vld [vmem:[#allocation3 + $0x2b8] sm:$0xff]  ;;  %v2250_v36 = vld [vmem:[#allocation3 + $0x2b0] sm:$0xff]  ;;  %v2256_v37 = vld [vmem:[#allocation3 + $0x2e0] sm:$0xff] }
 0x6b7   :  { %v2258_v41 = vld [vmem:[#allocation3 + $0x2f0] sm:$0xff]  ;;  %v2255_v42 = vld [vmem:[#allocation3 + $0x2d8] sm:$0xff]  ;;  %v2257_v44 = vld [vmem:[#allocation3 + $0x2e8] sm:$0xff] }
 0x6b8   :  { %2658 = vmatpush1.bf16.msra.mxu0 %v2192_v6  ;;  %2822 = vmatpush1.bf16.msra.mxu1 %v2194_v60  ;;  %v2263_v14 = vld [vmem:[#allocation3 + $0x318] sm:$0xff]  ;;  %v2265_v54 = vld [vmem:[#allocation3 + $0x328] sm:$0xff]  ;;  %v2262_v58 = vld [vmem:[#allocation3 + $0x310] sm:$0xff] }
 0x6b9   :  { %2659 = vmatprep.subr.bf16.mxu0 %v2200_v55  ;;  %2823 = vmatprep.subr.bf16.mxu1 %v2202_v56  ;;  %v2264_v59 = vld [vmem:[#allocation3 + $0x320] sm:$0xff]  ;;  %v2270_v6 = vld [vmem:[#allocation3 + $0x350] sm:$0xff]  ;;  %v2269_v55 = vld [vmem:[#allocation3 + $0x348] sm:$0xff] }
 0x6ba   :  { %v2272_v60 = vld [vmem:[#allocation3 + $0x360] sm:$0xff]  ;;  %v2271_v56 = vld [vmem:[#allocation3 + $0x358] sm:$0xff]  ;;  %v2290_v8 = vld [vmem:[#allocation3 + $0x3f0] sm:$0xff] }
 0x6bb   :  { %v2283_v20 = vld [vmem:[#allocation3 + $0x3b8] sm:$0xff]  ;;  %v2402_v43 = vld [vmem:[#allocation3 + $0x770] sm:$0xff]  ;;  %v2177_v10 = vld [vmem:[#allocation3 + $0x68] sm:$0xff] }
 0x6bc   :  { %2660 = vmatpush1.bf16.msra.mxu0 %v2199_v57  ;;  %2824 = vmatpush1.bf16.msra.mxu1 %v2201_v61  ;;  %v2277_v57 = vld [vmem:[#allocation3 + $0x388] sm:$0xff]  ;;  %v2279_v61 = vld [vmem:[#allocation3 + $0x398] sm:$0xff]  ;;  %v2514_v38 = vld [vmem:[#allocation3 + $0xaf0] sm:$0xff] }
 0x6bd   :  { %2661 = vmatprep.subr.bf16.mxu0 %v2207_v62  ;;  %2825 = vmatprep.subr.bf16.mxu1 %v2209_v46  ;;  %v4666_v62 = vpack.c.bf16 %v2140_v9, %v2140_v9  ;;  %v2276_v46 = vld [vmem:[#allocation3 + $0x380] sm:$0xff]  ;;  %v2285_v9 = vld [vmem:[#allocation3 + $0x3c8] sm:$0xff]  ;;  %v2395_v21 = vld [vmem:[#allocation3 + $0x738] sm:$0xff] }
 0x6be   :  { %v2507_v49 = vld [vmem:[#allocation3 + $0xab8] sm:$0xff] }
 0x6c0   :  { %2662 = vmatpush1.bf16.msra.mxu0 %v2206_v63  ;;  %2826 = vmatpush1.bf16.msra.mxu1 %v2208_v0  ;;  %v2278_v63 = vld [vmem:[#allocation3 + $0x390] sm:$0xff]  ;;  %v2284_v0 = vld [vmem:[#allocation3 + $0x3c0] sm:$0xff] }
 0x6c1   :  { %2663 = vmatprep.subr.bf16.mxu0 %v2214_v1  ;;  %2827 = vmatprep.subr.bf16.mxu1 %v2216_v2  ;;  %v2286_v1 = vld [vmem:[#allocation3 + $0x3d0] sm:$0xff]  ;;  %v4671_v2 = vpack.c.bf16 %v2143_v51, %v2143_v51  ;;  %v2292_v51 = vld [vmem:[#allocation3 + $0x400] sm:$0xff] }
 0x6c4   :  { %2664 = vmatpush1.bf16.msra.mxu0 %v2213_v4  ;;  %2828 = vmatpush1.bf16.msra.mxu1 %v2215_v5  ;;  %v2291_v4 = vld [vmem:[#allocation3 + $0x3f8] sm:$0xff]  ;;  %v2293_v5 = vld [vmem:[#allocation3 + $0x408] sm:$0xff] }
 0x6c5   :  { %2665 = vmatprep.subr.bf16.mxu0 %v2221_v7  ;;  %2829 = vmatprep.subr.bf16.mxu1 %v2223_v11  ;;  %v2298_v7 = vld [vmem:[#allocation3 + $0x430] sm:$0xff]  ;;  %v2300_v11 = vld [vmem:[#allocation3 + $0x440] sm:$0xff] }
 0x6c8   :  { %2666 = vmatpush1.bf16.msra.mxu0 %v2220_v47  ;;  %2830 = vmatpush1.bf16.msra.mxu1 %v2222_v52  ;;  %v2297_v47 = vld [vmem:[#allocation3 + $0x428] sm:$0xff]  ;;  %v2299_v52 = vld [vmem:[#allocation3 + $0x438] sm:$0xff] }
 0x6c9   :  { %2667 = vmatprep.subr.bf16.mxu0 %v2228_v13  ;;  %2831 = vmatprep.subr.bf16.mxu1 %v2230_v15  ;;  %v2305_v13 = vld [vmem:[#allocation3 + $0x468] sm:$0xff]  ;;  %v2307_v15 = vld [vmem:[#allocation3 + $0x478] sm:$0xff] }
 0x6cc   :  { %2668 = vmatpush1.bf16.msra.mxu0 %v2227_v18  ;;  %2832 = vmatpush1.bf16.msra.mxu1 %v2229_v19  ;;  %v2304_v18 = vld [vmem:[#allocation3 + $0x460] sm:$0xff]  ;;  %v2306_v19 = vld [vmem:[#allocation3 + $0x470] sm:$0xff] }
 0x6cd   :  { %2669 = vmatprep.subr.bf16.mxu0 %v2235_v45  ;;  %2833 = vmatprep.subr.bf16.mxu1 %v2237_v39  ;;  %v2312_v45 = vld [vmem:[#allocation3 + $0x4a0] sm:$0xff]  ;;  %v2314_v39 = vld [vmem:[#allocation3 + $0x4b0] sm:$0xff] }
 0x6d0   :  { %2670 = vmatpush1.bf16.msra.mxu0 %v2234_v29  ;;  %2834 = vmatpush1.bf16.msra.mxu1 %v2236_v30  ;;  %v2311_v29 = vld [vmem:[#allocation3 + $0x498] sm:$0xff]  ;;  %v2313_v30 = vld [vmem:[#allocation3 + $0x4a8] sm:$0xff] }
 0x6d1   :  { %2671 = vmatprep.subr.bf16.mxu0 %v2242_v31  ;;  %2835 = vmatprep.subr.bf16.mxu1 %v2244_v32  ;;  %v2319_v31 = vld [vmem:[#allocation3 + $0x4d8] sm:$0xff]  ;;  %v2321_v32 = vld [vmem:[#allocation3 + $0x4e8] sm:$0xff] }
 0x6d4   :  { %2672 = vmatpush1.bf16.msra.mxu0 %v2241_v16  ;;  %2836 = vmatpush1.bf16.msra.mxu1 %v2243_v33  ;;  %v2318_v16 = vld [vmem:[#allocation3 + $0x4d0] sm:$0xff]  ;;  %v2320_v33 = vld [vmem:[#allocation3 + $0x4e0] sm:$0xff] }
 0x6d5   :  { %2673 = vmatprep.subr.bf16.mxu0 %v2249_v34  ;;  %2837 = vmatprep.subr.bf16.mxu1 %v2251_v35  ;;  %v2326_v34 = vld [vmem:[#allocation3 + $0x510] sm:$0xff]  ;;  %v2328_v35 = vld [vmem:[#allocation3 + $0x520] sm:$0xff] }
 0x6d8   :  { %2674 = vmatpush1.bf16.msra.mxu0 %v2248_v3  ;;  %2838 = vmatpush1.bf16.msra.mxu1 %v2250_v36  ;;  %v2325_v3 = vld [vmem:[#allocation3 + $0x508] sm:$0xff]  ;;  %v2327_v36 = vld [vmem:[#allocation3 + $0x518] sm:$0xff] }
 0x6d9   :  { %2675 = vmatprep.subr.bf16.mxu0 %v2256_v37  ;;  %2839 = vmatprep.subr.bf16.mxu1 %v2258_v41  ;;  %v2333_v37 = vld [vmem:[#allocation3 + $0x548] sm:$0xff]  ;;  %v2335_v41 = vld [vmem:[#allocation3 + $0x558] sm:$0xff] }
 0x6dc   :  { %2676 = vmatpush1.bf16.msra.mxu0 %v2255_v42  ;;  %2840 = vmatpush1.bf16.msra.mxu1 %v2257_v44  ;;  %v2332_v42 = vld [vmem:[#allocation3 + $0x540] sm:$0xff]  ;;  %v2334_v44 = vld [vmem:[#allocation3 + $0x550] sm:$0xff] }
 0x6dd   :  { %2677 = vmatprep.subr.bf16.mxu0 %v2263_v14  ;;  %2841 = vmatprep.subr.bf16.mxu1 %v2265_v54  ;;  %v2340_v14 = vld [vmem:[#allocation3 + $0x580] sm:$0xff]  ;;  %v2342_v54 = vld [vmem:[#allocation3 + $0x590] sm:$0xff] }
 0x6e0   :  { %2678 = vmatpush1.bf16.msra.mxu0 %v2262_v58  ;;  %2842 = vmatpush1.bf16.msra.mxu1 %v2264_v59  ;;  %v2339_v58 = vld [vmem:[#allocation3 + $0x578] sm:$0xff]  ;;  %v2341_v59 = vld [vmem:[#allocation3 + $0x588] sm:$0xff] }
 0x6e1   :  { %2679 = vmatprep.subr.bf16.mxu0 %v2270_v6  ;;  %2843 = vmatprep.subr.bf16.mxu1 %v2272_v60  ;;  %v2347_v6 = vld [vmem:[#allocation3 + $0x5b8] sm:$0xff]  ;;  %v2349_v60 = vld [vmem:[#allocation3 + $0x5c8] sm:$0xff] }
 0x6e4   :  { %2680 = vmatpush1.bf16.msra.mxu0 %v2269_v55  ;;  %2844 = vmatpush1.bf16.msra.mxu1 %v2271_v56  ;;  %v2346_v55 = vld [vmem:[#allocation3 + $0x5b0] sm:$0xff]  ;;  %v2348_v56 = vld [vmem:[#allocation3 + $0x5c0] sm:$0xff] }
 0x6e5   :  { %2690 = vmatprep.subr.bf16.mxu0 %v2277_v57  ;;  %2854 = vmatprep.subr.bf16.mxu1 %v2279_v61  ;;  %v2354_v57 = vld [vmem:[#allocation3 + $0x5f0] sm:$0xff]  ;;  %v2356_v61 = vld [vmem:[#allocation3 + $0x600] sm:$0xff] }
 0x6e7   :  { %2682 = vmatmul.mubr.bf16.vlgmr.msra.gmra.mrb[12].mxu0 %v4666_v62  ;;  %2846 = vmatmul.mubr.bf16.vlgmr.msra.gmra.mrb[20].mxu1 %v4666_v62 }
 0x6e8   :  { %2691 = vmatpush1.bf16.msra.mxu0 %v2276_v46  ;;  %2855 = vmatpush1.bf16.msra.mxu1 %v2278_v63  ;;  %v2353_v46 = vld [vmem:[#allocation3 + $0x5e8] sm:$0xff]  ;;  %v2355_v63 = vld [vmem:[#allocation3 + $0x5f8] sm:$0xff] }
 0x6e9   :  { %2692 = vmatprep.subr.bf16.mxu0 %v2284_v0  ;;  %2856 = vmatprep.subr.bf16.mxu1 %v2286_v1  ;;  %v2361_v0 = vld [vmem:[#allocation3 + $0x628] sm:$0xff]  ;;  %v2363_v1 = vld [vmem:[#allocation3 + $0x638] sm:$0xff] }
 0x6ea   :  { %2722 = vmatprep.mubr.bf16.mxu0 %v4671_v2  ;;  %2886 = vmatprep.mubr.bf16.mxu1 %v4671_v2 }
 0x6ec   :  { %2693 = vmatpush1.bf16.msra.mxu0 %v2283_v20  ;;  %2857 = vmatpush1.bf16.msra.mxu1 %v2285_v9  ;;  %v2360_v20 = vld [vmem:[#allocation3 + $0x620] sm:$0xff]  ;;  %v2362_v9 = vld [vmem:[#allocation3 + $0x630] sm:$0xff] }
 0x6ed   :  { %2694 = vmatprep.subr.bf16.mxu0 %v2291_v4  ;;  %2858 = vmatprep.subr.bf16.mxu1 %v2293_v5  ;;  %v2368_v4 = vld [vmem:[#allocation3 + $0x660] sm:$0xff]  ;;  %v2370_v5 = vld [vmem:[#allocation3 + $0x670] sm:$0xff] }
 0x6f0   :  { %2695 = vmatpush1.bf16.msra.mxu0 %v2290_v8  ;;  %2859 = vmatpush1.bf16.msra.mxu1 %v2292_v51  ;;  %v2367_v8 = vld [vmem:[#allocation3 + $0x658] sm:$0xff]  ;;  %v2369_v51 = vld [vmem:[#allocation3 + $0x668] sm:$0xff] }
 0x6f1   :  { %2696 = vmatprep.subr.bf16.mxu0 %v2298_v7  ;;  %2860 = vmatprep.subr.bf16.mxu1 %v2300_v11  ;;  %v2375_v7 = vld [vmem:[#allocation3 + $0x698] sm:$0xff]  ;;  %v2377_v11 = vld [vmem:[#allocation3 + $0x6a8] sm:$0xff] }
 0x6f4   :  { %2697 = vmatpush1.bf16.msra.mxu0 %v2297_v47  ;;  %2861 = vmatpush1.bf16.msra.mxu1 %v2299_v52  ;;  %v2374_v47 = vld [vmem:[#allocation3 + $0x690] sm:$0xff]  ;;  %v2376_v52 = vld [vmem:[#allocation3 + $0x6a0] sm:$0xff] }
 0x6f5   :  { %2698 = vmatprep.subr.bf16.mxu0 %v2305_v13  ;;  %2862 = vmatprep.subr.bf16.mxu1 %v2307_v15  ;;  %v2382_v13 = vld [vmem:[#allocation3 + $0x6d0] sm:$0xff]  ;;  %v2384_v15 = vld [vmem:[#allocation3 + $0x6e0] sm:$0xff] }
 0x6f8   :  { %2699 = vmatpush1.bf16.msra.mxu0 %v2304_v18  ;;  %2863 = vmatpush1.bf16.msra.mxu1 %v2306_v19  ;;  %v2381_v18 = vld [vmem:[#allocation3 + $0x6c8] sm:$0xff]  ;;  %v2383_v19 = vld [vmem:[#allocation3 + $0x6d8] sm:$0xff] }
 0x6f9   :  { %2700 = vmatprep.subr.bf16.mxu0 %v2312_v45  ;;  %2864 = vmatprep.subr.bf16.mxu1 %v2314_v39  ;;  %v2389_v45 = vld [vmem:[#allocation3 + $0x708] sm:$0xff]  ;;  %v2391_v39 = vld [vmem:[#allocation3 + $0x718] sm:$0xff] }
 0x6fc   :  { %2701 = vmatpush1.bf16.msra.mxu0 %v2311_v29  ;;  %2865 = vmatpush1.bf16.msra.mxu1 %v2313_v30  ;;  %v4680_v29 = vpack.c.bf16 %v2142_v40, %v2142_v40  ;;  %v2388_v30 = vld [vmem:[#allocation3 + $0x700] sm:$0xff]  ;;  %v2397_v40 = vld [vmem:[#allocation3 + $0x748] sm:$0xff] }
 0x6fd   :  { %2702 = vmatprep.subr.bf16.mxu0 %v2319_v31  ;;  %2866 = vmatprep.subr.bf16.mxu1 %v2321_v32  ;;  %v2390_v31 = vld [vmem:[#allocation3 + $0x710] sm:$0xff]  ;;  %v2396_v32 = vld [vmem:[#allocation3 + $0x740] sm:$0xff] }
 0x700   :  { %2703 = vmatpush1.bf16.msra.mxu0 %v2318_v16  ;;  %2867 = vmatpush1.bf16.msra.mxu1 %v2320_v33  ;;  %v2398_v16 = vld [vmem:[#allocation3 + $0x750] sm:$0xff]  ;;  %v4685_v33 = vpack.c.bf16 %v2145_v23, %v2145_v23  ;;  %v2404_v23 = vld [vmem:[#allocation3 + $0x780] sm:$0xff] }
 0x701   :  { %2704 = vmatprep.subr.bf16.mxu0 %v2326_v34  ;;  %2868 = vmatprep.subr.bf16.mxu1 %v2328_v35  ;;  %v2403_v34 = vld [vmem:[#allocation3 + $0x778] sm:$0xff]  ;;  %v2405_v35 = vld [vmem:[#allocation3 + $0x788] sm:$0xff] }
 0x704   :  { %2705 = vmatpush1.bf16.msra.mxu0 %v2325_v3  ;;  %2869 = vmatpush1.bf16.msra.mxu1 %v2327_v36  ;;  %v2410_v3 = vld [vmem:[#allocation3 + $0x7b0] sm:$0xff]  ;;  %v2412_v36 = vld [vmem:[#allocation3 + $0x7c0] sm:$0xff] }
 0x705   :  { %2706 = vmatprep.subr.bf16.mxu0 %v2333_v37  ;;  %2870 = vmatprep.subr.bf16.mxu1 %v2335_v41  ;;  %v2409_v37 = vld [vmem:[#allocation3 + $0x7a8] sm:$0xff]  ;;  %v2411_v41 = vld [vmem:[#allocation3 + $0x7b8] sm:$0xff] }
 0x708   :  { %2707 = vmatpush1.bf16.msra.mxu0 %v2332_v42  ;;  %2871 = vmatpush1.bf16.msra.mxu1 %v2334_v44  ;;  %v2417_v42 = vld [vmem:[#allocation3 + $0x7e8] sm:$0xff]  ;;  %v2419_v44 = vld [vmem:[#allocation3 + $0x7f8] sm:$0xff] }
 0x709   :  { %2708 = vmatprep.subr.bf16.mxu0 %v2340_v14  ;;  %2872 = vmatprep.subr.bf16.mxu1 %v2342_v54  ;;  %v2416_v14 = vld [vmem:[#allocation3 + $0x7e0] sm:$0xff]  ;;  %v2418_v54 = vld [vmem:[#allocation3 + $0x7f0] sm:$0xff] }
 0x70c   :  { %2709 = vmatpush1.bf16.msra.mxu0 %v2339_v58  ;;  %2873 = vmatpush1.bf16.msra.mxu1 %v2341_v59  ;;  %v2424_v58 = vld [vmem:[#allocation3 + $0x820] sm:$0xff]  ;;  %v2426_v59 = vld [vmem:[#allocation3 + $0x830] sm:$0xff] }
 0x70d   :  { %2710 = vmatprep.subr.bf16.mxu0 %v2347_v6  ;;  %2874 = vmatprep.subr.bf16.mxu1 %v2349_v60  ;;  %v2423_v6 = vld [vmem:[#allocation3 + $0x818] sm:$0xff]  ;;  %v2425_v60 = vld [vmem:[#allocation3 + $0x828] sm:$0xff] }
 0x710   :  { %2711 = vmatpush1.bf16.msra.mxu0 %v2346_v55  ;;  %2875 = vmatpush1.bf16.msra.mxu1 %v2348_v56  ;;  %v2431_v55 = vld [vmem:[#allocation3 + $0x858] sm:$0xff]  ;;  %v2433_v56 = vld [vmem:[#allocation3 + $0x868] sm:$0xff] }
 0x711   :  { %2712 = vmatprep.subr.bf16.mxu0 %v2354_v57  ;;  %2876 = vmatprep.subr.bf16.mxu1 %v2356_v61  ;;  %v2430_v57 = vld [vmem:[#allocation3 + $0x850] sm:$0xff]  ;;  %v2432_v61 = vld [vmem:[#allocation3 + $0x860] sm:$0xff] }
 0x714   :  { %2713 = vmatpush1.bf16.msra.mxu0 %v2353_v46  ;;  %2877 = vmatpush1.bf16.msra.mxu1 %v2355_v63  ;;  %v2438_v46 = vld [vmem:[#allocation3 + $0x890] sm:$0xff]  ;;  %v2440_v63 = vld [vmem:[#allocation3 + $0x8a0] sm:$0xff] }
 0x715   :  { %2714 = vmatprep.subr.bf16.mxu0 %v2361_v0  ;;  %2878 = vmatprep.subr.bf16.mxu1 %v2363_v1  ;;  %v2437_v0 = vld [vmem:[#allocation3 + $0x888] sm:$0xff]  ;;  %v2439_v1 = vld [vmem:[#allocation3 + $0x898] sm:$0xff] }
 0x718   :  { %2715 = vmatpush1.bf16.msra.mxu0 %v2360_v20  ;;  %2879 = vmatpush1.bf16.msra.mxu1 %v2362_v9  ;;  %v2445_v20 = vld [vmem:[#allocation3 + $0x8c8] sm:$0xff]  ;;  %v2447_v9 = vld [vmem:[#allocation3 + $0x8d8] sm:$0xff] }
 0x719   :  { %2716 = vmatprep.subr.bf16.mxu0 %v2368_v4  ;;  %2880 = vmatprep.subr.bf16.mxu1 %v2370_v5  ;;  %v2444_v4 = vld [vmem:[#allocation3 + $0x8c0] sm:$0xff]  ;;  %v2446_v5 = vld [vmem:[#allocation3 + $0x8d0] sm:$0xff] }
 0x71c   :  { %2717 = vmatpush1.bf16.msra.mxu0 %v2367_v8  ;;  %2881 = vmatpush1.bf16.msra.mxu1 %v2369_v51  ;;  %v2452_v8 = vld [vmem:[#allocation3 + $0x900] sm:$0xff]  ;;  %v2454_v51 = vld [vmem:[#allocation3 + $0x910] sm:$0xff] }
 0x71d   :  { %2718 = vmatprep.subr.bf16.mxu0 %v2375_v7  ;;  %2882 = vmatprep.subr.bf16.mxu1 %v2377_v11  ;;  %v2451_v7 = vld [vmem:[#allocation3 + $0x8f8] sm:$0xff]  ;;  %v2453_v11 = vld [vmem:[#allocation3 + $0x908] sm:$0xff] }
 0x720   :  { %2719 = vmatpush1.bf16.msra.mxu0 %v2374_v47  ;;  %2883 = vmatpush1.bf16.msra.mxu1 %v2376_v52  ;;  %v2459_v47 = vld [vmem:[#allocation3 + $0x938] sm:$0xff]  ;;  %v2461_v52 = vld [vmem:[#allocation3 + $0x948] sm:$0xff] }
 0x721   :  { %2720 = vmatprep.subr.bf16.mxu0 %v2382_v13  ;;  %2884 = vmatprep.subr.bf16.mxu1 %v2384_v15  ;;  %v2458_v13 = vld [vmem:[#allocation3 + $0x930] sm:$0xff]  ;;  %v2460_v15 = vld [vmem:[#allocation3 + $0x940] sm:$0xff] }
 0x724   :  { %2721 = vmatpush1.bf16.msra.mxu0 %v2381_v18  ;;  %2885 = vmatpush1.bf16.msra.mxu1 %v2383_v19  ;;  %v2466_v18 = vld [vmem:[#allocation3 + $0x970] sm:$0xff]  ;;  %v2468_v19 = vld [vmem:[#allocation3 + $0x980] sm:$0xff] }
 0x725   :  { %2731 = vmatprep.subr.bf16.mxu0 %v2389_v45  ;;  %2895 = vmatprep.subr.bf16.mxu1 %v2391_v39  ;;  %v2465_v45 = vld [vmem:[#allocation3 + $0x968] sm:$0xff]  ;;  %v2467_v39 = vld [vmem:[#allocation3 + $0x978] sm:$0xff] }
 0x727   :  { %2723 = vmatmul.mubr.bf16.vlgmr.msra.gmra.mrb[12].mxu0 %v4680_v29  ;;  %2887 = vmatmul.mubr.bf16.vlgmr.msra.gmra.mrb[20].mxu1 %v4680_v29 }
 0x728   :  { %2732 = vmatpush1.bf16.msra.mxu0 %v2388_v30  ;;  %2896 = vmatpush1.bf16.msra.mxu1 %v2390_v31  ;;  %v2473_v30 = vld [vmem:[#allocation3 + $0x9a8] sm:$0xff]  ;;  %v2475_v31 = vld [vmem:[#allocation3 + $0x9b8] sm:$0xff] }
 0x729   :  { %2733 = vmatprep.subr.bf16.mxu0 %v2396_v32  ;;  %2897 = vmatprep.subr.bf16.mxu1 %v2398_v16  ;;  %v2472_v32 = vld [vmem:[#allocation3 + $0x9a0] sm:$0xff]  ;;  %v2474_v16 = vld [vmem:[#allocation3 + $0x9b0] sm:$0xff] }
 0x72a   :  { %2763 = vmatprep.mubr.bf16.mxu0 %v4685_v33  ;;  %2927 = vmatprep.mubr.bf16.mxu1 %v4685_v33 }
 0x72c   :  { %2734 = vmatpush1.bf16.msra.mxu0 %v2395_v21  ;;  %2898 = vmatpush1.bf16.msra.mxu1 %v2397_v40  ;;  %v2480_v21 = vld [vmem:[#allocation3 + $0x9e0] sm:$0xff]  ;;  %v2482_v40 = vld [vmem:[#allocation3 + $0x9f0] sm:$0xff] }
 0x72d   :  { %2735 = vmatprep.subr.bf16.mxu0 %v2403_v34  ;;  %2899 = vmatprep.subr.bf16.mxu1 %v2405_v35  ;;  %v2479_v34 = vld [vmem:[#allocation3 + $0x9d8] sm:$0xff]  ;;  %v2481_v35 = vld [vmem:[#allocation3 + $0x9e8] sm:$0xff] }
 0x730   :  { %2736 = vmatpush1.bf16.msra.mxu0 %v2402_v43  ;;  %2900 = vmatpush1.bf16.msra.mxu1 %v2404_v23  ;;  %v2487_v43 = vld [vmem:[#allocation3 + $0xa18] sm:$0xff]  ;;  %v2489_v23 = vld [vmem:[#allocation3 + $0xa28] sm:$0xff] }
 0x731   :  { %2737 = vmatprep.subr.bf16.mxu0 %v2410_v3  ;;  %2901 = vmatprep.subr.bf16.mxu1 %v2412_v36  ;;  %v2486_v3 = vld [vmem:[#allocation3 + $0xa10] sm:$0xff]  ;;  %v2488_v36 = vld [vmem:[#allocation3 + $0xa20] sm:$0xff] }
 0x734   :  { %2738 = vmatpush1.bf16.msra.mxu0 %v2409_v37  ;;  %2902 = vmatpush1.bf16.msra.mxu1 %v2411_v41  ;;  %v2494_v37 = vld [vmem:[#allocation3 + $0xa50] sm:$0xff]  ;;  %v2496_v41 = vld [vmem:[#allocation3 + $0xa60] sm:$0xff] }
 0x735   :  { %2739 = vmatprep.subr.bf16.mxu0 %v2417_v42  ;;  %2903 = vmatprep.subr.bf16.mxu1 %v2419_v44  ;;  %v2493_v42 = vld [vmem:[#allocation3 + $0xa48] sm:$0xff]  ;;  %v2495_v44 = vld [vmem:[#allocation3 + $0xa58] sm:$0xff] }
 0x738   :  { %2740 = vmatpush1.bf16.msra.mxu0 %v2416_v14  ;;  %2904 = vmatpush1.bf16.msra.mxu1 %v2418_v54  ;;  %v2501_v14 = vld [vmem:[#allocation3 + $0xa88] sm:$0xff]  ;;  %v2503_v54 = vld [vmem:[#allocation3 + $0xa98] sm:$0xff] }
 0x739   :  { %2741 = vmatprep.subr.bf16.mxu0 %v2424_v58  ;;  %2905 = vmatprep.subr.bf16.mxu1 %v2426_v59  ;;  %v4694_v58 = vpack.c.bf16 %v2144_v22, %v2144_v22  ;;  %v2500_v59 = vld [vmem:[#allocation3 + $0xa80] sm:$0xff]  ;;  %v2509_v22 = vld [vmem:[#allocation3 + $0xac8] sm:$0xff] }
 0x73c   :  { %2742 = vmatpush1.bf16.msra.mxu0 %v2423_v6  ;;  %2906 = vmatpush1.bf16.msra.mxu1 %v2425_v60  ;;  %v2502_v6 = vld [vmem:[#allocation3 + $0xa90] sm:$0xff]  ;;  %v2508_v60 = vld [vmem:[#allocation3 + $0xac0] sm:$0xff] }
 0x73d   :  { %2743 = vmatprep.subr.bf16.mxu0 %v2431_v55  ;;  %2907 = vmatprep.subr.bf16.mxu1 %v2433_v56  ;;  %v2510_v55 = vld [vmem:[#allocation3 + $0xad0] sm:$0xff]  ;;  %v4699_v56 = vpack.c.bf16 %v2147_v25, %v2147_v25  ;;  %v2516_v25 = vld [vmem:[#allocation3 + $0xb00] sm:$0xff] }
 0x740   :  { %2744 = vmatpush1.bf16.msra.mxu0 %v2430_v57  ;;  %2908 = vmatpush1.bf16.msra.mxu1 %v2432_v61  ;;  %v2515_v57 = vld [vmem:[#allocation3 + $0xaf8] sm:$0xff]  ;;  %v2517_v61 = vld [vmem:[#allocation3 + $0xb08] sm:$0xff] }
 0x741   :  { %2745 = vmatprep.subr.bf16.mxu0 %v2438_v46  ;;  %2909 = vmatprep.subr.bf16.mxu1 %v2440_v63  ;;  %v2522_v46 = vld [vmem:[#allocation3 + $0xb30] sm:$0xff]  ;;  %v2524_v63 = vld [vmem:[#allocation3 + $0xb40] sm:$0xff] }
 0x744   :  { %2746 = vmatpush1.bf16.msra.mxu0 %v2437_v0  ;;  %2910 = vmatpush1.bf16.msra.mxu1 %v2439_v1  ;;  %v2521_v0 = vld [vmem:[#allocation3 + $0xb28] sm:$0xff]  ;;  %v2523_v1 = vld [vmem:[#allocation3 + $0xb38] sm:$0xff] }
 0x745   :  { %2747 = vmatprep.subr.bf16.mxu0 %v2445_v20  ;;  %2911 = vmatprep.subr.bf16.mxu1 %v2447_v9  ;;  %v2529_v20 = vld [vmem:[#allocation3 + $0xb68] sm:$0xff]  ;;  %v2531_v9 = vld [vmem:[#allocation3 + $0xb78] sm:$0xff] }
 0x748   :  { %2748 = vmatpush1.bf16.msra.mxu0 %v2444_v4  ;;  %2912 = vmatpush1.bf16.msra.mxu1 %v2446_v5  ;;  %v2528_v4 = vld [vmem:[#allocation3 + $0xb60] sm:$0xff]  ;;  %v2530_v5 = vld [vmem:[#allocation3 + $0xb70] sm:$0xff] }
 0x749   :  { %2749 = vmatprep.subr.bf16.mxu0 %v2452_v8  ;;  %2913 = vmatprep.subr.bf16.mxu1 %v2454_v51  ;;  %v2536_v8 = vld [vmem:[#allocation3 + $0xba0] sm:$0xff]  ;;  %v2538_v51 = vld [vmem:[#allocation3 + $0xbb0] sm:$0xff] }
 0x74c   :  { %2750 = vmatpush1.bf16.msra.mxu0 %v2451_v7  ;;  %2914 = vmatpush1.bf16.msra.mxu1 %v2453_v11  ;;  %v2535_v7 = vld [vmem:[#allocation3 + $0xb98] sm:$0xff]  ;;  %v2537_v11 = vld [vmem:[#allocation3 + $0xba8] sm:$0xff] }
 0x74d   :  { %2751 = vmatprep.subr.bf16.mxu0 %v2459_v47  ;;  %2915 = vmatprep.subr.bf16.mxu1 %v2461_v52  ;;  %v2543_v47 = vld [vmem:[#allocation3 + $0xbd8] sm:$0xff]  ;;  %v2545_v52 = vld [vmem:[#allocation3 + $0xbe8] sm:$0xff] }
 0x750   :  { %2752 = vmatpush1.bf16.msra.mxu0 %v2458_v13  ;;  %2916 = vmatpush1.bf16.msra.mxu1 %v2460_v15  ;;  %v2542_v13 = vld [vmem:[#allocation3 + $0xbd0] sm:$0xff]  ;;  %v2544_v15 = vld [vmem:[#allocation3 + $0xbe0] sm:$0xff] }
 0x751   :  { %2753 = vmatprep.subr.bf16.mxu0 %v2466_v18  ;;  %2917 = vmatprep.subr.bf16.mxu1 %v2468_v19  ;;  %v2550_v18 = vld [vmem:[#allocation3 + $0xc10] sm:$0xff]  ;;  %v2552_v19 = vld [vmem:[#allocation3 + $0xc20] sm:$0xff] }
 0x754   :  { %2754 = vmatpush1.bf16.msra.mxu0 %v2465_v45  ;;  %2918 = vmatpush1.bf16.msra.mxu1 %v2467_v39  ;;  %v2549_v45 = vld [vmem:[#allocation3 + $0xc08] sm:$0xff]  ;;  %v2551_v39 = vld [vmem:[#allocation3 + $0xc18] sm:$0xff] }
 0x755   :  { %2755 = vmatprep.subr.bf16.mxu0 %v2473_v30  ;;  %2919 = vmatprep.subr.bf16.mxu1 %v2475_v31  ;;  %v2557_v30 = vld [vmem:[#allocation3 + $0xc48] sm:$0xff]  ;;  %v2559_v31 = vld [vmem:[#allocation3 + $0xc58] sm:$0xff] }
 0x758   :  { %2756 = vmatpush1.bf16.msra.mxu0 %v2472_v32  ;;  %2920 = vmatpush1.bf16.msra.mxu1 %v2474_v16  ;;  %v2556_v32 = vld [vmem:[#allocation3 + $0xc40] sm:$0xff]  ;;  %v2558_v16 = vld [vmem:[#allocation3 + $0xc50] sm:$0xff] }
 0x759   :  { %2757 = vmatprep.subr.bf16.mxu0 %v2480_v21  ;;  %2921 = vmatprep.subr.bf16.mxu1 %v2482_v40  ;;  %v2564_v21 = vld [vmem:[#allocation3 + $0xc80] sm:$0xff]  ;;  %v2566_v40 = vld [vmem:[#allocation3 + $0xc90] sm:$0xff] }
 0x75c   :  { %2758 = vmatpush1.bf16.msra.mxu0 %v2479_v34  ;;  %2922 = vmatpush1.bf16.msra.mxu1 %v2481_v35  ;;  %v2563_v34 = vld [vmem:[#allocation3 + $0xc78] sm:$0xff]  ;;  %v2565_v35 = vld [vmem:[#allocation3 + $0xc88] sm:$0xff] }
 0x75d   :  { %2759 = vmatprep.subr.bf16.mxu0 %v2487_v43  ;;  %2923 = vmatprep.subr.bf16.mxu1 %v2489_v23  ;;  %v2571_v43 = vld [vmem:[#allocation3 + $0xcb8] sm:$0xff]  ;;  %v2573_v23 = vld [vmem:[#allocation3 + $0xcc8] sm:$0xff] }
 0x760   :  { %2760 = vmatpush1.bf16.msra.mxu0 %v2486_v3  ;;  %2924 = vmatpush1.bf16.msra.mxu1 %v2488_v36  ;;  %v2570_v3 = vld [vmem:[#allocation3 + $0xcb0] sm:$0xff]  ;;  %v2572_v36 = vld [vmem:[#allocation3 + $0xcc0] sm:$0xff] }
 0x761   :  { %2761 = vmatprep.subr.bf16.mxu0 %v2494_v37  ;;  %2925 = vmatprep.subr.bf16.mxu1 %v2496_v41  ;;  %v2578_v37 = vld [vmem:[#allocation3 + $0xcf0] sm:$0xff]  ;;  %v2580_v41 = vld [vmem:[#allocation3 + $0xd00] sm:$0xff] }
 0x764   :  { %2762 = vmatpush1.bf16.msra.mxu0 %v2493_v42  ;;  %2926 = vmatpush1.bf16.msra.mxu1 %v2495_v44  ;;  %v2577_v42 = vld [vmem:[#allocation3 + $0xce8] sm:$0xff]  ;;  %v2579_v44 = vld [vmem:[#allocation3 + $0xcf8] sm:$0xff] }
 0x765   :  { %2772 = vmatprep.subr.bf16.mxu0 %v2501_v14  ;;  %2936 = vmatprep.subr.bf16.mxu1 %v2503_v54  ;;  %v2585_v14 = vld [vmem:[#allocation3 + $0xd28] sm:$0xff]  ;;  %v2587_v54 = vld [vmem:[#allocation3 + $0xd38] sm:$0xff] }
 0x767   :  { %2764 = vmatmul.mubr.bf16.vlgmr.msra.gmra.mrb[12].mxu0 %v4694_v58  ;;  %2928 = vmatmul.mubr.bf16.vlgmr.msra.gmra.mrb[20].mxu1 %v4694_v58 }
 0x768   :  { %2773 = vmatpush1.bf16.msra.mxu0 %v2500_v59  ;;  %2937 = vmatpush1.bf16.msra.mxu1 %v2502_v6  ;;  %v2584_v59 = vld [vmem:[#allocation3 + $0xd20] sm:$0xff]  ;;  %v2586_v6 = vld [vmem:[#allocation3 + $0xd30] sm:$0xff] }
 0x769   :  { %2774 = vmatprep.subr.bf16.mxu0 %v2508_v60  ;;  %2938 = vmatprep.subr.bf16.mxu1 %v2510_v55  ;;  %v2592_v60 = vld [vmem:[#allocation3 + $0xd60] sm:$0xff]  ;;  %v2594_v55 = vld [vmem:[#allocation3 + $0xd70] sm:$0xff] }
 0x76a   :  { %2804 = vmatprep.mubr.bf16.mxu0 %v4699_v56  ;;  %2968 = vmatprep.mubr.bf16.mxu1 %v4699_v56 }
 0x76c   :  { %2775 = vmatpush1.bf16.msra.mxu0 %v2507_v49  ;;  %2939 = vmatpush1.bf16.msra.mxu1 %v2509_v22  ;;  %v2591_v49 = vld [vmem:[#allocation3 + $0xd58] sm:$0xff]  ;;  %v2593_v22 = vld [vmem:[#allocation3 + $0xd68] sm:$0xff] }
 0x76d   :  { %2776 = vmatprep.subr.bf16.mxu0 %v2515_v57  ;;  %2940 = vmatprep.subr.bf16.mxu1 %v2517_v61  ;;  %v2599_v57 = vld [vmem:[#allocation3 + $0xd98] sm:$0xff]  ;;  %v2601_v61 = vld [vmem:[#allocation3 + $0xda8] sm:$0xff] }
 0x770   :  { %2777 = vmatpush1.bf16.msra.mxu0 %v2514_v38  ;;  %2941 = vmatpush1.bf16.msra.mxu1 %v2516_v25  ;;  %v2598_v38 = vld [vmem:[#allocation3 + $0xd90] sm:$0xff]  ;;  %v2600_v25 = vld [vmem:[#allocation3 + $0xda0] sm:$0xff] }
 0x771   :  { %2778 = vmatprep.subr.bf16.mxu0 %v2522_v46  ;;  %2942 = vmatprep.subr.bf16.mxu1 %v2524_v63  ;;  %v2606_v46 = vld [vmem:[#allocation3 + $0xdd0] sm:$0xff]  ;;  %v2608_v63 = vld [vmem:[#allocation3 + $0xde0] sm:$0xff] }
 0x774   :  { %2779 = vmatpush1.bf16.msra.mxu0 %v2521_v0  ;;  %2943 = vmatpush1.bf16.msra.mxu1 %v2523_v1  ;;  %v2605_v0 = vld [vmem:[#allocation3 + $0xdc8] sm:$0xff]  ;;  %v2607_v1 = vld [vmem:[#allocation3 + $0xdd8] sm:$0xff] }
 0x775   :  { %2780 = vmatprep.subr.bf16.mxu0 %v2529_v20  ;;  %2944 = vmatprep.subr.bf16.mxu1 %v2531_v9  ;;  %v2169_v20 = vld [vmem:[#allocation3 + $0x28] sm:$0xff]  ;;  %v2226_v9 = vld [vmem:[#allocation3 + $0x1f0] sm:$0xff] }
 0x778   :  { %2781 = vmatpush1.bf16.msra.mxu0 %v2528_v4  ;;  %2945 = vmatpush1.bf16.msra.mxu1 %v2530_v5  ;;  %v4708_v4 = vpack.c.bf16 %v2146_v24, %v2146_v24  ;;  %v2168_v5 = vld [vmem:[#allocation3 + $0x20] sm:$0xff]  ;;  %v2183_v24 = vld [vmem:[#allocation3 + $0x98] sm:$0xff] }
 0x779   :  { %2782 = vmatprep.subr.bf16.mxu0 %v2536_v8  ;;  %2946 = vmatprep.subr.bf16.mxu1 %v2538_v51  ;;  %v2170_v8 = vld [vmem:[#allocation3 + $0x30] sm:$0xff]  ;;  %v2176_v51 = vld [vmem:[#allocation3 + $0x60] sm:$0xff] }
 0x77c   :  { %2783 = vmatpush1.bf16.msra.mxu0 %v2535_v7  ;;  %2947 = vmatpush1.bf16.msra.mxu1 %v2537_v11  ;;  %v2233_v7 = vld [vmem:[#allocation3 + $0x228] sm:$0xff]  ;;  %v2175_v11 = vld [vmem:[#allocation3 + $0x58] sm:$0xff] }
 0x77d   :  { %2784 = vmatprep.subr.bf16.mxu0 %v2543_v47  ;;  %2948 = vmatprep.subr.bf16.mxu1 %v2545_v52  ;;  %v2240_v47 = vld [vmem:[#allocation3 + $0x260] sm:$0xff]  ;;  %v2182_v52 = vld [vmem:[#allocation3 + $0x90] sm:$0xff] }
 0x780   :  { %2785 = vmatpush1.bf16.msra.mxu0 %v2542_v13  ;;  %2949 = vmatpush1.bf16.msra.mxu1 %v2544_v15  ;;  %v2184_v13 = vld [vmem:[#allocation3 + $0xa0] sm:$0xff]  ;;  %v2190_v15 = vld [vmem:[#allocation3 + $0xd0] sm:$0xff] }
 0x781   :  { %2786 = vmatprep.subr.bf16.mxu0 %v2550_v18  ;;  %2950 = vmatprep.subr.bf16.mxu1 %v2552_v19  ;;  %v2247_v18 = vld [vmem:[#allocation3 + $0x298] sm:$0xff]  ;;  %v2189_v19 = vld [vmem:[#allocation3 + $0xc8] sm:$0xff] }
 0x784   :  { %2787 = vmatpush1.bf16.msra.mxu0 %v2549_v45  ;;  %2951 = vmatpush1.bf16.msra.mxu1 %v2551_v39  ;;  %v2191_v45 = vld [vmem:[#allocation3 + $0xd8] sm:$0xff]  ;;  %v2197_v39 = vld [vmem:[#allocation3 + $0x108] sm:$0xff] }
 0x785   :  { %2788 = vmatprep.subr.bf16.mxu0 %v2557_v30  ;;  %2952 = vmatprep.subr.bf16.mxu1 %v2559_v31  ;;  %v2254_v30 = vld [vmem:[#allocation3 + $0x2d0] sm:$0xff] }
 0x786   :  { %v2198_v31 = vld [vmem:[#allocation3 + $0x110] sm:$0xff] }
 0x788   :  { %2789 = vmatpush1.bf16.msra.mxu0 %v2556_v32  ;;  %2953 = vmatpush1.bf16.msra.mxu1 %v2558_v16  ;;  %v2204_v32 = vld [vmem:[#allocation3 + $0x140] sm:$0xff]  ;;  %v2261_v16 = vld [vmem:[#allocation3 + $0x308] sm:$0xff] }
 0x789   :  { %2790 = vmatprep.subr.bf16.mxu0 %v2564_v21  ;;  %2954 = vmatprep.subr.bf16.mxu1 %v2566_v40  ;;  %v2203_v21 = vld [vmem:[#allocation3 + $0x138] sm:$0xff]  ;;  %v2205_v40 = vld [vmem:[#allocation3 + $0x148] sm:$0xff] }
 0x78c   :  { %2791 = vmatpush1.bf16.msra.mxu0 %v2563_v34  ;;  %2955 = vmatpush1.bf16.msra.mxu1 %v2565_v35  ;;  %v2211_v34 = vld [vmem:[#allocation3 + $0x178] sm:$0xff]  ;;  %v2268_v35 = vld [vmem:[#allocation3 + $0x340] sm:$0xff] }
 0x78d   :  { %2792 = vmatprep.subr.bf16.mxu0 %v2571_v43  ;;  %2956 = vmatprep.subr.bf16.mxu1 %v2573_v23  ;;  %v2210_v43 = vld [vmem:[#allocation3 + $0x170] sm:$0xff]  ;;  %v2212_v23 = vld [vmem:[#allocation3 + $0x180] sm:$0xff] }
 0x790   :  { %2793 = vmatpush1.bf16.msra.mxu0 %v2570_v3  ;;  %2957 = vmatpush1.bf16.msra.mxu1 %v2572_v36  ;;  %v2218_v3 = vld [vmem:[#allocation3 + $0x1b0] sm:$0xff]  ;;  %v2275_v36 = vld [vmem:[#allocation3 + $0x378] sm:$0xff] }
 0x791   :  { %2794 = vmatprep.subr.bf16.mxu0 %v2578_v37  ;;  %2958 = vmatprep.subr.bf16.mxu1 %v2580_v41  ;;  %v2217_v37 = vld [vmem:[#allocation3 + $0x1a8] sm:$0xff]  ;;  %v2219_v41 = vld [vmem:[#allocation3 + $0x1b8] sm:$0xff] }
 0x794   :  { %2795 = vmatpush1.bf16.msra.mxu0 %v2577_v42  ;;  %2959 = vmatpush1.bf16.msra.mxu1 %v2579_v44  ;;  %v2225_v42 = vld [vmem:[#allocation3 + $0x1e8] sm:$0xff]  ;;  %v2338_v44 = vld [vmem:[#allocation3 + $0x570] sm:$0xff] }
 0x795   :  { %2796 = vmatprep.subr.bf16.mxu0 %v2585_v14  ;;  %2960 = vmatprep.subr.bf16.mxu1 %v2587_v54  ;;  %v2224_v14 = vld [vmem:[#allocation3 + $0x1e0] sm:$0xff]  ;;  %v2282_v54 = vld [vmem:[#allocation3 + $0x3b0] sm:$0xff] }
 0x798   :  { %2797 = vmatpush1.bf16.msra.mxu0 %v2584_v59  ;;  %2961 = vmatpush1.bf16.msra.mxu1 %v2586_v6  ;;  %v2232_v59 = vld [vmem:[#allocation3 + $0x220] sm:$0xff]  ;;  %v2345_v6 = vld [vmem:[#allocation3 + $0x5a8] sm:$0xff] }
 0x799   :  { %2798 = vmatprep.subr.bf16.mxu0 %v2592_v60  ;;  %2962 = vmatprep.subr.bf16.mxu1 %v2594_v55  ;;  %v2231_v60 = vld [vmem:[#allocation3 + $0x218] sm:$0xff]  ;;  %v2289_v55 = vld [vmem:[#allocation3 + $0x3e8] sm:$0xff] }
 0x79c   :  { %2799 = vmatpush1.bf16.msra.mxu0 %v2591_v49  ;;  %2963 = vmatpush1.bf16.msra.mxu1 %v2593_v22  ;;  %v2239_v49 = vld [vmem:[#allocation3 + $0x258] sm:$0xff]  ;;  %v2352_v22 = vld [vmem:[#allocation3 + $0x5e0] sm:$0xff] }
 0x79d   :  { %2800 = vmatprep.subr.bf16.mxu0 %v2599_v57  ;;  %2964 = vmatprep.subr.bf16.mxu1 %v2601_v61  ;;  %v2238_v57 = vld [vmem:[#allocation3 + $0x250] sm:$0xff]  ;;  %v2296_v61 = vld [vmem:[#allocation3 + $0x420] sm:$0xff] }
 0x7a0   :  { %2801 = vmatpush1.bf16.msra.mxu0 %v2598_v38  ;;  %2965 = vmatpush1.bf16.msra.mxu1 %v2600_v25  ;;  %v2246_v38 = vld [vmem:[#allocation3 + $0x290] sm:$0xff]  ;;  %v2359_v25 = vld [vmem:[#allocation3 + $0x618] sm:$0xff] }
 0x7a1   :  { %2802 = vmatprep.subr.bf16.mxu0 %v2606_v46  ;;  %2966 = vmatprep.subr.bf16.mxu1 %v2608_v63  ;;  %v2245_v46 = vld [vmem:[#allocation3 + $0x288] sm:$0xff]  ;;  %v2303_v63 = vld [vmem:[#allocation3 + $0x458] sm:$0xff] }
 0x7a4   :  { %2803 = vmatpush1.bf16.msra.mxu0 %v2605_v0  ;;  %2967 = vmatpush1.bf16.msra.mxu1 %v2607_v1  ;;  %v2253_v0 = vld [vmem:[#allocation3 + $0x2c8] sm:$0xff]  ;;  %v2366_v1 = vld [vmem:[#allocation3 + $0x650] sm:$0xff] }
 0x7a5   :  { %2977 = vmatprep.subr.bf16.mxu0 %v2169_v20  ;;  %3474 = vmatprep.subr.bf16.mxu1 %v2226_v9  ;;  %v2252_v20 = vld [vmem:[#allocation3 + $0x2c0] sm:$0xff]  ;;  %v2310_v9 = vld [vmem:[#allocation3 + $0x490] sm:$0xff] }
 0x7a7   :  { %2805 = vmatmul.mubr.bf16.vlgmr.msra.gmra.mrb[12].mxu0 %v4708_v4  ;;  %2969 = vmatmul.mubr.bf16.vlgmr.msra.gmra.mrb[20].mxu1 %v4708_v4 }
 0x7a8   :  { %2978 = vmatpush1.bf16.msra.mxu0 %v2168_v5  ;;  %3475 = vmatpush3.bf16.msra.mxu1 %v2170_v8  ;;  %v2260_v5 = vld [vmem:[#allocation3 + $0x300] sm:$0xff]  ;;  %v2373_v8 = vld [vmem:[#allocation3 + $0x688] sm:$0xff] }
 0x7a9   :  { %2979 = vmatprep.subr.bf16.mxu0 %v2176_v51  ;;  %3476 = vmatprep.subr.bf16.mxu1 %v2233_v7  ;;  %v2259_v51 = vld [vmem:[#allocation3 + $0x2f8] sm:$0xff]  ;;  %v2317_v7 = vld [vmem:[#allocation3 + $0x4c8] sm:$0xff] }
 0x7aa   :  { %3009 = vmatprep.mubr.bf16.mxu0 %v4659_v26  ;;  %3173 = vmatprep.mubr.bf16.mxu1 %v4659_v26  ;;  %v2196_v26 = vld [vmem:[#allocation3 + $0x100] sm:$0xff] }
 0x7ac   :  { %2980 = vmatpush1.bf16.msra.mxu0 %v2175_v11  ;;  %3477 = vmatpush3.bf16.msra.mxu1 %v2177_v10  ;;  %v2267_v11 = vld [vmem:[#allocation3 + $0x338] sm:$0xff]  ;;  %v2380_v10 = vld [vmem:[#allocation3 + $0x6c0] sm:$0xff] }
 0x7ad   :  { %2981 = vmatprep.subr.bf16.mxu0 %v2183_v24  ;;  %3478 = vmatprep.subr.bf16.mxu1 %v2240_v47  ;;  %v2266_v24 = vld [vmem:[#allocation3 + $0x330] sm:$0xff]  ;;  %v2324_v47 = vld [vmem:[#allocation3 + $0x500] sm:$0xff] }
 0x7b0   :  { %2982 = vmatpush1.bf16.msra.mxu0 %v2182_v52  ;;  %3479 = vmatpush3.bf16.msra.mxu1 %v2184_v13  ;;  %v2274_v52 = vld [vmem:[#allocation3 + $0x370] sm:$0xff]  ;;  %v2387_v13 = vld [vmem:[#allocation3 + $0x6f8] sm:$0xff] }
 0x7b1   :  { %2983 = vmatprep.subr.bf16.mxu0 %v2190_v15  ;;  %3480 = vmatprep.subr.bf16.mxu1 %v2247_v18  ;;  %v2273_v15 = vld [vmem:[#allocation3 + $0x368] sm:$0xff]  ;;  %v2331_v18 = vld [vmem:[#allocation3 + $0x538] sm:$0xff] }
 0x7b4   :  { %2984 = vmatpush1.bf16.msra.mxu0 %v2189_v19  ;;  %3481 = vmatpush3.bf16.msra.mxu1 %v2191_v45  ;;  %v2281_v19 = vld [vmem:[#allocation3 + $0x3a8] sm:$0xff]  ;;  %v2450_v45 = vld [vmem:[#allocation3 + $0x8f0] sm:$0xff] }
 0x7b5   :  { %2985 = vmatprep.subr.bf16.mxu0 %v2197_v39  ;;  %3482 = vmatprep.subr.bf16.mxu1 %v2254_v30  ;;  %v2280_v39 = vld [vmem:[#allocation3 + $0x3a0] sm:$0xff]  ;;  %v2394_v30 = vld [vmem:[#allocation3 + $0x730] sm:$0xff] }
 0x7b8   :  { %2986 = vmatpush1.bf16.msra.mxu0 %v2196_v26  ;;  %3483 = vmatpush3.bf16.msra.mxu1 %v2198_v31  ;;  %v2288_v26 = vld [vmem:[#allocation3 + $0x3e0] sm:$0xff]  ;;  %v2457_v31 = vld [vmem:[#allocation3 + $0x928] sm:$0xff] }
 0x7b9   :  { %2987 = vmatprep.subr.bf16.mxu0 %v2204_v32  ;;  %3484 = vmatprep.subr.bf16.mxu1 %v2261_v16  ;;  %v2287_v32 = vld [vmem:[#allocation3 + $0x3d8] sm:$0xff]  ;;  %v2401_v16 = vld [vmem:[#allocation3 + $0x768] sm:$0xff] }
 0x7bc   :  { %2988 = vmatpush1.bf16.msra.mxu0 %v2203_v21  ;;  %3485 = vmatpush3.bf16.msra.mxu1 %v2205_v40  ;;  %v2295_v21 = vld [vmem:[#allocation3 + $0x418] sm:$0xff]  ;;  %v2464_v40 = vld [vmem:[#allocation3 + $0x960] sm:$0xff] }
 0x7bd   :  { %2989 = vmatprep.subr.bf16.mxu0 %v2211_v34  ;;  %3486 = vmatprep.subr.bf16.mxu1 %v2268_v35  ;;  %v2294_v34 = vld [vmem:[#allocation3 + $0x410] sm:$0xff] }
 0x7be   :  { %v2302_v35 = vld [vmem:[#allocation3 + $0x450] sm:$0xff] }
 0x7c0   :  { %2990 = vmatpush1.bf16.msra.mxu0 %v2210_v43  ;;  %3487 = vmatpush3.bf16.msra.mxu1 %v2212_v23  ;;  %v2471_v43 = vld [vmem:[#allocation3 + $0x998] sm:$0xff]  ;;  %v2301_v23 = vld [vmem:[#allocation3 + $0x448] sm:$0xff] }
 0x7c1   :  { %2991 = vmatprep.subr.bf16.mxu0 %v2218_v3  ;;  %3488 = vmatprep.subr.bf16.mxu1 %v2275_v36  ;;  %v2415_v3 = vld [vmem:[#allocation3 + $0x7d8] sm:$0xff]  ;;  %v2309_v36 = vld [vmem:[#allocation3 + $0x488] sm:$0xff] }
 0x7c4   :  { %2992 = vmatpush1.bf16.msra.mxu0 %v2217_v37  ;;  %3489 = vmatpush3.bf16.msra.mxu1 %v2219_v41  ;;  %v2478_v37 = vld [vmem:[#allocation3 + $0x9d0] sm:$0xff] }
 0x7c5   :  { %2993 = vmatprep.subr.bf16.mxu0 %v2225_v42  ;;  %3496 = vmatprep.subr.bf16.mxu1 %v2338_v44  ;;  %v2422_v41 = vld [vmem:[#allocation3 + $0x810] sm:$0xff]  ;;  %v2316_v42 = vld [vmem:[#allocation3 + $0x4c0] sm:$0xff]  ;;  %v2485_v44 = vld [vmem:[#allocation3 + $0xa08] sm:$0xff] }
 0x7c7   :  { %3174 = vmatmul.mubr.bf16.vlgmr.msra.gmra.mrb[24].mxu1 %v4666_v62 }
 0x7c8   :  { %2994 = vmatpush1.bf16.msra.mxu0 %v2224_v14  ;;  %3497 = vmatpush3.bf16.msra.mxu1 %v2282_v54  ;;  %v2315_v14 = vld [vmem:[#allocation3 + $0x4b8] sm:$0xff]  ;;  %v2429_v54 = vld [vmem:[#allocation3 + $0x848] sm:$0xff] }
 0x7c9   :  { %2995 = vmatprep.subr.bf16.mxu0 %v2232_v59  ;;  %3498 = vmatprep.subr.bf16.mxu1 %v2345_v6  ;;  %v2323_v59 = vld [vmem:[#allocation3 + $0x4f8] sm:$0xff]  ;;  %v2492_v6 = vld [vmem:[#allocation3 + $0xa40] sm:$0xff] }
 0x7ca   :  { %3213 = vmatprep.mubr.bf16.mxu1 %v4671_v2 }
 0x7cc   :  { %2996 = vmatpush1.bf16.msra.mxu0 %v2231_v60  ;;  %3499 = vmatpush3.bf16.msra.mxu1 %v2289_v55  ;;  %v2322_v60 = vld [vmem:[#allocation3 + $0x4f0] sm:$0xff]  ;;  %v2436_v55 = vld [vmem:[#allocation3 + $0x880] sm:$0xff] }
 0x7cd   :  { %2997 = vmatprep.subr.bf16.mxu0 %v2239_v49  ;;  %3500 = vmatprep.subr.bf16.mxu1 %v2352_v22  ;;  %v2330_v49 = vld [vmem:[#allocation3 + $0x530] sm:$0xff]  ;;  %v2499_v22 = vld [vmem:[#allocation3 + $0xa78] sm:$0xff] }
 0x7d0   :  { %2998 = vmatpush1.bf16.msra.mxu0 %v2238_v57  ;;  %3501 = vmatpush3.bf16.msra.mxu1 %v2296_v61  ;;  %v2329_v57 = vld [vmem:[#allocation3 + $0x528] sm:$0xff]  ;;  %v2443_v61 = vld [vmem:[#allocation3 + $0x8b8] sm:$0xff] }
 0x7d1   :  { %2999 = vmatprep.subr.bf16.mxu0 %v2246_v38  ;;  %3502 = vmatprep.subr.bf16.mxu1 %v2359_v25  ;;  %v2337_v38 = vld [vmem:[#allocation3 + $0x568] sm:$0xff]  ;;  %v2562_v25 = vld [vmem:[#allocation3 + $0xc70] sm:$0xff] }
 0x7d4   :  { %3000 = vmatpush1.bf16.msra.mxu0 %v2245_v46  ;;  %3503 = vmatpush3.bf16.msra.mxu1 %v2303_v63  ;;  %v2336_v46 = vld [vmem:[#allocation3 + $0x560] sm:$0xff]  ;;  %v2506_v63 = vld [vmem:[#allocation3 + $0xab0] sm:$0xff] }
 0x7d5   :  { %3001 = vmatprep.subr.bf16.mxu0 %v2253_v0  ;;  %3504 = vmatprep.subr.bf16.mxu1 %v2366_v1  ;;  %v2344_v0 = vld [vmem:[#allocation3 + $0x5a0] sm:$0xff]  ;;  %v2569_v1 = vld [vmem:[#allocation3 + $0xca8] sm:$0xff] }
 0x7d8   :  { %3002 = vmatpush1.bf16.msra.mxu0 %v2252_v20  ;;  %3505 = vmatpush3.bf16.msra.mxu1 %v2310_v9  ;;  %v2343_v20 = vld [vmem:[#allocation3 + $0x598] sm:$0xff]  ;;  %v2513_v9 = vld [vmem:[#allocation3 + $0xae8] sm:$0xff] }
 0x7d9   :  { %3003 = vmatprep.subr.bf16.mxu0 %v2260_v5  ;;  %3506 = vmatprep.subr.bf16.mxu1 %v2373_v8  ;;  %v2351_v5 = vld [vmem:[#allocation3 + $0x5d8] sm:$0xff]  ;;  %v2576_v8 = vld [vmem:[#allocation3 + $0xce0] sm:$0xff] }
 0x7dc   :  { %3004 = vmatpush1.bf16.msra.mxu0 %v2259_v51  ;;  %3507 = vmatpush3.bf16.msra.mxu1 %v2317_v7  ;;  %v2350_v51 = vld [vmem:[#allocation3 + $0x5d0] sm:$0xff]  ;;  %v2520_v7 = vld [vmem:[#allocation3 + $0xb20] sm:$0xff] }
 0x7dd   :  { %3005 = vmatprep.subr.bf16.mxu0 %v2267_v11  ;;  %3508 = vmatprep.subr.bf16.mxu1 %v2380_v10  ;;  %v2358_v11 = vld [vmem:[#allocation3 + $0x610] sm:$0xff]  ;;  %v2583_v10 = vld [vmem:[#allocation3 + $0xd18] sm:$0xff] }
 0x7e0   :  { %3006 = vmatpush1.bf16.msra.mxu0 %v2266_v24  ;;  %3509 = vmatpush3.bf16.msra.mxu1 %v2324_v47  ;;  %v2357_v24 = vld [vmem:[#allocation3 + $0x608] sm:$0xff]  ;;  %v2527_v47 = vld [vmem:[#allocation3 + $0xb58] sm:$0xff] }
 0x7e1   :  { %3007 = vmatprep.subr.bf16.mxu0 %v2274_v52  ;;  %3510 = vmatprep.subr.bf16.mxu1 %v2387_v13  ;;  %v2365_v52 = vld [vmem:[#allocation3 + $0x648] sm:$0xff]  ;;  %v2590_v13 = vld [vmem:[#allocation3 + $0xd50] sm:$0xff] }
 0x7e4   :  { %3008 = vmatpush1.bf16.msra.mxu0 %v2273_v15  ;;  %3511 = vmatpush3.bf16.msra.mxu1 %v2331_v18  ;;  %v2364_v15 = vld [vmem:[#allocation3 + $0x640] sm:$0xff]  ;;  %v2534_v18 = vld [vmem:[#allocation3 + $0xb90] sm:$0xff] }
 0x7e5   :  { %3018 = vmatprep.subr.bf16.mxu0 %v2281_v19  ;;  %3518 = vmatprep.subr.bf16.mxu1 %v2450_v45  ;;  %v2372_v19 = vld [vmem:[#allocation3 + $0x680] sm:$0xff]  ;;  %v2597_v45 = vld [vmem:[#allocation3 + $0xd88] sm:$0xff] }
 0x7e7   :  { %3010 = vmatmul.mubr.bf16.vlgmr.msra.gmra.mrb[16].mxu0 %v4666_v62  ;;  %3214 = vmatmul.mubr.bf16.vlgmr.msra.gmra.mrb[28].mxu1 %v4680_v29  ;;  %v2408_v62 = vld [vmem:[#allocation3 + $0x7a0] sm:$0xff] }
 0x7e8   :  { %3019 = vmatpush1.bf16.msra.mxu0 %v2280_v39  ;;  %3519 = vmatpush3.bf16.msra.mxu1 %v2394_v30  ;;  %v2371_v39 = vld [vmem:[#allocation3 + $0x678] sm:$0xff]  ;;  %v2541_v30 = vld [vmem:[#allocation3 + $0xbc8] sm:$0xff] }
 0x7e9   :  { %3020 = vmatprep.subr.bf16.mxu0 %v2288_v26  ;;  %3520 = vmatprep.subr.bf16.mxu1 %v2457_v31  ;;  %v2379_v26 = vld [vmem:[#allocation3 + $0x6b8] sm:$0xff]  ;;  %v2604_v31 = vld [vmem:[#allocation3 + $0xdc0] sm:$0xff] }
 0x7ea   :  { %3050 = vmatprep.mubr.bf16.mxu0 %v4671_v2  ;;  %3253 = vmatprep.mubr.bf16.mxu1 %v4685_v33  ;;  %v2308_v2 = vld [vmem:[#allocation3 + $0x480] sm:$0xff] }
 0x7ec   :  { %3021 = vmatpush1.bf16.msra.mxu0 %v2287_v32  ;;  %3521 = vmatpush3.bf16.msra.mxu1 %v2401_v16  ;;  %v2378_v32 = vld [vmem:[#allocation3 + $0x6b0] sm:$0xff]  ;;  %v2548_v16 = vld [vmem:[#allocation3 + $0xc00] sm:$0xff] }
 0x7ed   :  { %3022 = vmatprep.subr.bf16.mxu0 %v2295_v21  ;;  %3522 = vmatprep.subr.bf16.mxu1 %v2464_v40  ;;  %v2386_v21 = vld [vmem:[#allocation3 + $0x6f0] sm:$0xff]  ;;  %v2611_v40 = vld [vmem:[#allocation3 + $0xdf8] sm:$0xff] }
 0x7f0   :  { %3023 = vmatpush1.bf16.msra.mxu0 %v2294_v34  ;;  %3523 = vmatpush3.bf16.msra.mxu1 %v2408_v62  ;;  %v2385_v34 = vld [vmem:[#allocation3 + $0x6e8] sm:$0xff]  ;;  %v2555_v62 = vld [vmem:[#allocation3 + $0xc38] sm:$0xff] }
 0x7f1   :  { %3024 = vmatprep.subr.bf16.mxu0 %v2302_v35  ;;  %3524 = vmatprep.subr.bf16.mxu1 %v2471_v43  ;;  %v2393_v35 = vld [vmem:[#allocation3 + $0x728] sm:$0xff]  ;;  %v2392_v43 = vld [vmem:[#allocation3 + $0x720] sm:$0xff] }
 0x7f4   :  { %3025 = vmatpush1.bf16.msra.mxu0 %v2301_v23  ;;  %3525 = vmatpush3.bf16.msra.mxu1 %v2415_v3  ;;  %v2400_v23 = vld [vmem:[#allocation3 + $0x760] sm:$0xff]  ;;  %v2399_v3 = vld [vmem:[#allocation3 + $0x758] sm:$0xff] }
 0x7f5   :  { %3026 = vmatprep.subr.bf16.mxu0 %v2309_v36  ;;  %3526 = vmatprep.subr.bf16.mxu1 %v2478_v37  ;;  %v2407_v36 = vld [vmem:[#allocation3 + $0x798] sm:$0xff]  ;;  %v2406_v37 = vld [vmem:[#allocation3 + $0x790] sm:$0xff] }
 0x7f8   :  { %3027 = vmatpush1.bf16.msra.mxu0 %v2308_v2  ;;  %3527 = vmatpush3.bf16.msra.mxu1 %v2422_v41  ;;  %v2414_v2 = vld [vmem:[#allocation3 + $0x7d0] sm:$0xff]  ;;  %v2413_v41 = vld [vmem:[#allocation3 + $0x7c8] sm:$0xff] }
 0x7f9   :  { %3028 = vmatprep.subr.bf16.mxu0 %v2316_v42  ;;  %3528 = vmatprep.subr.bf16.mxu1 %v2485_v44  ;;  %v2421_v42 = vld [vmem:[#allocation3 + $0x808] sm:$0xff]  ;;  %v2420_v44 = vld [vmem:[#allocation3 + $0x800] sm:$0xff] }
 0x7fc   :  { %3029 = vmatpush1.bf16.msra.mxu0 %v2315_v14  ;;  %3529 = vmatpush3.bf16.msra.mxu1 %v2429_v54  ;;  %v2427_v14 = vld [vmem:[#allocation3 + $0x838] sm:$0xff] }
 0x7fd   :  { %3030 = vmatprep.subr.bf16.mxu0 %v2323_v59  ;;  %3530 = vmatprep.subr.bf16.mxu1 %v2492_v6  ;;  %v2435_v54 = vld [vmem:[#allocation3 + $0x878] sm:$0xff]  ;;  %v2442_v59 = vld [vmem:[#allocation3 + $0x8b0] sm:$0xff]  ;;  %v2441_v6 = vld [vmem:[#allocation3 + $0x8a8] sm:$0xff] }
 0x800   :  { %3031 = vmatpush1.bf16.msra.mxu0 %v2322_v60  ;;  %3531 = vmatpush3.bf16.msra.mxu1 %v2436_v55  ;;  %v2449_v60 = vld [vmem:[#allocation3 + $0x8e8] sm:$0xff]  ;;  %v2448_v55 = vld [vmem:[#allocation3 + $0x8e0] sm:$0xff] }
 0x801   :  { %3032 = vmatprep.subr.bf16.mxu0 %v2330_v49  ;;  %3532 = vmatprep.subr.bf16.mxu1 %v2499_v22  ;;  %v2456_v49 = vld [vmem:[#allocation3 + $0x920] sm:$0xff]  ;;  %v2455_v22 = vld [vmem:[#allocation3 + $0x918] sm:$0xff] }
 0x804   :  { %3033 = vmatpush1.bf16.msra.mxu0 %v2329_v57  ;;  %3533 = vmatpush3.bf16.msra.mxu1 %v2443_v61  ;;  %v2463_v57 = vld [vmem:[#allocation3 + $0x958] sm:$0xff]  ;;  %v2462_v61 = vld [vmem:[#allocation3 + $0x950] sm:$0xff] }
 0x805   :  { %3034 = vmatprep.subr.bf16.mxu0 %v2337_v38  ;;  %3540 = vmatprep.subr.bf16.mxu1 %v2562_v25  ;;  %v2470_v38 = vld [vmem:[#allocation3 + $0x990] sm:$0xff]  ;;  %v2469_v25 = vld [vmem:[#allocation3 + $0x988] sm:$0xff] }
 0x807   :  { %3254 = vmatmul.mubr.bf16.vlgmr.msra.gmra.mrb[32].mxu1 %v4694_v58 }
 0x808   :  { %3035 = vmatpush1.bf16.msra.mxu0 %v2336_v46  ;;  %3541 = vmatpush3.bf16.msra.mxu1 %v2506_v63  ;;  %v2477_v46 = vld [vmem:[#allocation3 + $0x9c8] sm:$0xff]  ;;  %v2476_v63 = vld [vmem:[#allocation3 + $0x9c0] sm:$0xff] }
 0x809   :  { %3036 = vmatprep.subr.bf16.mxu0 %v2344_v0  ;;  %3542 = vmatprep.subr.bf16.mxu1 %v2569_v1  ;;  %v2484_v0 = vld [vmem:[#allocation3 + $0xa00] sm:$0xff]  ;;  %v2483_v1 = vld [vmem:[#allocation3 + $0x9f8] sm:$0xff] }
 0x80a   :  { %3293 = vmatprep.mubr.bf16.mxu1 %v4699_v56 }
 0x80c   :  { %3037 = vmatpush1.bf16.msra.mxu0 %v2343_v20  ;;  %3543 = vmatpush3.bf16.msra.mxu1 %v2513_v9  ;;  %v2491_v20 = vld [vmem:[#allocation3 + $0xa38] sm:$0xff]  ;;  %v2490_v9 = vld [vmem:[#allocation3 + $0xa30] sm:$0xff] }
 0x80d   :  { %3038 = vmatprep.subr.bf16.mxu0 %v2351_v5  ;;  %3544 = vmatprep.subr.bf16.mxu1 %v2576_v8  ;;  %v2498_v5 = vld [vmem:[#allocation3 + $0xa70] sm:$0xff]  ;;  %v2497_v8 = vld [vmem:[#allocation3 + $0xa68] sm:$0xff] }
 0x810   :  { %3039 = vmatpush1.bf16.msra.mxu0 %v2350_v51  ;;  %3545 = vmatpush3.bf16.msra.mxu1 %v2520_v7  ;;  %v2505_v51 = vld [vmem:[#allocation3 + $0xaa8] sm:$0xff]  ;;  %v2504_v7 = vld [vmem:[#allocation3 + $0xaa0] sm:$0xff] }
 0x811   :  { %3040 = vmatprep.subr.bf16.mxu0 %v2358_v11  ;;  %3546 = vmatprep.subr.bf16.mxu1 %v2583_v10  ;;  %v2512_v11 = vld [vmem:[#allocation3 + $0xae0] sm:$0xff]  ;;  %v2511_v10 = vld [vmem:[#allocation3 + $0xad8] sm:$0xff] }
 0x814   :  { %3041 = vmatpush1.bf16.msra.mxu0 %v2357_v24  ;;  %3547 = vmatpush3.bf16.msra.mxu1 %v2527_v47  ;;  %v2519_v24 = vld [vmem:[#allocation3 + $0xb18] sm:$0xff]  ;;  %v2518_v47 = vld [vmem:[#allocation3 + $0xb10] sm:$0xff] }
 0x815   :  { %3042 = vmatprep.subr.bf16.mxu0 %v2365_v52  ;;  %3548 = vmatprep.subr.bf16.mxu1 %v2590_v13  ;;  %v2526_v52 = vld [vmem:[#allocation3 + $0xb50] sm:$0xff]  ;;  %v2525_v13 = vld [vmem:[#allocation3 + $0xb48] sm:$0xff] }
 0x818   :  { %3043 = vmatpush1.bf16.msra.mxu0 %v2364_v15  ;;  %3549 = vmatpush3.bf16.msra.mxu1 %v2534_v18  ;;  %v2533_v15 = vld [vmem:[#allocation3 + $0xb88] sm:$0xff] }
 0x819   :  { %3044 = vmatprep.subr.bf16.mxu0 %v2372_v19  ;;  %3550 = vmatprep.subr.bf16.mxu1 %v2597_v45  ;;  %v4727_v18 = vld [vmem:[#allocation25] sm:$0xff]  ;;  %v2532_v19 = vld [vmem:[#allocation3 + $0xb80] sm:$0xff] }
 0x81a   :  { %v2625_v45 = vrot.slane %v4727_v18, %v4502_v27 }
 0x81c   :  { %3045 = vmatpush1.bf16.msra.mxu0 %v2371_v39  ;;  %3551 = vmatpush3.bf16.msra.mxu1 %v2541_v30  ;;  %v2621_v39 = vrot.slane %v4727_v18, %v4480_v12  ;;  %v2629_v30 = vrot.slane %v4727_v18, %v4505_v28  ;;  %v2546_v28 = vld [vmem:[#allocation3 + $0xbf0] sm:$0xff] }
 0x81d   :  { %3046 = vmatprep.subr.bf16.mxu0 %v2379_v26  ;;  %3552 = vmatprep.subr.bf16.mxu1 %v2604_v31  ;;  %v2539_v26 = vld [vmem:[#allocation3 + $0xbb8] sm:$0xff] }
 0x820   :  { %3047 = vmatpush1.bf16.msra.mxu0 %v2378_v32  ;;  %3553 = vmatpush3.bf16.msra.mxu1 %v2548_v16  ;;  %v2547_v16 = vld [vmem:[#allocation3 + $0xbf8] sm:$0xff] }
 0x821   :  { %3048 = vmatprep.subr.bf16.mxu0 %v2386_v21  ;;  %3554 = vmatprep.subr.bf16.mxu1 %v2611_v40 }
 0x824   :  { %3049 = vmatpush1.bf16.msra.mxu0 %v2385_v34  ;;  %3555 = vmatpush3.bf16.msra.mxu1 %v2555_v62 }
 0x825   :  { %3059 = vmatprep.subr.bf16.mxu0 %v2393_v35 }
 0x827   :  { %3051 = vmatmul.mubr.bf16.vlgmr.msra.gmra.mrb[16].mxu0 %v4680_v29  ;;  %3294 = vmatmul.mubr.bf16.vlgmr.msra.gmra.mrb[36].mxu1 %v4708_v4  ;;  %v2428_v29 = vld [vmem:[#allocation3 + $0x840] sm:$0xff] }
 0x828   :  { %3060 = vmatpush1.bf16.msra.mxu0 %v2392_v43  ;;  %3091 = vmatprep.mubr.bf16.mxu0 %v4685_v33  ;;  %v2434_v33 = vld [vmem:[#allocation3 + $0x870] sm:$0xff] }
 0x829   :  { %3061 = vmatprep.subr.bf16.mxu0 %v2400_v23 }
 0x82c   :  { %3062 = vmatpush1.bf16.msra.mxu0 %v2399_v3 }
 0x82d   :  { %3063 = vmatprep.subr.bf16.mxu0 %v2407_v36 }
 0x830   :  { %3064 = vmatpush1.bf16.msra.mxu0 %v2406_v37 }
 0x831   :  { %3065 = vmatprep.subr.bf16.mxu0 %v2414_v2 }
 0x834   :  { %3066 = vmatpush1.bf16.msra.mxu0 %v2413_v41  ;;  %v2554_v41 = vld [vmem:[#allocation3 + $0xc30] sm:$0xff] }
 0x835   :  { %3067 = vmatprep.subr.bf16.mxu0 %v2421_v42 }
 0x838   :  { %3068 = vmatpush1.bf16.msra.mxu0 %v2420_v44 }
 0x839   :  { %3069 = vmatprep.subr.bf16.mxu0 %v2428_v29 }
 0x83c   :  { %3070 = vmatpush1.bf16.msra.mxu0 %v2427_v14 }
 0x83d   :  { %3071 = vmatprep.subr.bf16.mxu0 %v2435_v54  ;;  %v2553_v54 = vld [vmem:[#allocation3 + $0xc28] sm:$0xff] }
 0x840   :  { %3072 = vmatpush1.bf16.msra.mxu0 %v2434_v33  ;;  %v2561_v33 = vld [vmem:[#allocation3 + $0xc68] sm:$0xff] }
 0x841   :  { %3073 = vmatprep.subr.bf16.mxu0 %v2442_v59  ;;  %v2560_v59 = vld [vmem:[#allocation3 + $0xc60] sm:$0xff] }
 0x844   :  { %3074 = vmatpush1.bf16.msra.mxu0 %v2441_v6  ;;  %v2568_v6 = vld [vmem:[#allocation3 + $0xca0] sm:$0xff] }
 0x845   :  { %3075 = vmatprep.subr.bf16.mxu0 %v2449_v60  ;;  %v2567_v60 = vld [vmem:[#allocation3 + $0xc98] sm:$0xff] }
 0x848   :  { %3076 = vmatpush1.bf16.msra.mxu0 %v2448_v55  ;;  %v2575_v55 = vld [vmem:[#allocation3 + $0xcd8] sm:$0xff] }
 0x849   :  { %3077 = vmatprep.subr.bf16.mxu0 %v2456_v49 }
 0x84c   :  { %3078 = vmatpush1.bf16.msra.mxu0 %v2455_v22 }
 0x84d   :  { %3079 = vmatprep.subr.bf16.mxu0 %v2463_v57 }
 0x850   :  { %3080 = vmatpush1.bf16.msra.mxu0 %v2462_v61 }
 0x851   :  { %3081 = vmatprep.subr.bf16.mxu0 %v2470_v38 }
 0x854   :  { %3082 = vmatpush1.bf16.msra.mxu0 %v2469_v25  ;;  %v2574_v25 = vld [vmem:[#allocation3 + $0xcd0] sm:$0xff] }
 0x855   :  { %3083 = vmatprep.subr.bf16.mxu0 %v2477_v46 }
 0x858   :  { %3084 = vmatpush1.bf16.msra.mxu0 %v2476_v63 }
 0x859   :  { %3085 = vmatprep.subr.bf16.mxu0 %v2484_v0  ;;  %v2582_v0 = vld [vmem:[#allocation3 + $0xd10] sm:$0xff] }
 0x85c   :  { %3086 = vmatpush1.bf16.msra.mxu0 %v2483_v1 }
 0x85d   :  { %3087 = vmatprep.subr.bf16.mxu0 %v2491_v20  ;;  %v2581_v20 = vld [vmem:[#allocation3 + $0xd08] sm:$0xff] }
 0x860   :  { %3088 = vmatpush1.bf16.msra.mxu0 %v2490_v9  ;;  %v2589_v9 = vld [vmem:[#allocation3 + $0xd48] sm:$0xff] }
 0x861   :  { %3089 = vmatprep.subr.bf16.mxu0 %v2498_v5  ;;  %v2588_v5 = vld [vmem:[#allocation3 + $0xd40] sm:$0xff] }
 0x864   :  { %3090 = vmatpush1.bf16.msra.mxu0 %v2497_v8  ;;  %v2596_v8 = vld [vmem:[#allocation3 + $0xd80] sm:$0xff] }
 0x865   :  { %3100 = vmatprep.subr.bf16.mxu0 %v2505_v51 }
 0x867   :  { %3092 = vmatmul.mubr.bf16.vlgmr.msra.gmra.mrb[16].mxu0 %v4694_v58  ;;  %v2540_v58 = vld [vmem:[#allocation3 + $0xbc0] sm:$0xff] }
 0x868   :  { %3101 = vmatpush1.bf16.msra.mxu0 %v2504_v7  ;;  %3132 = vmatprep.mubr.bf16.mxu0 %v4699_v56  ;;  %v2617_v56 = vrot.slane %v4727_v18, %v4471_v48 }
 0x869   :  { %3102 = vmatprep.subr.bf16.mxu0 %v2512_v11  ;;  %v2595_v11 = vld [vmem:[#allocation3 + $0xd78] sm:$0xff] }
 0x86c   :  { %3103 = vmatpush1.bf16.msra.mxu0 %v2511_v10 }
 0x86d   :  { %3104 = vmatprep.subr.bf16.mxu0 %v2519_v24  ;;  %v2603_v24 = vld [vmem:[#allocation3 + $0xdb8] sm:$0xff] }
 0x870   :  { %3105 = vmatpush1.bf16.msra.mxu0 %v2518_v47 }
 0x871   :  { %3106 = vmatprep.subr.bf16.mxu0 %v2526_v52 }
 0x874   :  { %3107 = vmatpush1.bf16.msra.mxu0 %v2525_v13 }
 0x875   :  { %3108 = vmatprep.subr.bf16.mxu0 %v2533_v15 }
 0x878   :  { %3109 = vmatpush1.bf16.msra.mxu0 %v2532_v19 }
 0x879   :  { %3110 = vmatprep.subr.bf16.mxu0 %v2540_v58  ;;  %v2602_v58 = vld [vmem:[#allocation3 + $0xdb0] sm:$0xff] }
 0x87a   :  { %v2806_v31 = vpop.f32.mrb[12].mxu0  ;;  %v2970_v32 = vpop.f32.mrb[20].mxu1 }
 0x87b   :  { %v3574_v21 = vadd.f32 %v2806_v31, %v2617_v56  ;;  %v3576_v40 = vadd.f32 %v2970_v32, %v2625_v45  ;;  %v2808_v34 = vpop.f32.mrb[13].mxu0  ;;  %v2972_v62 = vpop.f32.mrb[21].mxu1  ;;  %v2610_v45 = vld [vmem:[#allocation3 + $0xdf0] sm:$0xff] }
 0x87c   :  { %v3575_v48 = vadd.f32 %v2808_v34, %v2621_v39  ;;  %v3577_v35 = vadd.f32 %v2972_v62, %v2629_v30  ;;  %v2810_v43 = vpop.f32.mrb[14].mxu0  ;;  %v2974_v27 = vpop.f32.mrb[22].mxu1  ;;  %3111 = vmatpush1.bf16.msra.mxu0 %v2539_v26  ;;  %v2609_v39 = vld [vmem:[#allocation3 + $0xde8] sm:$0xff]  ;;  %v2641_v30 = vrot.slane %v4727_v18, %v4613_v53 }
 0x87d   :  { %v3301_v23 = vsub.f32 0.0, %v3574_v21  ;;  %v3303_v3 = vsub.f32 0.0, %v3576_v40  ;;  %v2811_v12 = vpop.f32.mrb[15].mxu0  ;;  %v2975_v36 = vpop.f32.mrb[23].mxu1  ;;  %3112 = vmatprep.subr.bf16.mxu0 %v2547_v16 }
 0x87e   :  { %v3302_v37 = vsub.f32 0.0, %v3575_v48  ;;  %v3304_v2 = vsub.f32 0.0, %v3577_v35 }
 0x87f   :  { %v3308_v42 = vmul.f32 1.442695, %v3301_v23  ;;  %v3312_v44 = vmul.f32 1.442695, %v3303_v3 }
 0x880   :  { %v3310_v29 = vmul.f32 1.442695, %v3302_v37  ;;  %v3314_v14 = vmul.f32 1.442695, %v3304_v2  ;;  %3113 = vmatpush1.bf16.msra.mxu0 %v2546_v28 }
 0x881   :  { %3826 = vpow2.f32 %v3308_v42  ;;  %3114 = vmatprep.subr.bf16.mxu0 %v2554_v41 }
 0x882   :  { %3828 = vpow2.f32 %v3312_v44 }
 0x883   :  { %3830 = vpow2.f32 %v3310_v29  ;;  %v2633_v29 = vrot.slane %v4727_v18, %v4607_v50 }
 0x884   :  { %3832 = vpow2.f32 %v3314_v14  ;;  %3115 = vmatpush1.bf16.msra.mxu0 %v2553_v54  ;;  %v2637_v14 = vrot.slane %v4727_v18, %v4610_v17 }
 0x885   :  { %3116 = vmatprep.subr.bf16.mxu0 %v2561_v33 }
 0x888   :  { %3117 = vmatpush1.bf16.msra.mxu0 %v2560_v59 }
 0x889   :  { %3118 = vmatprep.subr.bf16.mxu0 %v2568_v6 }
 0x88b   :  { %v3827_v49 = vpop.eup %3826 }
 0x88c   :  { %v3829_v22 = vpop.eup %3828  ;;  %v3322_v57 = vadd.f32 1.0, %v3827_v49  ;;  %3119 = vmatpush1.bf16.msra.mxu0 %v2567_v60 }
 0x88d   :  { %v3831_v61 = vpop.eup %3830  ;;  %v3324_v38 = vadd.f32 1.0, %v3829_v22  ;;  %3120 = vmatprep.subr.bf16.mxu0 %v2575_v55 }
 0x88e   :  { %v3833_v46 = vpop.eup %3832  ;;  %3834 = vrcp.f32 %v3322_v57  ;;  %v3323_v63 = vadd.f32 1.0, %v3831_v61 }
 0x88f   :  { %3836 = vrcp.f32 %v3324_v38  ;;  %v3325_v1 = vadd.f32 1.0, %v3833_v46 }
 0x890   :  { %3838 = vrcp.f32 %v3323_v63  ;;  %3121 = vmatpush1.bf16.msra.mxu0 %v2574_v25 }
 0x891   :  { %3840 = vrcp.f32 %v3325_v1  ;;  %3122 = vmatprep.subr.bf16.mxu0 %v2582_v0 }
 0x894   :  { %3123 = vmatpush1.bf16.msra.mxu0 %v2581_v20 }
 0x895   :  { %3124 = vmatprep.subr.bf16.mxu0 %v2589_v9 }
 0x898   :  { %v3835_v51 = vpop.eup %3834  ;;  %3125 = vmatpush1.bf16.msra.mxu0 %v2588_v5 }
 0x899   :  { %v3837_v7 = vpop.eup %3836  ;;  %3336 = vst [vmem:[#allocation26] sm:$0xff] %v3835_v51  ;;  %3126 = vmatprep.subr.bf16.mxu0 %v2596_v8 }
 0x89a   :  { %v3839_v10 = vpop.eup %3838  ;;  %3338 = vst [vmem:[#allocation26 + $0x10] sm:$0xff] %v3837_v7  ;;  %v3490_v47 = vpop.f32.mrb[24].mxu1 }
 0x89b   :  { %v3841_v52 = vpop.eup %3840  ;;  %3337 = vst [vmem:[#allocation26 + $0x8] sm:$0xff] %v3839_v10  ;;  %v3491_v13 = vpop.f32.mrb[25].mxu1 }
 0x89c   :  { %3339 = vst [vmem:[#allocation26 + $0x18] sm:$0xff] %v3841_v52  ;;  %3127 = vmatpush1.bf16.msra.mxu0 %v2595_v11  ;;  %v3492_v15 = vadd.f32 %v3491_v13, %v3490_v47  ;;  %v3493_v19 = vpop.f32.mrb[26].mxu1 }
 0x89d   :  { %3128 = vmatprep.subr.bf16.mxu0 %v2603_v24  ;;  %v3494_v56 = vpop.f32.mrb[27].mxu1 }
 0x89e   :  { %v3176_v26 = vadd.f32 %v3492_v15, %v2641_v30 }
 0x8a0   :  { %3129 = vmatpush1.bf16.msra.mxu0 %v2602_v58 }
 0x8a1   :  { %3130 = vmatprep.subr.bf16.mxu0 %v2610_v45 }
 0x8a4   :  { %3131 = vmatpush1.bf16.msra.mxu0 %v2609_v39 }
 0x8a7   :  { %3133 = vmatmul.mubr.bf16.vlgmr.msra.gmra.mrb[16].mxu0 %v4708_v4 }
 0x8ba   :  { %v3512_v31 = vpop.f32.mrb[28].mxu1 }
 0x8bb   :  { %v3513_v32 = vpop.f32.mrb[29].mxu1 }
 0x8bc   :  { %v3514_v16 = vadd.f32 %v3513_v32, %v3512_v31  ;;  %v3515_v21 = vpop.f32.mrb[30].mxu1 }
 0x8bd   :  { %v3516_v40 = vpop.f32.mrb[31].mxu1 }
 0x8be   :  { %v3216_v34 = vadd.f32 %v3514_v16, %v3176_v26 }
 0x8da   :  { %v3534_v62 = vpop.f32.mrb[32].mxu1 }
 0x8db   :  { %v3535_v48 = vpop.f32.mrb[33].mxu1 }
 0x8dc   :  { %v3536_v35 = vadd.f32 %v3535_v48, %v3534_v62  ;;  %v3537_v43 = vpop.f32.mrb[34].mxu1 }
 0x8dd   :  { %v3538_v27 = vpop.f32.mrb[35].mxu1 }
 0x8de   :  { %v3256_v23 = vadd.f32 %v3536_v35, %v3216_v34 }
 0x8fa   :  { %v3556_v3 = vpop.f32.mrb[36].mxu1 }
 0x8fb   :  { %v3557_v12 = vpop.f32.mrb[37].mxu1 }
 0x8fc   :  { %v3558_v36 = vadd.f32 %v3557_v12, %v3556_v3  ;;  %v3559_v4 = vpop.f32.mrb[38].mxu1 }
 0x8fd   :  { %v3560_v28 = vpop.f32.mrb[39].mxu1 }
 0x8fe   :  { %v3296_v37 = vadd.f32 %v3558_v36, %v3256_v23 }
 0x900   :  { %v3307_v53 = vsub.f32 0.0, %v3296_v37 }
 0x902   :  { %v3320_v2 = vmul.f32 1.442695, %v3307_v53 }
 0x904   :  { %3842 = vpow2.f32 %v3320_v2 }
 0x90e   :  { %v3843_v41 = vpop.eup %3842 }
 0x90f   :  { %v3328_v42 = vadd.f32 1.0, %v3843_v41 }
 0x911   :  { %3844 = vrcp.f32 %v3328_v42 }
 0x91b   :  { %v3845_v44 = vpop.eup %3844 }
 0x91c   :  { %3342 = vst [vmem:[#allocation26 + $0x30] sm:$0xff] %v3845_v44 }
 0x97a   :  { %v3134_v54 = vpop.f32.mrb[16].mxu0 }
 0x97b   :  { %v3578_v33 = vadd.f32 %v3134_v54, %v2633_v29  ;;  %v3136_v59 = vpop.f32.mrb[17].mxu0 }
 0x97c   :  { %v3579_v6 = vadd.f32 %v3136_v59, %v2637_v14  ;;  %v3138_v60 = vpop.f32.mrb[18].mxu0 }
 0x97d   :  { %v3305_v55 = vsub.f32 0.0, %v3578_v33  ;;  %v3139_v49 = vpop.f32.mrb[19].mxu0 }
 0x97e   :  { %v3306_v22 = vsub.f32 0.0, %v3579_v6 }
 0x97f   :  { %v3316_v57 = vmul.f32 1.442695, %v3305_v55 }
 0x980   :  { %v3318_v61 = vmul.f32 1.442695, %v3306_v22 }
 0x981   :  { %3846 = vpow2.f32 %v3316_v57 }
 0x982   :  { %3848 = vpow2.f32 %v3318_v61 }
 0x98b   :  { %v3847_v38 = vpop.eup %3846 }
 0x98c   :  { %v3849_v25 = vpop.eup %3848  ;;  %v3326_v46 = vadd.f32 1.0, %v3847_v38 }
 0x98d   :  { %v3327_v63 = vadd.f32 1.0, %v3849_v25 }
 0x98e   :  { %3850 = vrcp.f32 %v3326_v46 }
 0x98f   :  { %3852 = vrcp.f32 %v3327_v63 }
 0x998   :  { %v3851_v50 = vpop.eup %3850 }
 0x999   :  { %v3853_v17 = vpop.eup %3852  ;;  %3340 = vst [vmem:[#allocation26 + $0x20] sm:$0xff] %v3851_v50 }
 0x99a   :  { %3341 = vst [vmem:[#allocation26 + $0x28] sm:$0xff] %v3853_v17 }
 0x99b   :  { %4151 = shalt.err (!%p4148_p10)
}
 0x99c   :  { %s4774_s3 = sld [smem:[#allocation41_spill]] }
 0x9a2   :  { %s4152_s2 = scalar_lea.hbm %s4774_s3, 896 }
 0x9a3   :  { %p4153_p11 = scmp.ne.s32.totalorder %s4774_s3, %s4152_s2  ;;  %p4156_p12 = scmp.lt.u32.totalorder %s4152_s2, %s4774_s3 }
 0x9a5   :  { %p4158_p13 = pnand %p4156_p12, %p4153_p11 }
 0x9a7   :  { %4161 = shalt.err (!%p4158_p13)
}
 0x9a8   :  { %3352 = dma.vmem_to_hbm [thread:$0]  %s3350_s30, 896, %s4774_s3, [#allocation7]  }
 0x9a9   :  { %4180 = dma.done.wait [#allocation7], 896  }
 0x9aa   :  { %4181 = vsyncadd [#allocation7], 4294966400 }
 0x9ab   :  { %3356 = vsyncpa [#allocation6], 1 }
 0x9ac   :  { %3357 = vsyncpa [#allocation9], 1 }
 0x9ad   :  { %3358 = vsyncpa [#allocation12], 1 }
 0x9ae   :  { %3359 = vsyncpa [#allocation15], 1 }
 0x9af   :  { %3360 = vsyncpa [#allocation18], 1 }
 0x9b0   :  { %3361 = vsyncpa [#allocation21], 1 }
 0x9b1   :  { %3362 = vsyncpa [#allocation24], 1 }
 0x9b2   :  { %3363 = vsyncpa [#allocation7], 1 }
 0x9b3   :  { %3364 = vsyncmov [#allocation4] }
 0x9b6   :  { %s3365_s17 = vpop.sfrf %3364 }
 0x9b7   :  { %p3467_p0 = scmp.ne.s32.totalorder %s3365_s17, 0 }
 0x9b9   :  { %3369 = shalt.err (%p3467_p0)  }
 0x9ba   :  { %3371 = vsyncmov [#allocation4 + $0x1] }
 0x9bd   :  { %s3372_s20 = vpop.sfrf %3371 }
 0x9be   :  { %p3468_p1 = scmp.ne.s32.totalorder %s3372_s20, 0 }
 0x9c0   :  { %3376 = shalt.err (%p3468_p1)  }

</bundles_post_ra>
